<compile_context>
chip_gen: v7x
topology: tpu7x:2x2x1
jax: 0.10.0
libtpu: 0.0.40
codegen_flags: <defaults>
</compile_context>

<pallas_src>
import functools
import math

import jax
import jax.numpy as jnp
from jax import lax
from jax.experimental import pallas as pl
from jax.experimental.pallas import tpu as pltpu


def _make_lstm_layer_kernel(T, bb, H):
    """Build a per-layer kernel for a (bb, T, *) batch block."""

    def kernel(x_ref, wx_ref, wh_ref, b_ref,      # inputs
               out_ref, cn_ref,                   # outputs
               gx_sc, out_sc, h_sc, c_sc):        # VMEM scratch
        # ---- Phase 1: hoisted input projection (time-independent) ---------
        # One (T, I) @ (I, 4H) GEMM per batch row; bias folded in here.
        for b_idx in range(bb):
            gx_sc[:, b_idx, :] = (
                jnp.dot(x_ref[b_idx], wx_ref[...],
                        preferred_element_type=jnp.float32)
                + b_ref[...])

        # ---- Phase 2: serial recurrence, state resident in VMEM -----------
        h_sc[...] = jnp.zeros_like(h_sc)
        c_sc[...] = jnp.zeros_like(c_sc)

        def step(t, carry):
            gates = gx_sc[t] + jnp.dot(h_sc[...], wh_ref[...],
                                       preferred_element_type=jnp.float32)
            # gate order of the reference module: forget, input, cell, output
            f = jax.nn.sigmoid(gates[:, 0:H])
            i = jax.nn.sigmoid(gates[:, H:2 * H])
            g = jnp.tanh(gates[:, 2 * H:3 * H])
            o = jax.nn.sigmoid(gates[:, 3 * H:4 * H])
            c_next = f * c_sc[...] + i * g
            h_next = o * jnp.tanh(c_next)
            h_sc[...] = h_next
            c_sc[...] = c_next
            out_sc[t] = h_next
            return carry

        # Short fixed trip count -> fully unrolled for LLO scheduler visibility.
        lax.fori_loop(0, T, step, 0, unroll=True)

        # ---- Phase 3: batched writeback (one block per grid step) ---------
        for b_idx in range(bb):
            out_ref[b_idx] = out_sc[:, b_idx, :]
        cn_ref[...] = c_sc[...]

    return kernel


def lstm_layer(x, wx, wh, b, *, batch_block=None):
    """Run one LSTM layer over a full sequence (batch_first layout).

    x : [B, T, I], wx : [I, 4H], wh : [H, 4H], b : [1, 4H]
    Returns (out_seq [B, T, H], c_n [B, H]).  h_n == out_seq[:, -1, :].

    `batch_block` splits the batch into independent "parallel" grid blocks
    (e.g. B//2 to shard across the two TensorCores of a v7x chip).
    """
    B, T, I = x.shape
    H = wh.shape[0]
    bb = B if batch_block is None else batch_block
    assert B % bb == 0, "batch must divide evenly into batch blocks"

    kernel = _make_lstm_layer_kernel(T, bb, H)
    out_seq, c_n = pl.pallas_call(
        kernel,
        out_shape=(jax.ShapeDtypeStruct((B, T, H), jnp.float32),
                   jax.ShapeDtypeStruct((B, H), jnp.float32)),
        grid_spec=pltpu.PrefetchScalarGridSpec(
            num_scalar_prefetch=0,
            grid=(B // bb,),
            in_specs=[
                pl.BlockSpec((bb, T, I), lambda i: (i, 0, 0)),
                pl.BlockSpec((I, 4 * H), lambda i: (0, 0)),   # weights: constant
                pl.BlockSpec((H, 4 * H), lambda i: (0, 0)),   # index map -> DMA'd
                pl.BlockSpec((1, 4 * H), lambda i: (0, 0)),   # once, reused
            ],
            out_specs=[
                pl.BlockSpec((bb, T, H), lambda i: (i, 0, 0)),
                pl.BlockSpec((bb, H), lambda i: (i, 0)),
            ],
            scratch_shapes=[
                pltpu.VMEM((T, bb, 4 * H), jnp.float32),   # hoisted x@Wx + b
                pltpu.VMEM((T, bb, H), jnp.float32),       # per-step h outputs
                pltpu.VMEM((bb, H), jnp.float32),          # h carry
                pltpu.VMEM((bb, H), jnp.float32),          # c carry
            ],
        ),
        compiler_params=pltpu.CompilerParams(
            dimension_semantics=("parallel",)),   # batch blocks are independent
    )(x, wx, wh, b)
    return out_seq, c_n


def init_lstm_params(key, input_size, hidden_size, num_layers):
    """Deterministic init matching the PyTorch module:
       - weights: Xavier uniform on the [4H, in+H] linear weight
       - bias: zeros, with the forget-gate chunk ([0:H]) set to 1.
    """
    params = []
    for layer in range(num_layers):
        in_size = input_size if layer == 0 else hidden_size
        fan_in = in_size + hidden_size
        fan_out = 4 * hidden_size
        bound = math.sqrt(6.0 / (fan_in + fan_out))
        key, sub = jax.random.split(key)
        # stored transposed relative to torch: [in+H, 4H]
        w = jax.random.uniform(sub, (fan_in, fan_out), jnp.float32,
                               minval=-bound, maxval=bound)
        wx = w[:in_size]
        wh = w[in_size:]
        b = jnp.zeros((4 * hidden_size,), jnp.float32)
        b = b.at[0:hidden_size].set(1.0)
        params.append((wx, wh, b.reshape(1, 4 * hidden_size)))
    return params


@jax.jit
def lstm_forward(x, params):
    """x: [B, T, input_size] (batch_first=True), params: list of (wx, wh, b).
    Returns (outputs [B,T,H], (h_n, c_n) each [num_layers, B, H])."""
    h_list, c_list = [], []
    layer_in = x
    for (wx, wh, b) in params:
        out_seq, c_n = lstm_layer(layer_in, wx, wh, b)
        h_list.append(out_seq[:, -1, :])   # h_n is the last timestep's hidden
        c_list.append(c_n)
        layer_in = out_seq
        # TODO(synk): inter-layer dropout not implemented (dropout=0 default).
    return layer_in, (jnp.stack(h_list, 0), jnp.stack(c_list, 0))


def _reference_lstm(x, params):
    """Pure-JAX reference mirroring the PyTorch module exactly."""
    B, T, _ = x.shape
    H = params[0][1].shape[0]
    x_seq = jnp.transpose(x, (1, 0, 2))
    hs = [jnp.zeros((B, H), jnp.float32) for _ in params]
    cs = [jnp.zeros((B, H), jnp.float32) for _ in params]
    outs = []
    for t in range(T):
        layer_out = x_seq[t]
        for li, (wx, wh, b) in enumerate(params):
            gates = layer_out @ wx + hs[li] @ wh + b
            f = jax.nn.sigmoid(gates[:, 0:H])
            i = jax.nn.sigmoid(gates[:, H:2 * H])
            g = jnp.tanh(gates[:, 2 * H:3 * H])
            o = jax.nn.sigmoid(gates[:, 3 * H:4 * H])
            cs[li] = f * cs[li] + i * g
            hs[li] = o * jnp.tanh(cs[li])
            layer_out = hs[li]
        outs.append(layer_out)
    outputs = jnp.transpose(jnp.stack(outs, 0), (1, 0, 2))
    return outputs, (jnp.stack(hs, 0), jnp.stack(cs, 0))


if __name__ == "__main__":
    batch, seq_len, input_size, hidden_size, num_layers = 2, 8, 16, 32, 2

    key = jax.random.PRNGKey(0)
    key, xk, pk = jax.random.split(key, 3)
    x = jax.random.normal(xk, (batch, seq_len, input_size), jnp.float32)
    params = init_lstm_params(pk, input_size, hidden_size, num_layers)

    outputs, (h_n, c_n) = lstm_forward(x, params)
    jax.block_until_ready((outputs, h_n, c_n))

    ref_out, (ref_h, ref_c) = _reference_lstm(x, params)
    assert outputs.shape == (batch, seq_len, hidden_size)
    assert h_n.shape == (num_layers, batch, hidden_size)
    assert c_n.shape == (num_layers, batch, hidden_size)
    assert jnp.allclose(outputs, ref_out, atol=1e-5, rtol=1e-5)
    assert jnp.allclose(h_n, ref_h, atol=1e-5, rtol=1e-5)
    assert jnp.allclose(c_n, ref_c, atol=1e-5, rtol=1e-5)

    print("KERNEL_OK")
</pallas_src>

<mosaic_0001>
module attributes {stable_mosaic.version = 11 : i64} {
  func.func @kernel(%arg0: i32, %arg1: memref<2x8x32xf32, #tpu.memory_space<vmem>>, %arg2: memref<32x128xf32, #tpu.memory_space<vmem>>, %arg3: memref<32x128xf32, #tpu.memory_space<vmem>>, %arg4: memref<1x128xf32, #tpu.memory_space<vmem>>, %arg5: memref<2x8x32xf32, #tpu.memory_space<vmem>>, %arg6: memref<2x32xf32, #tpu.memory_space<vmem>>, %arg7: memref<8x2x128xf32, #tpu.memory_space<vmem>>, %arg8: memref<8x2x32xf32, #tpu.memory_space<vmem>>, %arg9: memref<2x32xf32, #tpu.memory_space<vmem>>, %arg10: memref<2x32xf32, #tpu.memory_space<vmem>>) attributes {dimension_semantics = [#tpu.dimension_semantics<parallel>], iteration_bounds = array<i64: 1>, scalar_prefetch = 0 : i64, scratch_operands = 4 : i64, tpu.core_type = #tpu.core_type<tc>, window_params = [{transform_indices = @transform_0, window_bounds = array<i64: 2, 8, 32>}, {pipeline_mode = #tpu.pipeline_mode<synchronous>, transform_indices = @transform_1, window_bounds = array<i64: 32, 128>}, {pipeline_mode = #tpu.pipeline_mode<synchronous>, transform_indices = @transform_2, window_bounds = array<i64: 32, 128>}, {pipeline_mode = #tpu.pipeline_mode<synchronous>, transform_indices = @transform_3, window_bounds = array<i64: 1, 128>}, {transform_indices = @transform_4, window_bounds = array<i64: 2, 8, 32>}, {transform_indices = @transform_5, window_bounds = array<i64: 2, 32>}]} {
    %c0 = arith.constant 0 : index
    %c0_0 = arith.constant 0 : index
    %c0_1 = arith.constant 0 : index
    %0 = vector.load %arg1[%c0, %c0_0, %c0_1] : memref<2x8x32xf32, #tpu.memory_space<vmem>>, vector<1x8x32xf32>
    %1 = vector.shape_cast %0 : vector<1x8x32xf32> to vector<8x32xf32>
    %c0_2 = arith.constant 0 : index
    %c0_3 = arith.constant 0 : index
    %2 = vector.load %arg2[%c0_2, %c0_3] : memref<32x128xf32, #tpu.memory_space<vmem>>, vector<32x128xf32>
    %cst = arith.constant dense<0.000000e+00> : vector<8x128xf32>
    %3 = tpu.matmul %1, %2, %cst {dimension_numbers = #tpu.dot_dimension_numbers<[1], [0], [0], [1], [0, 0, 1, 1], [], []>} : vector<8x32xf32>, vector<32x128xf32>, vector<8x128xf32> -> vector<8x128xf32>
    %c0_4 = arith.constant 0 : index
    %c0_5 = arith.constant 0 : index
    %4 = vector.load %arg4[%c0_4, %c0_5] : memref<1x128xf32, #tpu.memory_space<vmem>>, vector<1x128xf32>
    %5 = vector.broadcast %4 : vector<1x128xf32> to vector<8x128xf32>
    %6 = arith.addf %3, %5 : vector<8x128xf32>
    %c0_6 = arith.constant 0 : index
    %c0_7 = arith.constant 0 : index
    %c0_8 = arith.constant 0 : index
    %7 = vector.load %arg7[%c0_6, %c0_7, %c0_8] : memref<8x2x128xf32, #tpu.memory_space<vmem>>, vector<8x1x128xf32>
    %8 = vector.shape_cast %7 : vector<8x1x128xf32> to vector<8x128xf32>
    %9 = vector.shape_cast %6 : vector<8x128xf32> to vector<8x1x128xf32>
    tpu.vector_store %arg7[%c0_6, %c0_7, %c0_8], %9 {strides = array<i32>} : memref<8x2x128xf32, #tpu.memory_space<vmem>>, vector<8x1x128xf32>,
    %c1 = arith.constant 1 : index
    %c0_9 = arith.constant 0 : index
    %c0_10 = arith.constant 0 : index
    %10 = vector.load %arg1[%c1, %c0_9, %c0_10] : memref<2x8x32xf32, #tpu.memory_space<vmem>>, vector<1x8x32xf32>
    %11 = vector.shape_cast %10 : vector<1x8x32xf32> to vector<8x32xf32>
    %c0_11 = arith.constant 0 : index
    %c0_12 = arith.constant 0 : index
    %12 = vector.load %arg2[%c0_11, %c0_12] : memref<32x128xf32, #tpu.memory_space<vmem>>, vector<32x128xf32>
    %cst_13 = arith.constant dense<0.000000e+00> : vector<8x128xf32>
    %13 = tpu.matmul %11, %12, %cst_13 {dimension_numbers = #tpu.dot_dimension_numbers<[1], [0], [0], [1], [0, 0, 1, 1], [], []>} : vector<8x32xf32>, vector<32x128xf32>, vector<8x128xf32> -> vector<8x128xf32>
    %c0_14 = arith.constant 0 : index
    %c0_15 = arith.constant 0 : index
    %14 = vector.load %arg4[%c0_14, %c0_15] : memref<1x128xf32, #tpu.memory_space<vmem>>, vector<1x128xf32>
    %15 = vector.broadcast %14 : vector<1x128xf32> to vector<8x128xf32>
    %16 = arith.addf %13, %15 : vector<8x128xf32>
    %c0_16 = arith.constant 0 : index
    %c1_17 = arith.constant 1 : index
    %c0_18 = arith.constant 0 : index
    %17 = vector.load %arg7[%c0_16, %c1_17, %c0_18] : memref<8x2x128xf32, #tpu.memory_space<vmem>>, vector<8x1x128xf32>
    %18 = vector.shape_cast %17 : vector<8x1x128xf32> to vector<8x128xf32>
    %19 = vector.shape_cast %16 : vector<8x128xf32> to vector<8x1x128xf32>
    tpu.vector_store %arg7[%c0_16, %c1_17, %c0_18], %19 {strides = array<i32>} : memref<8x2x128xf32, #tpu.memory_space<vmem>>, vector<8x1x128xf32>,
    %cst_19 = arith.constant 0.000000e+00 : f32
    %20 = vector.broadcast %cst_19 : f32 to vector<2x32xf32>
    %c0_20 = arith.constant 0 : index
    %c0_21 = arith.constant 0 : index
    %21 = vector.load %arg9[%c0_20, %c0_21] : memref<2x32xf32, #tpu.memory_space<vmem>>, vector<2x32xf32>
    tpu.vector_store %arg9[%c0_20, %c0_21], %20 {strides = array<i32>} : memref<2x32xf32, #tpu.memory_space<vmem>>, vector<2x32xf32>,
    %cst_22 = arith.constant 0.000000e+00 : f32
    %22 = vector.broadcast %cst_22 : f32 to vector<2x32xf32>
    %c0_23 = arith.constant 0 : index
    %c0_24 = arith.constant 0 : index
    %23 = vector.load %arg10[%c0_23, %c0_24] : memref<2x32xf32, #tpu.memory_space<vmem>>, vector<2x32xf32>
    tpu.vector_store %arg10[%c0_23, %c0_24], %22 {strides = array<i32>} : memref<2x32xf32, #tpu.memory_space<vmem>>, vector<2x32xf32>,
    %c0_i32 = arith.constant 0 : i32
    %24 = arith.index_cast %c0_i32 : i32 to index
    %c0_25 = arith.constant 0 : index
    %c0_26 = arith.constant 0 : index
    %25 = vector.load %arg7[%24, %c0_25, %c0_26] : memref<8x2x128xf32, #tpu.memory_space<vmem>>, vector<1x2x128xf32>
    %26 = vector.shape_cast %25 : vector<1x2x128xf32> to vector<2x128xf32>
    %c0_27 = arith.constant 0 : index
    %c0_28 = arith.constant 0 : index
    %27 = vector.load %arg9[%c0_27, %c0_28] : memref<2x32xf32, #tpu.memory_space<vmem>>, vector<2x32xf32>
    %c0_29 = arith.constant 0 : index
    %c0_30 = arith.constant 0 : index
    %28 = vector.load %arg3[%c0_29, %c0_30] : memref<32x128xf32, #tpu.memory_space<vmem>>, vector<32x128xf32>
    %cst_31 = arith.constant dense<0.000000e+00> : vector<2x128xf32>
    %29 = tpu.matmul %27, %28, %cst_31 {dimension_numbers = #tpu.dot_dimension_numbers<[1], [0], [0], [1], [0, 0, 1, 1], [], []>} : vector<2x32xf32>, vector<32x128xf32>, vector<2x128xf32> -> vector<2x128xf32>
    %30 = arith.addf %26, %29 : vector<2x128xf32>
    %31 = vector.extract_strided_slice %30 {offsets = [0, 0], sizes = [2, 32], strides = [1, 1]} : vector<2x128xf32> to vector<2x32xf32>
    %32 = arith.negf %31 : vector<2x32xf32>
    %33 = math.exp %32 : vector<2x32xf32>
    %cst_32 = arith.constant 1.000000e+00 : f32
    %34 = vector.broadcast %cst_32 : f32 to vector<2x32xf32>
    %35 = arith.addf %34, %33 : vector<2x32xf32>
    %36 = arith.divf %34, %35 : vector<2x32xf32>
    %37 = vector.extract_strided_slice %30 {offsets = [0, 32], sizes = [2, 32], strides = [1, 1]} : vector<2x128xf32> to vector<2x32xf32>
    %38 = arith.negf %37 : vector<2x32xf32>
    %39 = math.exp %38 : vector<2x32xf32>
    %cst_33 = arith.constant 1.000000e+00 : f32
    %40 = vector.broadcast %cst_33 : f32 to vector<2x32xf32>
    %41 = arith.addf %40, %39 : vector<2x32xf32>
    %42 = arith.divf %40, %41 : vector<2x32xf32>
    %43 = vector.extract_strided_slice %30 {offsets = [0, 64], sizes = [2, 32], strides = [1, 1]} : vector<2x128xf32> to vector<2x32xf32>
    %44 = math.tanh %43 : vector<2x32xf32>
    %45 = vector.extract_strided_slice %30 {offsets = [0, 96], sizes = [2, 32], strides = [1, 1]} : vector<2x128xf32> to vector<2x32xf32>
    %46 = arith.negf %45 : vector<2x32xf32>
    %47 = math.exp %46 : vector<2x32xf32>
    %cst_34 = arith.constant 1.000000e+00 : f32
    %48 = vector.broadcast %cst_34 : f32 to vector<2x32xf32>
    %49 = arith.addf %48, %47 : vector<2x32xf32>
    %50 = arith.divf %48, %49 : vector<2x32xf32>
    %c0_35 = arith.constant 0 : index
    %c0_36 = arith.constant 0 : index
    %51 = vector.load %arg10[%c0_35, %c0_36] : memref<2x32xf32, #tpu.memory_space<vmem>>, vector<2x32xf32>
    %52 = arith.mulf %36, %51 : vector<2x32xf32>
    %53 = arith.mulf %42, %44 : vector<2x32xf32>
    %54 = arith.addf %52, %53 : vector<2x32xf32>
    %55 = math.tanh %54 : vector<2x32xf32>
    %56 = arith.mulf %50, %55 : vector<2x32xf32>
    %c0_37 = arith.constant 0 : index
    %c0_38 = arith.constant 0 : index
    %57 = vector.load %arg9[%c0_37, %c0_38] : memref<2x32xf32, #tpu.memory_space<vmem>>, vector<2x32xf32>
    tpu.vector_store %arg9[%c0_37, %c0_38], %56 {strides = array<i32>} : memref<2x32xf32, #tpu.memory_space<vmem>>, vector<2x32xf32>,
    %c0_39 = arith.constant 0 : index
    %c0_40 = arith.constant 0 : index
    %58 = vector.load %arg10[%c0_39, %c0_40] : memref<2x32xf32, #tpu.memory_space<vmem>>, vector<2x32xf32>
    tpu.vector_store %arg10[%c0_39, %c0_40], %54 {strides = array<i32>} : memref<2x32xf32, #tpu.memory_space<vmem>>, vector<2x32xf32>,
    %59 = arith.index_cast %c0_i32 : i32 to index
    %c0_41 = arith.constant 0 : index
    %c0_42 = arith.constant 0 : index
    %60 = vector.load %arg8[%59, %c0_41, %c0_42] : memref<8x2x32xf32, #tpu.memory_space<vmem>>, vector<1x2x32xf32>
    %61 = vector.shape_cast %60 : vector<1x2x32xf32> to vector<2x32xf32>
    %62 = vector.shape_cast %56 : vector<2x32xf32> to vector<1x2x32xf32>
    tpu.vector_store %arg8[%59, %c0_41, %c0_42], %62 {strides = array<i32>} : memref<8x2x32xf32, #tpu.memory_space<vmem>>, vector<1x2x32xf32>,
    %c1_i32 = arith.constant 1 : i32
    %63 = arith.index_cast %c1_i32 : i32 to index
    %c0_43 = arith.constant 0 : index
    %c0_44 = arith.constant 0 : index
    %64 = vector.load %arg7[%63, %c0_43, %c0_44] : memref<8x2x128xf32, #tpu.memory_space<vmem>>, vector<1x2x128xf32>
    %65 = vector.shape_cast %64 : vector<1x2x128xf32> to vector<2x128xf32>
    %c0_45 = arith.constant 0 : index
    %c0_46 = arith.constant 0 : index
    %66 = vector.load %arg9[%c0_45, %c0_46] : memref<2x32xf32, #tpu.memory_space<vmem>>, vector<2x32xf32>
    %c0_47 = arith.constant 0 : index
    %c0_48 = arith.constant 0 : index
    %67 = vector.load %arg3[%c0_47, %c0_48] : memref<32x128xf32, #tpu.memory_space<vmem>>, vector<32x128xf32>
    %cst_49 = arith.constant dense<0.000000e+00> : vector<2x128xf32>
    %68 = tpu.matmul %66, %67, %cst_49 {dimension_numbers = #tpu.dot_dimension_numbers<[1], [0], [0], [1], [0, 0, 1, 1], [], []>} : vector<2x32xf32>, vector<32x128xf32>, vector<2x128xf32> -> vector<2x128xf32>
    %69 = arith.addf %65, %68 : vector<2x128xf32>
    %70 = vector.extract_strided_slice %69 {offsets = [0, 0], sizes = [2, 32], strides = [1, 1]} : vector<2x128xf32> to vector<2x32xf32>
    %71 = arith.negf %70 : vector<2x32xf32>
    %72 = math.exp %71 : vector<2x32xf32>
    %cst_50 = arith.constant 1.000000e+00 : f32
    %73 = vector.broadcast %cst_50 : f32 to vector<2x32xf32>
    %74 = arith.addf %73, %72 : vector<2x32xf32>
    %75 = arith.divf %73, %74 : vector<2x32xf32>
    %76 = vector.extract_strided_slice %69 {offsets = [0, 32], sizes = [2, 32], strides = [1, 1]} : vector<2x128xf32> to vector<2x32xf32>
    %77 = arith.negf %76 : vector<2x32xf32>
    %78 = math.exp %77 : vector<2x32xf32>
    %cst_51 = arith.constant 1.000000e+00 : f32
    %79 = vector.broadcast %cst_51 : f32 to vector<2x32xf32>
    %80 = arith.addf %79, %78 : vector<2x32xf32>
    %81 = arith.divf %79, %80 : vector<2x32xf32>
    %82 = vector.extract_strided_slice %69 {offsets = [0, 64], sizes = [2, 32], strides = [1, 1]} : vector<2x128xf32> to vector<2x32xf32>
    %83 = math.tanh %82 : vector<2x32xf32>
    %84 = vector.extract_strided_slice %69 {offsets = [0, 96], sizes = [2, 32], strides = [1, 1]} : vector<2x128xf32> to vector<2x32xf32>
    %85 = arith.negf %84 : vector<2x32xf32>
    %86 = math.exp %85 : vector<2x32xf32>
    %cst_52 = arith.constant 1.000000e+00 : f32
    %87 = vector.broadcast %cst_52 : f32 to vector<2x32xf32>
    %88 = arith.addf %87, %86 : vector<2x32xf32>
    %89 = arith.divf %87, %88 : vector<2x32xf32>
    %c0_53 = arith.constant 0 : index
    %c0_54 = arith.constant 0 : index
    %90 = vector.load %arg10[%c0_53, %c0_54] : memref<2x32xf32, #tpu.memory_space<vmem>>, vector<2x32xf32>
    %91 = arith.mulf %75, %90 : vector<2x32xf32>
    %92 = arith.mulf %81, %83 : vector<2x32xf32>
    %93 = arith.addf %91, %92 : vector<2x32xf32>
    %94 = math.tanh %93 : vector<2x32xf32>
    %95 = arith.mulf %89, %94 : vector<2x32xf32>
    %c0_55 = arith.constant 0 : index
    %c0_56 = arith.constant 0 : index
    %96 = vector.load %arg9[%c0_55, %c0_56] : memref<2x32xf32, #tpu.memory_space<vmem>>, vector<2x32xf32>
    tpu.vector_store %arg9[%c0_55, %c0_56], %95 {strides = array<i32>} : memref<2x32xf32, #tpu.memory_space<vmem>>, vector<2x32xf32>,
    %c0_57 = arith.constant 0 : index
    %c0_58 = arith.constant 0 : index
    %97 = vector.load %arg10[%c0_57, %c0_58] : memref<2x32xf32, #tpu.memory_space<vmem>>, vector<2x32xf32>
    tpu.vector_store %arg10[%c0_57, %c0_58], %93 {strides = array<i32>} : memref<2x32xf32, #tpu.memory_space<vmem>>, vector<2x32xf32>,
    %98 = arith.index_cast %c1_i32 : i32 to index
    %c0_59 = arith.constant 0 : index
    %c0_60 = arith.constant 0 : index
    %99 = vector.load %arg8[%98, %c0_59, %c0_60] : memref<8x2x32xf32, #tpu.memory_space<vmem>>, vector<1x2x32xf32>
    %100 = vector.shape_cast %99 : vector<1x2x32xf32> to vector<2x32xf32>
    %101 = vector.shape_cast %95 : vector<2x32xf32> to vector<1x2x32xf32>
    tpu.vector_store %arg8[%98, %c0_59, %c0_60], %101 {strides = array<i32>} : memref<8x2x32xf32, #tpu.memory_space<vmem>>, vector<1x2x32xf32>,
    %c2_i32 = arith.constant 2 : i32
    %102 = arith.index_cast %c2_i32 : i32 to index
    %c0_61 = arith.constant 0 : index
    %c0_62 = arith.constant 0 : index
    %103 = vector.load %arg7[%102, %c0_61, %c0_62] : memref<8x2x128xf32, #tpu.memory_space<vmem>>, vector<1x2x128xf32>
    %104 = vector.shape_cast %103 : vector<1x2x128xf32> to vector<2x128xf32>
    %c0_63 = arith.constant 0 : index
    %c0_64 = arith.constant 0 : index
    %105 = vector.load %arg9[%c0_63, %c0_64] : memref<2x32xf32, #tpu.memory_space<vmem>>, vector<2x32xf32>
    %c0_65 = arith.constant 0 : index
    %c0_66 = arith.constant 0 : index
    %106 = vector.load %arg3[%c0_65, %c0_66] : memref<32x128xf32, #tpu.memory_space<vmem>>, vector<32x128xf32>
    %cst_67 = arith.constant dense<0.000000e+00> : vector<2x128xf32>
    %107 = tpu.matmul %105, %106, %cst_67 {dimension_numbers = #tpu.dot_dimension_numbers<[1], [0], [0], [1], [0, 0, 1, 1], [], []>} : vector<2x32xf32>, vector<32x128xf32>, vector<2x128xf32> -> vector<2x128xf32>
    %108 = arith.addf %104, %107 : vector<2x128xf32>
    %109 = vector.extract_strided_slice %108 {offsets = [0, 0], sizes = [2, 32], strides = [1, 1]} : vector<2x128xf32> to vector<2x32xf32>
    %110 = arith.negf %109 : vector<2x32xf32>
    %111 = math.exp %110 : vector<2x32xf32>
    %cst_68 = arith.constant 1.000000e+00 : f32
    %112 = vector.broadcast %cst_68 : f32 to vector<2x32xf32>
    %113 = arith.addf %112, %111 : vector<2x32xf32>
    %114 = arith.divf %112, %113 : vector<2x32xf32>
    %115 = vector.extract_strided_slice %108 {offsets = [0, 32], sizes = [2, 32], strides = [1, 1]} : vector<2x128xf32> to vector<2x32xf32>
    %116 = arith.negf %115 : vector<2x32xf32>
    %117 = math.exp %116 : vector<2x32xf32>
    %cst_69 = arith.constant 1.000000e+00 : f32
    %118 = vector.broadcast %cst_69 : f32 to vector<2x32xf32>
    %119 = arith.addf %118, %117 : vector<2x32xf32>
    %120 = arith.divf %118, %119 : vector<2x32xf32>
    %121 = vector.extract_strided_slice %108 {offsets = [0, 64], sizes = [2, 32], strides = [1, 1]} : vector<2x128xf32> to vector<2x32xf32>
    %122 = math.tanh %121 : vector<2x32xf32>
    %123 = vector.extract_strided_slice %108 {offsets = [0, 96], sizes = [2, 32], strides = [1, 1]} : vector<2x128xf32> to vector<2x32xf32>
    %124 = arith.negf %123 : vector<2x32xf32>
    %125 = math.exp %124 : vector<2x32xf32>
    %cst_70 = arith.constant 1.000000e+00 : f32
    %126 = vector.broadcast %cst_70 : f32 to vector<2x32xf32>
    %127 = arith.addf %126, %125 : vector<2x32xf32>
    %128 = arith.divf %126, %127 : vector<2x32xf32>
    %c0_71 = arith.constant 0 : index
    %c0_72 = arith.constant 0 : index
    %129 = vector.load %arg10[%c0_71, %c0_72] : memref<2x32xf32, #tpu.memory_space<vmem>>, vector<2x32xf32>
    %130 = arith.mulf %114, %129 : vector<2x32xf32>
    %131 = arith.mulf %120, %122 : vector<2x32xf32>
    %132 = arith.addf %130, %131 : vector<2x32xf32>
    %133 = math.tanh %132 : vector<2x32xf32>
    %134 = arith.mulf %128, %133 : vector<2x32xf32>
    %c0_73 = arith.constant 0 : index
    %c0_74 = arith.constant 0 : index
    %135 = vector.load %arg9[%c0_73, %c0_74] : memref<2x32xf32, #tpu.memory_space<vmem>>, vector<2x32xf32>
    tpu.vector_store %arg9[%c0_73, %c0_74], %134 {strides = array<i32>} : memref<2x32xf32, #tpu.memory_space<vmem>>, vector<2x32xf32>,
    %c0_75 = arith.constant 0 : index
    %c0_76 = arith.constant 0 : index
    %136 = vector.load %arg10[%c0_75, %c0_76] : memref<2x32xf32, #tpu.memory_space<vmem>>, vector<2x32xf32>
    tpu.vector_store %arg10[%c0_75, %c0_76], %132 {strides = array<i32>} : memref<2x32xf32, #tpu.memory_space<vmem>>, vector<2x32xf32>,
    %137 = arith.index_cast %c2_i32 : i32 to index
    %c0_77 = arith.constant 0 : index
    %c0_78 = arith.constant 0 : index
    %138 = vector.load %arg8[%137, %c0_77, %c0_78] : memref<8x2x32xf32, #tpu.memory_space<vmem>>, vector<1x2x32xf32>
    %139 = vector.shape_cast %138 : vector<1x2x32xf32> to vector<2x32xf32>
    %140 = vector.shape_cast %134 : vector<2x32xf32> to vector<1x2x32xf32>
    tpu.vector_store %arg8[%137, %c0_77, %c0_78], %140 {strides = array<i32>} : memref<8x2x32xf32, #tpu.memory_space<vmem>>, vector<1x2x32xf32>,
    %c3_i32 = arith.constant 3 : i32
    %141 = arith.index_cast %c3_i32 : i32 to index
    %c0_79 = arith.constant 0 : index
    %c0_80 = arith.constant 0 : index
    %142 = vector.load %arg7[%141, %c0_79, %c0_80] : memref<8x2x128xf32, #tpu.memory_space<vmem>>, vector<1x2x128xf32>
    %143 = vector.shape_cast %142 : vector<1x2x128xf32> to vector<2x128xf32>
    %c0_81 = arith.constant 0 : index
    %c0_82 = arith.constant 0 : index
    %144 = vector.load %arg9[%c0_81, %c0_82] : memref<2x32xf32, #tpu.memory_space<vmem>>, vector<2x32xf32>
    %c0_83 = arith.constant 0 : index
    %c0_84 = arith.constant 0 : index
    %145 = vector.load %arg3[%c0_83, %c0_84] : memref<32x128xf32, #tpu.memory_space<vmem>>, vector<32x128xf32>
    %cst_85 = arith.constant dense<0.000000e+00> : vector<2x128xf32>
    %146 = tpu.matmul %144, %145, %cst_85 {dimension_numbers = #tpu.dot_dimension_numbers<[1], [0], [0], [1], [0, 0, 1, 1], [], []>} : vector<2x32xf32>, vector<32x128xf32>, vector<2x128xf32> -> vector<2x128xf32>
    %147 = arith.addf %143, %146 : vector<2x128xf32>
    %148 = vector.extract_strided_slice %147 {offsets = [0, 0], sizes = [2, 32], strides = [1, 1]} : vector<2x128xf32> to vector<2x32xf32>
    %149 = arith.negf %148 : vector<2x32xf32>
    %150 = math.exp %149 : vector<2x32xf32>
    %cst_86 = arith.constant 1.000000e+00 : f32
    %151 = vector.broadcast %cst_86 : f32 to vector<2x32xf32>
    %152 = arith.addf %151, %150 : vector<2x32xf32>
    %153 = arith.divf %151, %152 : vector<2x32xf32>
    %154 = vector.extract_strided_slice %147 {offsets = [0, 32], sizes = [2, 32], strides = [1, 1]} : vector<2x128xf32> to vector<2x32xf32>
    %155 = arith.negf %154 : vector<2x32xf32>
    %156 = math.exp %155 : vector<2x32xf32>
    %cst_87 = arith.constant 1.000000e+00 : f32
    %157 = vector.broadcast %cst_87 : f32 to vector<2x32xf32>
    %158 = arith.addf %157, %156 : vector<2x32xf32>
    %159 = arith.divf %157, %158 : vector<2x32xf32>
    %160 = vector.extract_strided_slice %147 {offsets = [0, 64], sizes = [2, 32], strides = [1, 1]} : vector<2x128xf32> to vector<2x32xf32>
    %161 = math.tanh %160 : vector<2x32xf32>
    %162 = vector.extract_strided_slice %147 {offsets = [0, 96], sizes = [2, 32], strides = [1, 1]} : vector<2x128xf32> to vector<2x32xf32>
    %163 = arith.negf %162 : vector<2x32xf32>
    %164 = math.exp %163 : vector<2x32xf32>
    %cst_88 = arith.constant 1.000000e+00 : f32
    %165 = vector.broadcast %cst_88 : f32 to vector<2x32xf32>
    %166 = arith.addf %165, %164 : vector<2x32xf32>
    %167 = arith.divf %165, %166 : vector<2x32xf32>
    %c0_89 = arith.constant 0 : index
    %c0_90 = arith.constant 0 : index
    %168 = vector.load %arg10[%c0_89, %c0_90] : memref<2x32xf32, #tpu.memory_space<vmem>>, vector<2x32xf32>
    %169 = arith.mulf %153, %168 : vector<2x32xf32>
    %170 = arith.mulf %159, %161 : vector<2x32xf32>
    %171 = arith.addf %169, %170 : vector<2x32xf32>
    %172 = math.tanh %171 : vector<2x32xf32>
    %173 = arith.mulf %167, %172 : vector<2x32xf32>
    %c0_91 = arith.constant 0 : index
    %c0_92 = arith.constant 0 : index
    %174 = vector.load %arg9[%c0_91, %c0_92] : memref<2x32xf32, #tpu.memory_space<vmem>>, vector<2x32xf32>
    tpu.vector_store %arg9[%c0_91, %c0_92], %173 {strides = array<i32>} : memref<2x32xf32, #tpu.memory_space<vmem>>, vector<2x32xf32>,
    %c0_93 = arith.constant 0 : index
    %c0_94 = arith.constant 0 : index
    %175 = vector.load %arg10[%c0_93, %c0_94] : memref<2x32xf32, #tpu.memory_space<vmem>>, vector<2x32xf32>
    tpu.vector_store %arg10[%c0_93, %c0_94], %171 {strides = array<i32>} : memref<2x32xf32, #tpu.memory_space<vmem>>, vector<2x32xf32>,
    %176 = arith.index_cast %c3_i32 : i32 to index
    %c0_95 = arith.constant 0 : index
    %c0_96 = arith.constant 0 : index
    %177 = vector.load %arg8[%176, %c0_95, %c0_96] : memref<8x2x32xf32, #tpu.memory_space<vmem>>, vector<1x2x32xf32>
    %178 = vector.shape_cast %177 : vector<1x2x32xf32> to vector<2x32xf32>
    %179 = vector.shape_cast %173 : vector<2x32xf32> to vector<1x2x32xf32>
    tpu.vector_store %arg8[%176, %c0_95, %c0_96], %179 {strides = array<i32>} : memref<8x2x32xf32, #tpu.memory_space<vmem>>, vector<1x2x32xf32>,
    %c4_i32 = arith.constant 4 : i32
    %180 = arith.index_cast %c4_i32 : i32 to index
    %c0_97 = arith.constant 0 : index
    %c0_98 = arith.constant 0 : index
    %181 = vector.load %arg7[%180, %c0_97, %c0_98] : memref<8x2x128xf32, #tpu.memory_space<vmem>>, vector<1x2x128xf32>
    %182 = vector.shape_cast %181 : vector<1x2x128xf32> to vector<2x128xf32>
    %c0_99 = arith.constant 0 : index
    %c0_100 = arith.constant 0 : index
    %183 = vector.load %arg9[%c0_99, %c0_100] : memref<2x32xf32, #tpu.memory_space<vmem>>, vector<2x32xf32>
    %c0_101 = arith.constant 0 : index
    %c0_102 = arith.constant 0 : index
    %184 = vector.load %arg3[%c0_101, %c0_102] : memref<32x128xf32, #tpu.memory_space<vmem>>, vector<32x128xf32>
    %cst_103 = arith.constant dense<0.000000e+00> : vector<2x128xf32>
    %185 = tpu.matmul %183, %184, %cst_103 {dimension_numbers = #tpu.dot_dimension_numbers<[1], [0], [0], [1], [0, 0, 1, 1], [], []>} : vector<2x32xf32>, vector<32x128xf32>, vector<2x128xf32> -> vector<2x128xf32>
    %186 = arith.addf %182, %185 : vector<2x128xf32>
    %187 = vector.extract_strided_slice %186 {offsets = [0, 0], sizes = [2, 32], strides = [1, 1]} : vector<2x128xf32> to vector<2x32xf32>
    %188 = arith.negf %187 : vector<2x32xf32>
    %189 = math.exp %188 : vector<2x32xf32>
    %cst_104 = arith.constant 1.000000e+00 : f32
    %190 = vector.broadcast %cst_104 : f32 to vector<2x32xf32>
    %191 = arith.addf %190, %189 : vector<2x32xf32>
    %192 = arith.divf %190, %191 : vector<2x32xf32>
    %193 = vector.extract_strided_slice %186 {offsets = [0, 32], sizes = [2, 32], strides = [1, 1]} : vector<2x128xf32> to vector<2x32xf32>
    %194 = arith.negf %193 : vector<2x32xf32>
    %195 = math.exp %194 : vector<2x32xf32>
    %cst_105 = arith.constant 1.000000e+00 : f32
    %196 = vector.broadcast %cst_105 : f32 to vector<2x32xf32>
    %197 = arith.addf %196, %195 : vector<2x32xf32>
    %198 = arith.divf %196, %197 : vector<2x32xf32>
    %199 = vector.extract_strided_slice %186 {offsets = [0, 64], sizes = [2, 32], strides = [1, 1]} : vector<2x128xf32> to vector<2x32xf32>
    %200 = math.tanh %199 : vector<2x32xf32>
    %201 = vector.extract_strided_slice %186 {offsets = [0, 96], sizes = [2, 32], strides = [1, 1]} : vector<2x128xf32> to vector<2x32xf32>
    %202 = arith.negf %201 : vector<2x32xf32>
    %203 = math.exp %202 : vector<2x32xf32>
    %cst_106 = arith.constant 1.000000e+00 : f32
    %204 = vector.broadcast %cst_106 : f32 to vector<2x32xf32>
    %205 = arith.addf %204, %203 : vector<2x32xf32>
    %206 = arith.divf %204, %205 : vector<2x32xf32>
    %c0_107 = arith.constant 0 : index
    %c0_108 = arith.constant 0 : index
    %207 = vector.load %arg10[%c0_107, %c0_108] : memref<2x32xf32, #tpu.memory_space<vmem>>, vector<2x32xf32>
    %208 = arith.mulf %192, %207 : vector<2x32xf32>
    %209 = arith.mulf %198, %200 : vector<2x32xf32>
    %210 = arith.addf %208, %209 : vector<2x32xf32>
    %211 = math.tanh %210 : vector<2x32xf32>
    %212 = arith.mulf %206, %211 : vector<2x32xf32>
    %c0_109 = arith.constant 0 : index
    %c0_110 = arith.constant 0 : index
    %213 = vector.load %arg9[%c0_109, %c0_110] : memref<2x32xf32, #tpu.memory_space<vmem>>, vector<2x32xf32>
    tpu.vector_store %arg9[%c0_109, %c0_110], %212 {strides = array<i32>} : memref<2x32xf32, #tpu.memory_space<vmem>>, vector<2x32xf32>,
    %c0_111 = arith.constant 0 : index
    %c0_112 = arith.constant 0 : index
    %214 = vector.load %arg10[%c0_111, %c0_112] : memref<2x32xf32, #tpu.memory_space<vmem>>, vector<2x32xf32>
    tpu.vector_store %arg10[%c0_111, %c0_112], %210 {strides = array<i32>} : memref<2x32xf32, #tpu.memory_space<vmem>>, vector<2x32xf32>,
    %215 = arith.index_cast %c4_i32 : i32 to index
    %c0_113 = arith.constant 0 : index
    %c0_114 = arith.constant 0 : index
    %216 = vector.load %arg8[%215, %c0_113, %c0_114] : memref<8x2x32xf32, #tpu.memory_space<vmem>>, vector<1x2x32xf32>
    %217 = vector.shape_cast %216 : vector<1x2x32xf32> to vector<2x32xf32>
    %218 = vector.shape_cast %212 : vector<2x32xf32> to vector<1x2x32xf32>
    tpu.vector_store %arg8[%215, %c0_113, %c0_114], %218 {strides = array<i32>} : memref<8x2x32xf32, #tpu.memory_space<vmem>>, vector<1x2x32xf32>,
    %c5_i32 = arith.constant 5 : i32
    %219 = arith.index_cast %c5_i32 : i32 to index
    %c0_115 = arith.constant 0 : index
    %c0_116 = arith.constant 0 : index
    %220 = vector.load %arg7[%219, %c0_115, %c0_116] : memref<8x2x128xf32, #tpu.memory_space<vmem>>, vector<1x2x128xf32>
    %221 = vector.shape_cast %220 : vector<1x2x128xf32> to vector<2x128xf32>
    %c0_117 = arith.constant 0 : index
    %c0_118 = arith.constant 0 : index
    %222 = vector.load %arg9[%c0_117, %c0_118] : memref<2x32xf32, #tpu.memory_space<vmem>>, vector<2x32xf32>
    %c0_119 = arith.constant 0 : index
    %c0_120 = arith.constant 0 : index
    %223 = vector.load %arg3[%c0_119, %c0_120] : memref<32x128xf32, #tpu.memory_space<vmem>>, vector<32x128xf32>
    %cst_121 = arith.constant dense<0.000000e+00> : vector<2x128xf32>
    %224 = tpu.matmul %222, %223, %cst_121 {dimension_numbers = #tpu.dot_dimension_numbers<[1], [0], [0], [1], [0, 0, 1, 1], [], []>} : vector<2x32xf32>, vector<32x128xf32>, vector<2x128xf32> -> vector<2x128xf32>
    %225 = arith.addf %221, %224 : vector<2x128xf32>
    %226 = vector.extract_strided_slice %225 {offsets = [0, 0], sizes = [2, 32], strides = [1, 1]} : vector<2x128xf32> to vector<2x32xf32>
    %227 = arith.negf %226 : vector<2x32xf32>
    %228 = math.exp %227 : vector<2x32xf32>
    %cst_122 = arith.constant 1.000000e+00 : f32
    %229 = vector.broadcast %cst_122 : f32 to vector<2x32xf32>
    %230 = arith.addf %229, %228 : vector<2x32xf32>
    %231 = arith.divf %229, %230 : vector<2x32xf32>
    %232 = vector.extract_strided_slice %225 {offsets = [0, 32], sizes = [2, 32], strides = [1, 1]} : vector<2x128xf32> to vector<2x32xf32>
    %233 = arith.negf %232 : vector<2x32xf32>
    %234 = math.exp %233 : vector<2x32xf32>
    %cst_123 = arith.constant 1.000000e+00 : f32
    %235 = vector.broadcast %cst_123 : f32 to vector<2x32xf32>
    %236 = arith.addf %235, %234 : vector<2x32xf32>
    %237 = arith.divf %235, %236 : vector<2x32xf32>
    %238 = vector.extract_strided_slice %225 {offsets = [0, 64], sizes = [2, 32], strides = [1, 1]} : vector<2x128xf32> to vector<2x32xf32>
    %239 = math.tanh %238 : vector<2x32xf32>
    %240 = vector.extract_strided_slice %225 {offsets = [0, 96], sizes = [2, 32], strides = [1, 1]} : vector<2x128xf32> to vector<2x32xf32>
    %241 = arith.negf %240 : vector<2x32xf32>
    %242 = math.exp %241 : vector<2x32xf32>
    %cst_124 = arith.constant 1.000000e+00 : f32
    %243 = vector.broadcast %cst_124 : f32 to vector<2x32xf32>
    %244 = arith.addf %243, %242 : vector<2x32xf32>
    %245 = arith.divf %243, %244 : vector<2x32xf32>
    %c0_125 = arith.constant 0 : index
    %c0_126 = arith.constant 0 : index
    %246 = vector.load %arg10[%c0_125, %c0_126] : memref<2x32xf32, #tpu.memory_space<vmem>>, vector<2x32xf32>
    %247 = arith.mulf %231, %246 : vector<2x32xf32>
    %248 = arith.mulf %237, %239 : vector<2x32xf32>
    %249 = arith.addf %247, %248 : vector<2x32xf32>
    %250 = math.tanh %249 : vector<2x32xf32>
    %251 = arith.mulf %245, %250 : vector<2x32xf32>
    %c0_127 = arith.constant 0 : index
    %c0_128 = arith.constant 0 : index
    %252 = vector.load %arg9[%c0_127, %c0_128] : memref<2x32xf32, #tpu.memory_space<vmem>>, vector<2x32xf32>
    tpu.vector_store %arg9[%c0_127, %c0_128], %251 {strides = array<i32>} : memref<2x32xf32, #tpu.memory_space<vmem>>, vector<2x32xf32>,
    %c0_129 = arith.constant 0 : index
    %c0_130 = arith.constant 0 : index
    %253 = vector.load %arg10[%c0_129, %c0_130] : memref<2x32xf32, #tpu.memory_space<vmem>>, vector<2x32xf32>
    tpu.vector_store %arg10[%c0_129, %c0_130], %249 {strides = array<i32>} : memref<2x32xf32, #tpu.memory_space<vmem>>, vector<2x32xf32>,
    %254 = arith.index_cast %c5_i32 : i32 to index
    %c0_131 = arith.constant 0 : index
    %c0_132 = arith.constant 0 : index
    %255 = vector.load %arg8[%254, %c0_131, %c0_132] : memref<8x2x32xf32, #tpu.memory_space<vmem>>, vector<1x2x32xf32>
    %256 = vector.shape_cast %255 : vector<1x2x32xf32> to vector<2x32xf32>
    %257 = vector.shape_cast %251 : vector<2x32xf32> to vector<1x2x32xf32>
    tpu.vector_store %arg8[%254, %c0_131, %c0_132], %257 {strides = array<i32>} : memref<8x2x32xf32, #tpu.memory_space<vmem>>, vector<1x2x32xf32>,
    %c6_i32 = arith.constant 6 : i32
    %258 = arith.index_cast %c6_i32 : i32 to index
    %c0_133 = arith.constant 0 : index
    %c0_134 = arith.constant 0 : index
    %259 = vector.load %arg7[%258, %c0_133, %c0_134] : memref<8x2x128xf32, #tpu.memory_space<vmem>>, vector<1x2x128xf32>
    %260 = vector.shape_cast %259 : vector<1x2x128xf32> to vector<2x128xf32>
    %c0_135 = arith.constant 0 : index
    %c0_136 = arith.constant 0 : index
    %261 = vector.load %arg9[%c0_135, %c0_136] : memref<2x32xf32, #tpu.memory_space<vmem>>, vector<2x32xf32>
    %c0_137 = arith.constant 0 : index
    %c0_138 = arith.constant 0 : index
    %262 = vector.load %arg3[%c0_137, %c0_138] : memref<32x128xf32, #tpu.memory_space<vmem>>, vector<32x128xf32>
    %cst_139 = arith.constant dense<0.000000e+00> : vector<2x128xf32>
    %263 = tpu.matmul %261, %262, %cst_139 {dimension_numbers = #tpu.dot_dimension_numbers<[1], [0], [0], [1], [0, 0, 1, 1], [], []>} : vector<2x32xf32>, vector<32x128xf32>, vector<2x128xf32> -> vector<2x128xf32>
    %264 = arith.addf %260, %263 : vector<2x128xf32>
    %265 = vector.extract_strided_slice %264 {offsets = [0, 0], sizes = [2, 32], strides = [1, 1]} : vector<2x128xf32> to vector<2x32xf32>
    %266 = arith.negf %265 : vector<2x32xf32>
    %267 = math.exp %266 : vector<2x32xf32>
    %cst_140 = arith.constant 1.000000e+00 : f32
    %268 = vector.broadcast %cst_140 : f32 to vector<2x32xf32>
    %269 = arith.addf %268, %267 : vector<2x32xf32>
    %270 = arith.divf %268, %269 : vector<2x32xf32>
    %271 = vector.extract_strided_slice %264 {offsets = [0, 32], sizes = [2, 32], strides = [1, 1]} : vector<2x128xf32> to vector<2x32xf32>
    %272 = arith.negf %271 : vector<2x32xf32>
    %273 = math.exp %272 : vector<2x32xf32>
    %cst_141 = arith.constant 1.000000e+00 : f32
    %274 = vector.broadcast %cst_141 : f32 to vector<2x32xf32>
    %275 = arith.addf %274, %273 : vector<2x32xf32>
    %276 = arith.divf %274, %275 : vector<2x32xf32>
    %277 = vector.extract_strided_slice %264 {offsets = [0, 64], sizes = [2, 32], strides = [1, 1]} : vector<2x128xf32> to vector<2x32xf32>
    %278 = math.tanh %277 : vector<2x32xf32>
    %279 = vector.extract_strided_slice %264 {offsets = [0, 96], sizes = [2, 32], strides = [1, 1]} : vector<2x128xf32> to vector<2x32xf32>
    %280 = arith.negf %279 : vector<2x32xf32>
    %281 = math.exp %280 : vector<2x32xf32>
    %cst_142 = arith.constant 1.000000e+00 : f32
    %282 = vector.broadcast %cst_142 : f32 to vector<2x32xf32>
    %283 = arith.addf %282, %281 : vector<2x32xf32>
    %284 = arith.divf %282, %283 : vector<2x32xf32>
    %c0_143 = arith.constant 0 : index
    %c0_144 = arith.constant 0 : index
    %285 = vector.load %arg10[%c0_143, %c0_144] : memref<2x32xf32, #tpu.memory_space<vmem>>, vector<2x32xf32>
    %286 = arith.mulf %270, %285 : vector<2x32xf32>
    %287 = arith.mulf %276, %278 : vector<2x32xf32>
    %288 = arith.addf %286, %287 : vector<2x32xf32>
    %289 = math.tanh %288 : vector<2x32xf32>
    %290 = arith.mulf %284, %289 : vector<2x32xf32>
    %c0_145 = arith.constant 0 : index
    %c0_146 = arith.constant 0 : index
    %291 = vector.load %arg9[%c0_145, %c0_146] : memref<2x32xf32, #tpu.memory_space<vmem>>, vector<2x32xf32>
    tpu.vector_store %arg9[%c0_145, %c0_146], %290 {strides = array<i32>} : memref<2x32xf32, #tpu.memory_space<vmem>>, vector<2x32xf32>,
    %c0_147 = arith.constant 0 : index
    %c0_148 = arith.constant 0 : index
    %292 = vector.load %arg10[%c0_147, %c0_148] : memref<2x32xf32, #tpu.memory_space<vmem>>, vector<2x32xf32>
    tpu.vector_store %arg10[%c0_147, %c0_148], %288 {strides = array<i32>} : memref<2x32xf32, #tpu.memory_space<vmem>>, vector<2x32xf32>,
    %293 = arith.index_cast %c6_i32 : i32 to index
    %c0_149 = arith.constant 0 : index
    %c0_150 = arith.constant 0 : index
    %294 = vector.load %arg8[%293, %c0_149, %c0_150] : memref<8x2x32xf32, #tpu.memory_space<vmem>>, vector<1x2x32xf32>
    %295 = vector.shape_cast %294 : vector<1x2x32xf32> to vector<2x32xf32>
    %296 = vector.shape_cast %290 : vector<2x32xf32> to vector<1x2x32xf32>
    tpu.vector_store %arg8[%293, %c0_149, %c0_150], %296 {strides = array<i32>} : memref<8x2x32xf32, #tpu.memory_space<vmem>>, vector<1x2x32xf32>,
    %c7_i32 = arith.constant 7 : i32
    %297 = arith.index_cast %c7_i32 : i32 to index
    %c0_151 = arith.constant 0 : index
    %c0_152 = arith.constant 0 : index
    %298 = vector.load %arg7[%297, %c0_151, %c0_152] : memref<8x2x128xf32, #tpu.memory_space<vmem>>, vector<1x2x128xf32>
    %299 = vector.shape_cast %298 : vector<1x2x128xf32> to vector<2x128xf32>
    %c0_153 = arith.constant 0 : index
    %c0_154 = arith.constant 0 : index
    %300 = vector.load %arg9[%c0_153, %c0_154] : memref<2x32xf32, #tpu.memory_space<vmem>>, vector<2x32xf32>
    %c0_155 = arith.constant 0 : index
    %c0_156 = arith.constant 0 : index
    %301 = vector.load %arg3[%c0_155, %c0_156] : memref<32x128xf32, #tpu.memory_space<vmem>>, vector<32x128xf32>
    %cst_157 = arith.constant dense<0.000000e+00> : vector<2x128xf32>
    %302 = tpu.matmul %300, %301, %cst_157 {dimension_numbers = #tpu.dot_dimension_numbers<[1], [0], [0], [1], [0, 0, 1, 1], [], []>} : vector<2x32xf32>, vector<32x128xf32>, vector<2x128xf32> -> vector<2x128xf32>
    %303 = arith.addf %299, %302 : vector<2x128xf32>
    %304 = vector.extract_strided_slice %303 {offsets = [0, 0], sizes = [2, 32], strides = [1, 1]} : vector<2x128xf32> to vector<2x32xf32>
    %305 = arith.negf %304 : vector<2x32xf32>
    %306 = math.exp %305 : vector<2x32xf32>
    %cst_158 = arith.constant 1.000000e+00 : f32
    %307 = vector.broadcast %cst_158 : f32 to vector<2x32xf32>
    %308 = arith.addf %307, %306 : vector<2x32xf32>
    %309 = arith.divf %307, %308 : vector<2x32xf32>
    %310 = vector.extract_strided_slice %303 {offsets = [0, 32], sizes = [2, 32], strides = [1, 1]} : vector<2x128xf32> to vector<2x32xf32>
    %311 = arith.negf %310 : vector<2x32xf32>
    %312 = math.exp %311 : vector<2x32xf32>
    %cst_159 = arith.constant 1.000000e+00 : f32
    %313 = vector.broadcast %cst_159 : f32 to vector<2x32xf32>
    %314 = arith.addf %313, %312 : vector<2x32xf32>
    %315 = arith.divf %313, %314 : vector<2x32xf32>
    %316 = vector.extract_strided_slice %303 {offsets = [0, 64], sizes = [2, 32], strides = [1, 1]} : vector<2x128xf32> to vector<2x32xf32>
    %317 = math.tanh %316 : vector<2x32xf32>
    %318 = vector.extract_strided_slice %303 {offsets = [0, 96], sizes = [2, 32], strides = [1, 1]} : vector<2x128xf32> to vector<2x32xf32>
    %319 = arith.negf %318 : vector<2x32xf32>
    %320 = math.exp %319 : vector<2x32xf32>
    %cst_160 = arith.constant 1.000000e+00 : f32
    %321 = vector.broadcast %cst_160 : f32 to vector<2x32xf32>
    %322 = arith.addf %321, %320 : vector<2x32xf32>
    %323 = arith.divf %321, %322 : vector<2x32xf32>
    %c0_161 = arith.constant 0 : index
    %c0_162 = arith.constant 0 : index
    %324 = vector.load %arg10[%c0_161, %c0_162] : memref<2x32xf32, #tpu.memory_space<vmem>>, vector<2x32xf32>
    %325 = arith.mulf %309, %324 : vector<2x32xf32>
    %326 = arith.mulf %315, %317 : vector<2x32xf32>
    %327 = arith.addf %325, %326 : vector<2x32xf32>
    %328 = math.tanh %327 : vector<2x32xf32>
    %329 = arith.mulf %323, %328 : vector<2x32xf32>
    %c0_163 = arith.constant 0 : index
    %c0_164 = arith.constant 0 : index
    %330 = vector.load %arg9[%c0_163, %c0_164] : memref<2x32xf32, #tpu.memory_space<vmem>>, vector<2x32xf32>
    tpu.vector_store %arg9[%c0_163, %c0_164], %329 {strides = array<i32>} : memref<2x32xf32, #tpu.memory_space<vmem>>, vector<2x32xf32>,
    %c0_165 = arith.constant 0 : index
    %c0_166 = arith.constant 0 : index
    %331 = vector.load %arg10[%c0_165, %c0_166] : memref<2x32xf32, #tpu.memory_space<vmem>>, vector<2x32xf32>
    tpu.vector_store %arg10[%c0_165, %c0_166], %327 {strides = array<i32>} : memref<2x32xf32, #tpu.memory_space<vmem>>, vector<2x32xf32>,
    %332 = arith.index_cast %c7_i32 : i32 to index
    %c0_167 = arith.constant 0 : index
    %c0_168 = arith.constant 0 : index
    %333 = vector.load %arg8[%332, %c0_167, %c0_168] : memref<8x2x32xf32, #tpu.memory_space<vmem>>, vector<1x2x32xf32>
    %334 = vector.shape_cast %333 : vector<1x2x32xf32> to vector<2x32xf32>
    %335 = vector.shape_cast %329 : vector<2x32xf32> to vector<1x2x32xf32>
    tpu.vector_store %arg8[%332, %c0_167, %c0_168], %335 {strides = array<i32>} : memref<8x2x32xf32, #tpu.memory_space<vmem>>, vector<1x2x32xf32>,
    %c8_i32 = arith.constant 8 : i32
    %c0_169 = arith.constant 0 : index
    %c0_170 = arith.constant 0 : index
    %c0_171 = arith.constant 0 : index
    %336 = vector.load %arg8[%c0_169, %c0_170, %c0_171] : memref<8x2x32xf32, #tpu.memory_space<vmem>>, vector<8x1x32xf32>
    %337 = vector.shape_cast %336 : vector<8x1x32xf32> to vector<8x32xf32>
    %c0_172 = arith.constant 0 : index
    %c0_173 = arith.constant 0 : index
    %c0_174 = arith.constant 0 : index
    %338 = vector.load %arg5[%c0_172, %c0_173, %c0_174] : memref<2x8x32xf32, #tpu.memory_space<vmem>>, vector<1x8x32xf32>
    %339 = vector.shape_cast %338 : vector<1x8x32xf32> to vector<8x32xf32>
    %340 = vector.shape_cast %337 : vector<8x32xf32> to vector<1x8x32xf32>
    tpu.vector_store %arg5[%c0_172, %c0_173, %c0_174], %340 {strides = array<i32>} : memref<2x8x32xf32, #tpu.memory_space<vmem>>, vector<1x8x32xf32>,
    %c0_175 = arith.constant 0 : index
    %c1_176 = arith.constant 1 : index
    %c0_177 = arith.constant 0 : index
    %341 = vector.load %arg8[%c0_175, %c1_176, %c0_177] : memref<8x2x32xf32, #tpu.memory_space<vmem>>, vector<8x1x32xf32>
    %342 = vector.shape_cast %341 : vector<8x1x32xf32> to vector<8x32xf32>
    %c1_178 = arith.constant 1 : index
    %c0_179 = arith.constant 0 : index
    %c0_180 = arith.constant 0 : index
    %343 = vector.load %arg5[%c1_178, %c0_179, %c0_180] : memref<2x8x32xf32, #tpu.memory_space<vmem>>, vector<1x8x32xf32>
    %344 = vector.shape_cast %343 : vector<1x8x32xf32> to vector<8x32xf32>
    %345 = vector.shape_cast %342 : vector<8x32xf32> to vector<1x8x32xf32>
    tpu.vector_store %arg5[%c1_178, %c0_179, %c0_180], %345 {strides = array<i32>} : memref<2x8x32xf32, #tpu.memory_space<vmem>>, vector<1x8x32xf32>,
    %c0_181 = arith.constant 0 : index
    %c0_182 = arith.constant 0 : index
    %346 = vector.load %arg10[%c0_181, %c0_182] : memref<2x32xf32, #tpu.memory_space<vmem>>, vector<2x32xf32>
    %c0_183 = arith.constant 0 : index
    %c0_184 = arith.constant 0 : index
    %347 = vector.load %arg6[%c0_183, %c0_184] : memref<2x32xf32, #tpu.memory_space<vmem>>, vector<2x32xf32>
    tpu.vector_store %arg6[%c0_183, %c0_184], %346 {strides = array<i32>} : memref<2x32xf32, #tpu.memory_space<vmem>>, vector<2x32xf32>,
    return
  }
  func.func @transform_0(%arg0: i32) -> (i32, i32, i32) {
    %c0_i32 = arith.constant 0 : i32
    %c0_i32_0 = arith.constant 0 : i32
    %c0_i32_1 = arith.constant 0 : i32
    return %arg0, %c0_i32, %c0_i32_0 : i32, i32, i32
  }
  func.func @transform_1(%arg0: i32) -> (i32, i32) {
    %c0_i32 = arith.constant 0 : i32
    %c0_i32_0 = arith.constant 0 : i32
    %c0_i32_1 = arith.constant 0 : i32
    return %c0_i32, %c0_i32_0 : i32, i32
  }
  func.func @transform_2(%arg0: i32) -> (i32, i32) {
    %c0_i32 = arith.constant 0 : i32
    %c0_i32_0 = arith.constant 0 : i32
    %c0_i32_1 = arith.constant 0 : i32
    return %c0_i32, %c0_i32_0 : i32, i32
  }
  func.func @transform_3(%arg0: i32) -> (i32, i32) {
    %c0_i32 = arith.constant 0 : i32
    %c0_i32_0 = arith.constant 0 : i32
    %c0_i32_1 = arith.constant 0 : i32
    return %c0_i32, %c0_i32_0 : i32, i32
  }
  func.func @transform_4(%arg0: i32) -> (i32, i32, i32) {
    %c0_i32 = arith.constant 0 : i32
    %c0_i32_0 = arith.constant 0 : i32
    %c0_i32_1 = arith.constant 0 : i32
    return %arg0, %c0_i32, %c0_i32_0 : i32, i32, i32
  }
  func.func @transform_5(%arg0: i32) -> (i32, i32) {
    %c0_i32 = arith.constant 0 : i32
    %c0_i32_0 = arith.constant 0 : i32
    return %arg0, %c0_i32 : i32, i32
  }
}

module attributes {stable_mosaic.version = 11 : i64} {
  func.func @kernel(%arg0: i32, %arg1: memref<2x8x16xf32, #tpu.memory_space<vmem>>, %arg2: memref<16x128xf32, #tpu.memory_space<vmem>>, %arg3: memref<32x128xf32, #tpu.memory_space<vmem>>, %arg4: memref<1x128xf32, #tpu.memory_space<vmem>>, %arg5: memref<2x8x32xf32, #tpu.memory_space<vmem>>, %arg6: memref<2x32xf32, #tpu.memory_space<vmem>>, %arg7: memref<8x2x128xf32, #tpu.memory_space<vmem>>, %arg8: memref<8x2x32xf32, #tpu.memory_space<vmem>>, %arg9: memref<2x32xf32, #tpu.memory_space<vmem>>, %arg10: memref<2x32xf32, #tpu.memory_space<vmem>>) attributes {dimension_semantics = [#tpu.dimension_semantics<parallel>], iteration_bounds = array<i64: 1>, scalar_prefetch = 0 : i64, scratch_operands = 4 : i64, tpu.core_type = #tpu.core_type<tc>, window_params = [{transform_indices = @transform_0, window_bounds = array<i64: 2, 8, 16>}, {pipeline_mode = #tpu.pipeline_mode<synchronous>, transform_indices = @transform_1, window_bounds = array<i64: 16, 128>}, {pipeline_mode = #tpu.pipeline_mode<synchronous>, transform_indices = @transform_2, window_bounds = array<i64: 32, 128>}, {pipeline_mode = #tpu.pipeline_mode<synchronous>, transform_indices = @transform_3, window_bounds = array<i64: 1, 128>}, {transform_indices = @transform_4, window_bounds = array<i64: 2, 8, 32>}, {transform_indices = @transform_5, window_bounds = array<i64: 2, 32>}]} {
    %c0 = arith.constant 0 : index
    %c0_0 = arith.constant 0 : index
    %c0_1 = arith.constant 0 : index
    %0 = vector.load %arg1[%c0, %c0_0, %c0_1] : memref<2x8x16xf32, #tpu.memory_space<vmem>>, vector<1x8x16xf32>
    %1 = vector.shape_cast %0 : vector<1x8x16xf32> to vector<8x16xf32>
    %c0_2 = arith.constant 0 : index
    %c0_3 = arith.constant 0 : index
    %2 = vector.load %arg2[%c0_2, %c0_3] : memref<16x128xf32, #tpu.memory_space<vmem>>, vector<16x128xf32>
    %cst = arith.constant dense<0.000000e+00> : vector<8x128xf32>
    %3 = tpu.matmul %1, %2, %cst {dimension_numbers = #tpu.dot_dimension_numbers<[1], [0], [0], [1], [0, 0, 1, 1], [], []>} : vector<8x16xf32>, vector<16x128xf32>, vector<8x128xf32> -> vector<8x128xf32>
    %c0_4 = arith.constant 0 : index
    %c0_5 = arith.constant 0 : index
    %4 = vector.load %arg4[%c0_4, %c0_5] : memref<1x128xf32, #tpu.memory_space<vmem>>, vector<1x128xf32>
    %5 = vector.broadcast %4 : vector<1x128xf32> to vector<8x128xf32>
    %6 = arith.addf %3, %5 : vector<8x128xf32>
    %c0_6 = arith.constant 0 : index
    %c0_7 = arith.constant 0 : index
    %c0_8 = arith.constant 0 : index
    %7 = vector.load %arg7[%c0_6, %c0_7, %c0_8] : memref<8x2x128xf32, #tpu.memory_space<vmem>>, vector<8x1x128xf32>
    %8 = vector.shape_cast %7 : vector<8x1x128xf32> to vector<8x128xf32>
    %9 = vector.shape_cast %6 : vector<8x128xf32> to vector<8x1x128xf32>
    tpu.vector_store %arg7[%c0_6, %c0_7, %c0_8], %9 {strides = array<i32>} : memref<8x2x128xf32, #tpu.memory_space<vmem>>, vector<8x1x128xf32>,
    %c1 = arith.constant 1 : index
    %c0_9 = arith.constant 0 : index
    %c0_10 = arith.constant 0 : index
    %10 = vector.load %arg1[%c1, %c0_9, %c0_10] : memref<2x8x16xf32, #tpu.memory_space<vmem>>, vector<1x8x16xf32>
    %11 = vector.shape_cast %10 : vector<1x8x16xf32> to vector<8x16xf32>
    %c0_11 = arith.constant 0 : index
    %c0_12 = arith.constant 0 : index
    %12 = vector.load %arg2[%c0_11, %c0_12] : memref<16x128xf32, #tpu.memory_space<vmem>>, vector<16x128xf32>
    %cst_13 = arith.constant dense<0.000000e+00> : vector<8x128xf32>
    %13 = tpu.matmul %11, %12, %cst_13 {dimension_numbers = #tpu.dot_dimension_numbers<[1], [0], [0], [1], [0, 0, 1, 1], [], []>} : vector<8x16xf32>, vector<16x128xf32>, vector<8x128xf32> -> vector<8x128xf32>
    %c0_14 = arith.constant 0 : index
    %c0_15 = arith.constant 0 : index
    %14 = vector.load %arg4[%c0_14, %c0_15] : memref<1x128xf32, #tpu.memory_space<vmem>>, vector<1x128xf32>
    %15 = vector.broadcast %14 : vector<1x128xf32> to vector<8x128xf32>
    %16 = arith.addf %13, %15 : vector<8x128xf32>
    %c0_16 = arith.constant 0 : index
    %c1_17 = arith.constant 1 : index
    %c0_18 = arith.constant 0 : index
    %17 = vector.load %arg7[%c0_16, %c1_17, %c0_18] : memref<8x2x128xf32, #tpu.memory_space<vmem>>, vector<8x1x128xf32>
    %18 = vector.shape_cast %17 : vector<8x1x128xf32> to vector<8x128xf32>
    %19 = vector.shape_cast %16 : vector<8x128xf32> to vector<8x1x128xf32>
    tpu.vector_store %arg7[%c0_16, %c1_17, %c0_18], %19 {strides = array<i32>} : memref<8x2x128xf32, #tpu.memory_space<vmem>>, vector<8x1x128xf32>,
    %cst_19 = arith.constant 0.000000e+00 : f32
    %20 = vector.broadcast %cst_19 : f32 to vector<2x32xf32>
    %c0_20 = arith.constant 0 : index
    %c0_21 = arith.constant 0 : index
    %21 = vector.load %arg9[%c0_20, %c0_21] : memref<2x32xf32, #tpu.memory_space<vmem>>, vector<2x32xf32>
    tpu.vector_store %arg9[%c0_20, %c0_21], %20 {strides = array<i32>} : memref<2x32xf32, #tpu.memory_space<vmem>>, vector<2x32xf32>,
    %cst_22 = arith.constant 0.000000e+00 : f32
    %22 = vector.broadcast %cst_22 : f32 to vector<2x32xf32>
    %c0_23 = arith.constant 0 : index
    %c0_24 = arith.constant 0 : index
    %23 = vector.load %arg10[%c0_23, %c0_24] : memref<2x32xf32, #tpu.memory_space<vmem>>, vector<2x32xf32>
    tpu.vector_store %arg10[%c0_23, %c0_24], %22 {strides = array<i32>} : memref<2x32xf32, #tpu.memory_space<vmem>>, vector<2x32xf32>,
    %c0_i32 = arith.constant 0 : i32
    %24 = arith.index_cast %c0_i32 : i32 to index
    %c0_25 = arith.constant 0 : index
    %c0_26 = arith.constant 0 : index
    %25 = vector.load %arg7[%24, %c0_25, %c0_26] : memref<8x2x128xf32, #tpu.memory_space<vmem>>, vector<1x2x128xf32>
    %26 = vector.shape_cast %25 : vector<1x2x128xf32> to vector<2x128xf32>
    %c0_27 = arith.constant 0 : index
    %c0_28 = arith.constant 0 : index
    %27 = vector.load %arg9[%c0_27, %c0_28] : memref<2x32xf32, #tpu.memory_space<vmem>>, vector<2x32xf32>
    %c0_29 = arith.constant 0 : index
    %c0_30 = arith.constant 0 : index
    %28 = vector.load %arg3[%c0_29, %c0_30] : memref<32x128xf32, #tpu.memory_space<vmem>>, vector<32x128xf32>
    %cst_31 = arith.constant dense<0.000000e+00> : vector<2x128xf32>
    %29 = tpu.matmul %27, %28, %cst_31 {dimension_numbers = #tpu.dot_dimension_numbers<[1], [0], [0], [1], [0, 0, 1, 1], [], []>} : vector<2x32xf32>, vector<32x128xf32>, vector<2x128xf32> -> vector<2x128xf32>
    %30 = arith.addf %26, %29 : vector<2x128xf32>
    %31 = vector.extract_strided_slice %30 {offsets = [0, 0], sizes = [2, 32], strides = [1, 1]} : vector<2x128xf32> to vector<2x32xf32>
    %32 = arith.negf %31 : vector<2x32xf32>
    %33 = math.exp %32 : vector<2x32xf32>
    %cst_32 = arith.constant 1.000000e+00 : f32
    %34 = vector.broadcast %cst_32 : f32 to vector<2x32xf32>
    %35 = arith.addf %34, %33 : vector<2x32xf32>
    %36 = arith.divf %34, %35 : vector<2x32xf32>
    %37 = vector.extract_strided_slice %30 {offsets = [0, 32], sizes = [2, 32], strides = [1, 1]} : vector<2x128xf32> to vector<2x32xf32>
    %38 = arith.negf %37 : vector<2x32xf32>
    %39 = math.exp %38 : vector<2x32xf32>
    %cst_33 = arith.constant 1.000000e+00 : f32
    %40 = vector.broadcast %cst_33 : f32 to vector<2x32xf32>
    %41 = arith.addf %40, %39 : vector<2x32xf32>
    %42 = arith.divf %40, %41 : vector<2x32xf32>
    %43 = vector.extract_strided_slice %30 {offsets = [0, 64], sizes = [2, 32], strides = [1, 1]} : vector<2x128xf32> to vector<2x32xf32>
    %44 = math.tanh %43 : vector<2x32xf32>
    %45 = vector.extract_strided_slice %30 {offsets = [0, 96], sizes = [2, 32], strides = [1, 1]} : vector<2x128xf32> to vector<2x32xf32>
    %46 = arith.negf %45 : vector<2x32xf32>
    %47 = math.exp %46 : vector<2x32xf32>
    %cst_34 = arith.constant 1.000000e+00 : f32
    %48 = vector.broadcast %cst_34 : f32 to vector<2x32xf32>
    %49 = arith.addf %48, %47 : vector<2x32xf32>
    %50 = arith.divf %48, %49 : vector<2x32xf32>
    %c0_35 = arith.constant 0 : index
    %c0_36 = arith.constant 0 : index
    %51 = vector.load %arg10[%c0_35, %c0_36] : memref<2x32xf32, #tpu.memory_space<vmem>>, vector<2x32xf32>
    %52 = arith.mulf %36, %51 : vector<2x32xf32>
    %53 = arith.mulf %42, %44 : vector<2x32xf32>
    %54 = arith.addf %52, %53 : vector<2x32xf32>
    %55 = math.tanh %54 : vector<2x32xf32>
    %56 = arith.mulf %50, %55 : vector<2x32xf32>
    %c0_37 = arith.constant 0 : index
    %c0_38 = arith.constant 0 : index
    %57 = vector.load %arg9[%c0_37, %c0_38] : memref<2x32xf32, #tpu.memory_space<vmem>>, vector<2x32xf32>
    tpu.vector_store %arg9[%c0_37, %c0_38], %56 {strides = array<i32>} : memref<2x32xf32, #tpu.memory_space<vmem>>, vector<2x32xf32>,
    %c0_39 = arith.constant 0 : index
    %c0_40 = arith.constant 0 : index
    %58 = vector.load %arg10[%c0_39, %c0_40] : memref<2x32xf32, #tpu.memory_space<vmem>>, vector<2x32xf32>
    tpu.vector_store %arg10[%c0_39, %c0_40], %54 {strides = array<i32>} : memref<2x32xf32, #tpu.memory_space<vmem>>, vector<2x32xf32>,
    %59 = arith.index_cast %c0_i32 : i32 to index
    %c0_41 = arith.constant 0 : index
    %c0_42 = arith.constant 0 : index
    %60 = vector.load %arg8[%59, %c0_41, %c0_42] : memref<8x2x32xf32, #tpu.memory_space<vmem>>, vector<1x2x32xf32>
    %61 = vector.shape_cast %60 : vector<1x2x32xf32> to vector<2x32xf32>
    %62 = vector.shape_cast %56 : vector<2x32xf32> to vector<1x2x32xf32>
    tpu.vector_store %arg8[%59, %c0_41, %c0_42], %62 {strides = array<i32>} : memref<8x2x32xf32, #tpu.memory_space<vmem>>, vector<1x2x32xf32>,
    %c1_i32 = arith.constant 1 : i32
    %63 = arith.index_cast %c1_i32 : i32 to index
    %c0_43 = arith.constant 0 : index
    %c0_44 = arith.constant 0 : index
    %64 = vector.load %arg7[%63, %c0_43, %c0_44] : memref<8x2x128xf32, #tpu.memory_space<vmem>>, vector<1x2x128xf32>
    %65 = vector.shape_cast %64 : vector<1x2x128xf32> to vector<2x128xf32>
    %c0_45 = arith.constant 0 : index
    %c0_46 = arith.constant 0 : index
    %66 = vector.load %arg9[%c0_45, %c0_46] : memref<2x32xf32, #tpu.memory_space<vmem>>, vector<2x32xf32>
    %c0_47 = arith.constant 0 : index
    %c0_48 = arith.constant 0 : index
    %67 = vector.load %arg3[%c0_47, %c0_48] : memref<32x128xf32, #tpu.memory_space<vmem>>, vector<32x128xf32>
    %cst_49 = arith.constant dense<0.000000e+00> : vector<2x128xf32>
    %68 = tpu.matmul %66, %67, %cst_49 {dimension_numbers = #tpu.dot_dimension_numbers<[1], [0], [0], [1], [0, 0, 1, 1], [], []>} : vector<2x32xf32>, vector<32x128xf32>, vector<2x128xf32> -> vector<2x128xf32>
    %69 = arith.addf %65, %68 : vector<2x128xf32>
    %70 = vector.extract_strided_slice %69 {offsets = [0, 0], sizes = [2, 32], strides = [1, 1]} : vector<2x128xf32> to vector<2x32xf32>
    %71 = arith.negf %70 : vector<2x32xf32>
    %72 = math.exp %71 : vector<2x32xf32>
    %cst_50 = arith.constant 1.000000e+00 : f32
    %73 = vector.broadcast %cst_50 : f32 to vector<2x32xf32>
    %74 = arith.addf %73, %72 : vector<2x32xf32>
    %75 = arith.divf %73, %74 : vector<2x32xf32>
    %76 = vector.extract_strided_slice %69 {offsets = [0, 32], sizes = [2, 32], strides = [1, 1]} : vector<2x128xf32> to vector<2x32xf32>
    %77 = arith.negf %76 : vector<2x32xf32>
    %78 = math.exp %77 : vector<2x32xf32>
    %cst_51 = arith.constant 1.000000e+00 : f32
    %79 = vector.broadcast %cst_51 : f32 to vector<2x32xf32>
    %80 = arith.addf %79, %78 : vector<2x32xf32>
    %81 = arith.divf %79, %80 : vector<2x32xf32>
    %82 = vector.extract_strided_slice %69 {offsets = [0, 64], sizes = [2, 32], strides = [1, 1]} : vector<2x128xf32> to vector<2x32xf32>
    %83 = math.tanh %82 : vector<2x32xf32>
    %84 = vector.extract_strided_slice %69 {offsets = [0, 96], sizes = [2, 32], strides = [1, 1]} : vector<2x128xf32> to vector<2x32xf32>
    %85 = arith.negf %84 : vector<2x32xf32>
    %86 = math.exp %85 : vector<2x32xf32>
    %cst_52 = arith.constant 1.000000e+00 : f32
    %87 = vector.broadcast %cst_52 : f32 to vector<2x32xf32>
    %88 = arith.addf %87, %86 : vector<2x32xf32>
    %89 = arith.divf %87, %88 : vector<2x32xf32>
    %c0_53 = arith.constant 0 : index
    %c0_54 = arith.constant 0 : index
    %90 = vector.load %arg10[%c0_53, %c0_54] : memref<2x32xf32, #tpu.memory_space<vmem>>, vector<2x32xf32>
    %91 = arith.mulf %75, %90 : vector<2x32xf32>
    %92 = arith.mulf %81, %83 : vector<2x32xf32>
    %93 = arith.addf %91, %92 : vector<2x32xf32>
    %94 = math.tanh %93 : vector<2x32xf32>
    %95 = arith.mulf %89, %94 : vector<2x32xf32>
    %c0_55 = arith.constant 0 : index
    %c0_56 = arith.constant 0 : index
    %96 = vector.load %arg9[%c0_55, %c0_56] : memref<2x32xf32, #tpu.memory_space<vmem>>, vector<2x32xf32>
    tpu.vector_store %arg9[%c0_55, %c0_56], %95 {strides = array<i32>} : memref<2x32xf32, #tpu.memory_space<vmem>>, vector<2x32xf32>,
    %c0_57 = arith.constant 0 : index
    %c0_58 = arith.constant 0 : index
    %97 = vector.load %arg10[%c0_57, %c0_58] : memref<2x32xf32, #tpu.memory_space<vmem>>, vector<2x32xf32>
    tpu.vector_store %arg10[%c0_57, %c0_58], %93 {strides = array<i32>} : memref<2x32xf32, #tpu.memory_space<vmem>>, vector<2x32xf32>,
    %98 = arith.index_cast %c1_i32 : i32 to index
    %c0_59 = arith.constant 0 : index
    %c0_60 = arith.constant 0 : index
    %99 = vector.load %arg8[%98, %c0_59, %c0_60] : memref<8x2x32xf32, #tpu.memory_space<vmem>>, vector<1x2x32xf32>
    %100 = vector.shape_cast %99 : vector<1x2x32xf32> to vector<2x32xf32>
    %101 = vector.shape_cast %95 : vector<2x32xf32> to vector<1x2x32xf32>
    tpu.vector_store %arg8[%98, %c0_59, %c0_60], %101 {strides = array<i32>} : memref<8x2x32xf32, #tpu.memory_space<vmem>>, vector<1x2x32xf32>,
    %c2_i32 = arith.constant 2 : i32
    %102 = arith.index_cast %c2_i32 : i32 to index
    %c0_61 = arith.constant 0 : index
    %c0_62 = arith.constant 0 : index
    %103 = vector.load %arg7[%102, %c0_61, %c0_62] : memref<8x2x128xf32, #tpu.memory_space<vmem>>, vector<1x2x128xf32>
    %104 = vector.shape_cast %103 : vector<1x2x128xf32> to vector<2x128xf32>
    %c0_63 = arith.constant 0 : index
    %c0_64 = arith.constant 0 : index
    %105 = vector.load %arg9[%c0_63, %c0_64] : memref<2x32xf32, #tpu.memory_space<vmem>>, vector<2x32xf32>
    %c0_65 = arith.constant 0 : index
    %c0_66 = arith.constant 0 : index
    %106 = vector.load %arg3[%c0_65, %c0_66] : memref<32x128xf32, #tpu.memory_space<vmem>>, vector<32x128xf32>
    %cst_67 = arith.constant dense<0.000000e+00> : vector<2x128xf32>
    %107 = tpu.matmul %105, %106, %cst_67 {dimension_numbers = #tpu.dot_dimension_numbers<[1], [0], [0], [1], [0, 0, 1, 1], [], []>} : vector<2x32xf32>, vector<32x128xf32>, vector<2x128xf32> -> vector<2x128xf32>
    %108 = arith.addf %104, %107 : vector<2x128xf32>
    %109 = vector.extract_strided_slice %108 {offsets = [0, 0], sizes = [2, 32], strides = [1, 1]} : vector<2x128xf32> to vector<2x32xf32>
    %110 = arith.negf %109 : vector<2x32xf32>
    %111 = math.exp %110 : vector<2x32xf32>
    %cst_68 = arith.constant 1.000000e+00 : f32
    %112 = vector.broadcast %cst_68 : f32 to vector<2x32xf32>
    %113 = arith.addf %112, %111 : vector<2x32xf32>
    %114 = arith.divf %112, %113 : vector<2x32xf32>
    %115 = vector.extract_strided_slice %108 {offsets = [0, 32], sizes = [2, 32], strides = [1, 1]} : vector<2x128xf32> to vector<2x32xf32>
    %116 = arith.negf %115 : vector<2x32xf32>
    %117 = math.exp %116 : vector<2x32xf32>
    %cst_69 = arith.constant 1.000000e+00 : f32
    %118 = vector.broadcast %cst_69 : f32 to vector<2x32xf32>
    %119 = arith.addf %118, %117 : vector<2x32xf32>
    %120 = arith.divf %118, %119 : vector<2x32xf32>
    %121 = vector.extract_strided_slice %108 {offsets = [0, 64], sizes = [2, 32], strides = [1, 1]} : vector<2x128xf32> to vector<2x32xf32>
    %122 = math.tanh %121 : vector<2x32xf32>
    %123 = vector.extract_strided_slice %108 {offsets = [0, 96], sizes = [2, 32], strides = [1, 1]} : vector<2x128xf32> to vector<2x32xf32>
    %124 = arith.negf %123 : vector<2x32xf32>
    %125 = math.exp %124 : vector<2x32xf32>
    %cst_70 = arith.constant 1.000000e+00 : f32
    %126 = vector.broadcast %cst_70 : f32 to vector<2x32xf32>
    %127 = arith.addf %126, %125 : vector<2x32xf32>
    %128 = arith.divf %126, %127 : vector<2x32xf32>
    %c0_71 = arith.constant 0 : index
    %c0_72 = arith.constant 0 : index
    %129 = vector.load %arg10[%c0_71, %c0_72] : memref<2x32xf32, #tpu.memory_space<vmem>>, vector<2x32xf32>
    %130 = arith.mulf %114, %129 : vector<2x32xf32>
    %131 = arith.mulf %120, %122 : vector<2x32xf32>
    %132 = arith.addf %130, %131 : vector<2x32xf32>
    %133 = math.tanh %132 : vector<2x32xf32>
    %134 = arith.mulf %128, %133 : vector<2x32xf32>
    %c0_73 = arith.constant 0 : index
    %c0_74 = arith.constant 0 : index
    %135 = vector.load %arg9[%c0_73, %c0_74] : memref<2x32xf32, #tpu.memory_space<vmem>>, vector<2x32xf32>
    tpu.vector_store %arg9[%c0_73, %c0_74], %134 {strides = array<i32>} : memref<2x32xf32, #tpu.memory_space<vmem>>, vector<2x32xf32>,
    %c0_75 = arith.constant 0 : index
    %c0_76 = arith.constant 0 : index
    %136 = vector.load %arg10[%c0_75, %c0_76] : memref<2x32xf32, #tpu.memory_space<vmem>>, vector<2x32xf32>
    tpu.vector_store %arg10[%c0_75, %c0_76], %132 {strides = array<i32>} : memref<2x32xf32, #tpu.memory_space<vmem>>, vector<2x32xf32>,
    %137 = arith.index_cast %c2_i32 : i32 to index
    %c0_77 = arith.constant 0 : index
    %c0_78 = arith.constant 0 : index
    %138 = vector.load %arg8[%137, %c0_77, %c0_78] : memref<8x2x32xf32, #tpu.memory_space<vmem>>, vector<1x2x32xf32>
    %139 = vector.shape_cast %138 : vector<1x2x32xf32> to vector<2x32xf32>
    %140 = vector.shape_cast %134 : vector<2x32xf32> to vector<1x2x32xf32>
    tpu.vector_store %arg8[%137, %c0_77, %c0_78], %140 {strides = array<i32>} : memref<8x2x32xf32, #tpu.memory_space<vmem>>, vector<1x2x32xf32>,
    %c3_i32 = arith.constant 3 : i32
    %141 = arith.index_cast %c3_i32 : i32 to index
    %c0_79 = arith.constant 0 : index
    %c0_80 = arith.constant 0 : index
    %142 = vector.load %arg7[%141, %c0_79, %c0_80] : memref<8x2x128xf32, #tpu.memory_space<vmem>>, vector<1x2x128xf32>
    %143 = vector.shape_cast %142 : vector<1x2x128xf32> to vector<2x128xf32>
    %c0_81 = arith.constant 0 : index
    %c0_82 = arith.constant 0 : index
    %144 = vector.load %arg9[%c0_81, %c0_82] : memref<2x32xf32, #tpu.memory_space<vmem>>, vector<2x32xf32>
    %c0_83 = arith.constant 0 : index
    %c0_84 = arith.constant 0 : index
    %145 = vector.load %arg3[%c0_83, %c0_84] : memref<32x128xf32, #tpu.memory_space<vmem>>, vector<32x128xf32>
    %cst_85 = arith.constant dense<0.000000e+00> : vector<2x128xf32>
    %146 = tpu.matmul %144, %145, %cst_85 {dimension_numbers = #tpu.dot_dimension_numbers<[1], [0], [0], [1], [0, 0, 1, 1], [], []>} : vector<2x32xf32>, vector<32x128xf32>, vector<2x128xf32> -> vector<2x128xf32>
    %147 = arith.addf %143, %146 : vector<2x128xf32>
    %148 = vector.extract_strided_slice %147 {offsets = [0, 0], sizes = [2, 32], strides = [1, 1]} : vector<2x128xf32> to vector<2x32xf32>
    %149 = arith.negf %148 : vector<2x32xf32>
    %150 = math.exp %149 : vector<2x32xf32>
    %cst_86 = arith.constant 1.000000e+00 : f32
    %151 = vector.broadcast %cst_86 : f32 to vector<2x32xf32>
    %152 = arith.addf %151, %150 : vector<2x32xf32>
    %153 = arith.divf %151, %152 : vector<2x32xf32>
    %154 = vector.extract_strided_slice %147 {offsets = [0, 32], sizes = [2, 32], strides = [1, 1]} : vector<2x128xf32> to vector<2x32xf32>
    %155 = arith.negf %154 : vector<2x32xf32>
    %156 = math.exp %155 : vector<2x32xf32>
    %cst_87 = arith.constant 1.000000e+00 : f32
    %157 = vector.broadcast %cst_87 : f32 to vector<2x32xf32>
    %158 = arith.addf %157, %156 : vector<2x32xf32>
    %159 = arith.divf %157, %158 : vector<2x32xf32>
    %160 = vector.extract_strided_slice %147 {offsets = [0, 64], sizes = [2, 32], strides = [1, 1]} : vector<2x128xf32> to vector<2x32xf32>
    %161 = math.tanh %160 : vector<2x32xf32>
    %162 = vector.extract_strided_slice %147 {offsets = [0, 96], sizes = [2, 32], strides = [1, 1]} : vector<2x128xf32> to vector<2x32xf32>
    %163 = arith.negf %162 : vector<2x32xf32>
    %164 = math.exp %163 : vector<2x32xf32>
    %cst_88 = arith.constant 1.000000e+00 : f32
    %165 = vector.broadcast %cst_88 : f32 to vector<2x32xf32>
    %166 = arith.addf %165, %164 : vector<2x32xf32>
    %167 = arith.divf %165, %166 : vector<2x32xf32>
    %c0_89 = arith.constant 0 : index
    %c0_90 = arith.constant 0 : index
    %168 = vector.load %arg10[%c0_89, %c0_90] : memref<2x32xf32, #tpu.memory_space<vmem>>, vector<2x32xf32>
    %169 = arith.mulf %153, %168 : vector<2x32xf32>
    %170 = arith.mulf %159, %161 : vector<2x32xf32>
    %171 = arith.addf %169, %170 : vector<2x32xf32>
    %172 = math.tanh %171 : vector<2x32xf32>
    %173 = arith.mulf %167, %172 : vector<2x32xf32>
    %c0_91 = arith.constant 0 : index
    %c0_92 = arith.constant 0 : index
    %174 = vector.load %arg9[%c0_91, %c0_92] : memref<2x32xf32, #tpu.memory_space<vmem>>, vector<2x32xf32>
    tpu.vector_store %arg9[%c0_91, %c0_92], %173 {strides = array<i32>} : memref<2x32xf32, #tpu.memory_space<vmem>>, vector<2x32xf32>,
    %c0_93 = arith.constant 0 : index
    %c0_94 = arith.constant 0 : index
    %175 = vector.load %arg10[%c0_93, %c0_94] : memref<2x32xf32, #tpu.memory_space<vmem>>, vector<2x32xf32>
    tpu.vector_store %arg10[%c0_93, %c0_94], %171 {strides = array<i32>} : memref<2x32xf32, #tpu.memory_space<vmem>>, vector<2x32xf32>,
    %176 = arith.index_cast %c3_i32 : i32 to index
    %c0_95 = arith.constant 0 : index
    %c0_96 = arith.constant 0 : index
    %177 = vector.load %arg8[%176, %c0_95, %c0_96] : memref<8x2x32xf32, #tpu.memory_space<vmem>>, vector<1x2x32xf32>
    %178 = vector.shape_cast %177 : vector<1x2x32xf32> to vector<2x32xf32>
    %179 = vector.shape_cast %173 : vector<2x32xf32> to vector<1x2x32xf32>
    tpu.vector_store %arg8[%176, %c0_95, %c0_96], %179 {strides = array<i32>} : memref<8x2x32xf32, #tpu.memory_space<vmem>>, vector<1x2x32xf32>,
    %c4_i32 = arith.constant 4 : i32
    %180 = arith.index_cast %c4_i32 : i32 to index
    %c0_97 = arith.constant 0 : index
    %c0_98 = arith.constant 0 : index
    %181 = vector.load %arg7[%180, %c0_97, %c0_98] : memref<8x2x128xf32, #tpu.memory_space<vmem>>, vector<1x2x128xf32>
    %182 = vector.shape_cast %181 : vector<1x2x128xf32> to vector<2x128xf32>
    %c0_99 = arith.constant 0 : index
    %c0_100 = arith.constant 0 : index
    %183 = vector.load %arg9[%c0_99, %c0_100] : memref<2x32xf32, #tpu.memory_space<vmem>>, vector<2x32xf32>
    %c0_101 = arith.constant 0 : index
    %c0_102 = arith.constant 0 : index
    %184 = vector.load %arg3[%c0_101, %c0_102] : memref<32x128xf32, #tpu.memory_space<vmem>>, vector<32x128xf32>
    %cst_103 = arith.constant dense<0.000000e+00> : vector<2x128xf32>
    %185 = tpu.matmul %183, %184, %cst_103 {dimension_numbers = #tpu.dot_dimension_numbers<[1], [0], [0], [1], [0, 0, 1, 1], [], []>} : vector<2x32xf32>, vector<32x128xf32>, vector<2x128xf32> -> vector<2x128xf32>
    %186 = arith.addf %182, %185 : vector<2x128xf32>
    %187 = vector.extract_strided_slice %186 {offsets = [0, 0], sizes = [2, 32], strides = [1, 1]} : vector<2x128xf32> to vector<2x32xf32>
    %188 = arith.negf %187 : vector<2x32xf32>
    %189 = math.exp %188 : vector<2x32xf32>
    %cst_104 = arith.constant 1.000000e+00 : f32
    %190 = vector.broadcast %cst_104 : f32 to vector<2x32xf32>
    %191 = arith.addf %190, %189 : vector<2x32xf32>
    %192 = arith.divf %190, %191 : vector<2x32xf32>
    %193 = vector.extract_strided_slice %186 {offsets = [0, 32], sizes = [2, 32], strides = [1, 1]} : vector<2x128xf32> to vector<2x32xf32>
    %194 = arith.negf %193 : vector<2x32xf32>
    %195 = math.exp %194 : vector<2x32xf32>
    %cst_105 = arith.constant 1.000000e+00 : f32
    %196 = vector.broadcast %cst_105 : f32 to vector<2x32xf32>
    %197 = arith.addf %196, %195 : vector<2x32xf32>
    %198 = arith.divf %196, %197 : vector<2x32xf32>
    %199 = vector.extract_strided_slice %186 {offsets = [0, 64], sizes = [2, 32], strides = [1, 1]} : vector<2x128xf32> to vector<2x32xf32>
    %200 = math.tanh %199 : vector<2x32xf32>
    %201 = vector.extract_strided_slice %186 {offsets = [0, 96], sizes = [2, 32], strides = [1, 1]} : vector<2x128xf32> to vector<2x32xf32>
    %202 = arith.negf %201 : vector<2x32xf32>
    %203 = math.exp %202 : vector<2x32xf32>
    %cst_106 = arith.constant 1.000000e+00 : f32
    %204 = vector.broadcast %cst_106 : f32 to vector<2x32xf32>
    %205 = arith.addf %204, %203 : vector<2x32xf32>
    %206 = arith.divf %204, %205 : vector<2x32xf32>
    %c0_107 = arith.constant 0 : index
    %c0_108 = arith.constant 0 : index
    %207 = vector.load %arg10[%c0_107, %c0_108] : memref<2x32xf32, #tpu.memory_space<vmem>>, vector<2x32xf32>
    %208 = arith.mulf %192, %207 : vector<2x32xf32>
    %209 = arith.mulf %198, %200 : vector<2x32xf32>
    %210 = arith.addf %208, %209 : vector<2x32xf32>
    %211 = math.tanh %210 : vector<2x32xf32>
    %212 = arith.mulf %206, %211 : vector<2x32xf32>
    %c0_109 = arith.constant 0 : index
    %c0_110 = arith.constant 0 : index
    %213 = vector.load %arg9[%c0_109, %c0_110] : memref<2x32xf32, #tpu.memory_space<vmem>>, vector<2x32xf32>
    tpu.vector_store %arg9[%c0_109, %c0_110], %212 {strides = array<i32>} : memref<2x32xf32, #tpu.memory_space<vmem>>, vector<2x32xf32>,
    %c0_111 = arith.constant 0 : index
    %c0_112 = arith.constant 0 : index
    %214 = vector.load %arg10[%c0_111, %c0_112] : memref<2x32xf32, #tpu.memory_space<vmem>>, vector<2x32xf32>
    tpu.vector_store %arg10[%c0_111, %c0_112], %210 {strides = array<i32>} : memref<2x32xf32, #tpu.memory_space<vmem>>, vector<2x32xf32>,
    %215 = arith.index_cast %c4_i32 : i32 to index
    %c0_113 = arith.constant 0 : index
    %c0_114 = arith.constant 0 : index
    %216 = vector.load %arg8[%215, %c0_113, %c0_114] : memref<8x2x32xf32, #tpu.memory_space<vmem>>, vector<1x2x32xf32>
    %217 = vector.shape_cast %216 : vector<1x2x32xf32> to vector<2x32xf32>
    %218 = vector.shape_cast %212 : vector<2x32xf32> to vector<1x2x32xf32>
    tpu.vector_store %arg8[%215, %c0_113, %c0_114], %218 {strides = array<i32>} : memref<8x2x32xf32, #tpu.memory_space<vmem>>, vector<1x2x32xf32>,
    %c5_i32 = arith.constant 5 : i32
    %219 = arith.index_cast %c5_i32 : i32 to index
    %c0_115 = arith.constant 0 : index
    %c0_116 = arith.constant 0 : index
    %220 = vector.load %arg7[%219, %c0_115, %c0_116] : memref<8x2x128xf32, #tpu.memory_space<vmem>>, vector<1x2x128xf32>
    %221 = vector.shape_cast %220 : vector<1x2x128xf32> to vector<2x128xf32>
    %c0_117 = arith.constant 0 : index
    %c0_118 = arith.constant 0 : index
    %222 = vector.load %arg9[%c0_117, %c0_118] : memref<2x32xf32, #tpu.memory_space<vmem>>, vector<2x32xf32>
    %c0_119 = arith.constant 0 : index
    %c0_120 = arith.constant 0 : index
    %223 = vector.load %arg3[%c0_119, %c0_120] : memref<32x128xf32, #tpu.memory_space<vmem>>, vector<32x128xf32>
    %cst_121 = arith.constant dense<0.000000e+00> : vector<2x128xf32>
    %224 = tpu.matmul %222, %223, %cst_121 {dimension_numbers = #tpu.dot_dimension_numbers<[1], [0], [0], [1], [0, 0, 1, 1], [], []>} : vector<2x32xf32>, vector<32x128xf32>, vector<2x128xf32> -> vector<2x128xf32>
    %225 = arith.addf %221, %224 : vector<2x128xf32>
    %226 = vector.extract_strided_slice %225 {offsets = [0, 0], sizes = [2, 32], strides = [1, 1]} : vector<2x128xf32> to vector<2x32xf32>
    %227 = arith.negf %226 : vector<2x32xf32>
    %228 = math.exp %227 : vector<2x32xf32>
    %cst_122 = arith.constant 1.000000e+00 : f32
    %229 = vector.broadcast %cst_122 : f32 to vector<2x32xf32>
    %230 = arith.addf %229, %228 : vector<2x32xf32>
    %231 = arith.divf %229, %230 : vector<2x32xf32>
    %232 = vector.extract_strided_slice %225 {offsets = [0, 32], sizes = [2, 32], strides = [1, 1]} : vector<2x128xf32> to vector<2x32xf32>
    %233 = arith.negf %232 : vector<2x32xf32>
    %234 = math.exp %233 : vector<2x32xf32>
    %cst_123 = arith.constant 1.000000e+00 : f32
    %235 = vector.broadcast %cst_123 : f32 to vector<2x32xf32>
    %236 = arith.addf %235, %234 : vector<2x32xf32>
    %237 = arith.divf %235, %236 : vector<2x32xf32>
    %238 = vector.extract_strided_slice %225 {offsets = [0, 64], sizes = [2, 32], strides = [1, 1]} : vector<2x128xf32> to vector<2x32xf32>
    %239 = math.tanh %238 : vector<2x32xf32>
    %240 = vector.extract_strided_slice %225 {offsets = [0, 96], sizes = [2, 32], strides = [1, 1]} : vector<2x128xf32> to vector<2x32xf32>
    %241 = arith.negf %240 : vector<2x32xf32>
    %242 = math.exp %241 : vector<2x32xf32>
    %cst_124 = arith.constant 1.000000e+00 : f32
    %243 = vector.broadcast %cst_124 : f32 to vector<2x32xf32>
    %244 = arith.addf %243, %242 : vector<2x32xf32>
    %245 = arith.divf %243, %244 : vector<2x32xf32>
    %c0_125 = arith.constant 0 : index
    %c0_126 = arith.constant 0 : index
    %246 = vector.load %arg10[%c0_125, %c0_126] : memref<2x32xf32, #tpu.memory_space<vmem>>, vector<2x32xf32>
    %247 = arith.mulf %231, %246 : vector<2x32xf32>
    %248 = arith.mulf %237, %239 : vector<2x32xf32>
    %249 = arith.addf %247, %248 : vector<2x32xf32>
    %250 = math.tanh %249 : vector<2x32xf32>
    %251 = arith.mulf %245, %250 : vector<2x32xf32>
    %c0_127 = arith.constant 0 : index
    %c0_128 = arith.constant 0 : index
    %252 = vector.load %arg9[%c0_127, %c0_128] : memref<2x32xf32, #tpu.memory_space<vmem>>, vector<2x32xf32>
    tpu.vector_store %arg9[%c0_127, %c0_128], %251 {strides = array<i32>} : memref<2x32xf32, #tpu.memory_space<vmem>>, vector<2x32xf32>,
    %c0_129 = arith.constant 0 : index
    %c0_130 = arith.constant 0 : index
    %253 = vector.load %arg10[%c0_129, %c0_130] : memref<2x32xf32, #tpu.memory_space<vmem>>, vector<2x32xf32>
    tpu.vector_store %arg10[%c0_129, %c0_130], %249 {strides = array<i32>} : memref<2x32xf32, #tpu.memory_space<vmem>>, vector<2x32xf32>,
    %254 = arith.index_cast %c5_i32 : i32 to index
    %c0_131 = arith.constant 0 : index
    %c0_132 = arith.constant 0 : index
    %255 = vector.load %arg8[%254, %c0_131, %c0_132] : memref<8x2x32xf32, #tpu.memory_space<vmem>>, vector<1x2x32xf32>
    %256 = vector.shape_cast %255 : vector<1x2x32xf32> to vector<2x32xf32>
    %257 = vector.shape_cast %251 : vector<2x32xf32> to vector<1x2x32xf32>
    tpu.vector_store %arg8[%254, %c0_131, %c0_132], %257 {strides = array<i32>} : memref<8x2x32xf32, #tpu.memory_space<vmem>>, vector<1x2x32xf32>,
    %c6_i32 = arith.constant 6 : i32
    %258 = arith.index_cast %c6_i32 : i32 to index
    %c0_133 = arith.constant 0 : index
    %c0_134 = arith.constant 0 : index
    %259 = vector.load %arg7[%258, %c0_133, %c0_134] : memref<8x2x128xf32, #tpu.memory_space<vmem>>, vector<1x2x128xf32>
    %260 = vector.shape_cast %259 : vector<1x2x128xf32> to vector<2x128xf32>
    %c0_135 = arith.constant 0 : index
    %c0_136 = arith.constant 0 : index
    %261 = vector.load %arg9[%c0_135, %c0_136] : memref<2x32xf32, #tpu.memory_space<vmem>>, vector<2x32xf32>
    %c0_137 = arith.constant 0 : index
    %c0_138 = arith.constant 0 : index
    %262 = vector.load %arg3[%c0_137, %c0_138] : memref<32x128xf32, #tpu.memory_space<vmem>>, vector<32x128xf32>
    %cst_139 = arith.constant dense<0.000000e+00> : vector<2x128xf32>
    %263 = tpu.matmul %261, %262, %cst_139 {dimension_numbers = #tpu.dot_dimension_numbers<[1], [0], [0], [1], [0, 0, 1, 1], [], []>} : vector<2x32xf32>, vector<32x128xf32>, vector<2x128xf32> -> vector<2x128xf32>
    %264 = arith.addf %260, %263 : vector<2x128xf32>
    %265 = vector.extract_strided_slice %264 {offsets = [0, 0], sizes = [2, 32], strides = [1, 1]} : vector<2x128xf32> to vector<2x32xf32>
    %266 = arith.negf %265 : vector<2x32xf32>
    %267 = math.exp %266 : vector<2x32xf32>
    %cst_140 = arith.constant 1.000000e+00 : f32
    %268 = vector.broadcast %cst_140 : f32 to vector<2x32xf32>
    %269 = arith.addf %268, %267 : vector<2x32xf32>
    %270 = arith.divf %268, %269 : vector<2x32xf32>
    %271 = vector.extract_strided_slice %264 {offsets = [0, 32], sizes = [2, 32], strides = [1, 1]} : vector<2x128xf32> to vector<2x32xf32>
    %272 = arith.negf %271 : vector<2x32xf32>
    %273 = math.exp %272 : vector<2x32xf32>
    %cst_141 = arith.constant 1.000000e+00 : f32
    %274 = vector.broadcast %cst_141 : f32 to vector<2x32xf32>
    %275 = arith.addf %274, %273 : vector<2x32xf32>
    %276 = arith.divf %274, %275 : vector<2x32xf32>
    %277 = vector.extract_strided_slice %264 {offsets = [0, 64], sizes = [2, 32], strides = [1, 1]} : vector<2x128xf32> to vector<2x32xf32>
    %278 = math.tanh %277 : vector<2x32xf32>
    %279 = vector.extract_strided_slice %264 {offsets = [0, 96], sizes = [2, 32], strides = [1, 1]} : vector<2x128xf32> to vector<2x32xf32>
    %280 = arith.negf %279 : vector<2x32xf32>
    %281 = math.exp %280 : vector<2x32xf32>
    %cst_142 = arith.constant 1.000000e+00 : f32
    %282 = vector.broadcast %cst_142 : f32 to vector<2x32xf32>
    %283 = arith.addf %282, %281 : vector<2x32xf32>
    %284 = arith.divf %282, %283 : vector<2x32xf32>
    %c0_143 = arith.constant 0 : index
    %c0_144 = arith.constant 0 : index
    %285 = vector.load %arg10[%c0_143, %c0_144] : memref<2x32xf32, #tpu.memory_space<vmem>>, vector<2x32xf32>
    %286 = arith.mulf %270, %285 : vector<2x32xf32>
    %287 = arith.mulf %276, %278 : vector<2x32xf32>
    %288 = arith.addf %286, %287 : vector<2x32xf32>
    %289 = math.tanh %288 : vector<2x32xf32>
    %290 = arith.mulf %284, %289 : vector<2x32xf32>
    %c0_145 = arith.constant 0 : index
    %c0_146 = arith.constant 0 : index
    %291 = vector.load %arg9[%c0_145, %c0_146] : memref<2x32xf32, #tpu.memory_space<vmem>>, vector<2x32xf32>
    tpu.vector_store %arg9[%c0_145, %c0_146], %290 {strides = array<i32>} : memref<2x32xf32, #tpu.memory_space<vmem>>, vector<2x32xf32>,
    %c0_147 = arith.constant 0 : index
    %c0_148 = arith.constant 0 : index
    %292 = vector.load %arg10[%c0_147, %c0_148] : memref<2x32xf32, #tpu.memory_space<vmem>>, vector<2x32xf32>
    tpu.vector_store %arg10[%c0_147, %c0_148], %288 {strides = array<i32>} : memref<2x32xf32, #tpu.memory_space<vmem>>, vector<2x32xf32>,
    %293 = arith.index_cast %c6_i32 : i32 to index
    %c0_149 = arith.constant 0 : index
    %c0_150 = arith.constant 0 : index
    %294 = vector.load %arg8[%293, %c0_149, %c0_150] : memref<8x2x32xf32, #tpu.memory_space<vmem>>, vector<1x2x32xf32>
    %295 = vector.shape_cast %294 : vector<1x2x32xf32> to vector<2x32xf32>
    %296 = vector.shape_cast %290 : vector<2x32xf32> to vector<1x2x32xf32>
    tpu.vector_store %arg8[%293, %c0_149, %c0_150], %296 {strides = array<i32>} : memref<8x2x32xf32, #tpu.memory_space<vmem>>, vector<1x2x32xf32>,
    %c7_i32 = arith.constant 7 : i32
    %297 = arith.index_cast %c7_i32 : i32 to index
    %c0_151 = arith.constant 0 : index
    %c0_152 = arith.constant 0 : index
    %298 = vector.load %arg7[%297, %c0_151, %c0_152] : memref<8x2x128xf32, #tpu.memory_space<vmem>>, vector<1x2x128xf32>
    %299 = vector.shape_cast %298 : vector<1x2x128xf32> to vector<2x128xf32>
    %c0_153 = arith.constant 0 : index
    %c0_154 = arith.constant 0 : index
    %300 = vector.load %arg9[%c0_153, %c0_154] : memref<2x32xf32, #tpu.memory_space<vmem>>, vector<2x32xf32>
    %c0_155 = arith.constant 0 : index
    %c0_156 = arith.constant 0 : index
    %301 = vector.load %arg3[%c0_155, %c0_156] : memref<32x128xf32, #tpu.memory_space<vmem>>, vector<32x128xf32>
    %cst_157 = arith.constant dense<0.000000e+00> : vector<2x128xf32>
    %302 = tpu.matmul %300, %301, %cst_157 {dimension_numbers = #tpu.dot_dimension_numbers<[1], [0], [0], [1], [0, 0, 1, 1], [], []>} : vector<2x32xf32>, vector<32x128xf32>, vector<2x128xf32> -> vector<2x128xf32>
    %303 = arith.addf %299, %302 : vector<2x128xf32>
    %304 = vector.extract_strided_slice %303 {offsets = [0, 0], sizes = [2, 32], strides = [1, 1]} : vector<2x128xf32> to vector<2x32xf32>
    %305 = arith.negf %304 : vector<2x32xf32>
    %306 = math.exp %305 : vector<2x32xf32>
    %cst_158 = arith.constant 1.000000e+00 : f32
    %307 = vector.broadcast %cst_158 : f32 to vector<2x32xf32>
    %308 = arith.addf %307, %306 : vector<2x32xf32>
    %309 = arith.divf %307, %308 : vector<2x32xf32>
    %310 = vector.extract_strided_slice %303 {offsets = [0, 32], sizes = [2, 32], strides = [1, 1]} : vector<2x128xf32> to vector<2x32xf32>
    %311 = arith.negf %310 : vector<2x32xf32>
    %312 = math.exp %311 : vector<2x32xf32>
    %cst_159 = arith.constant 1.000000e+00 : f32
    %313 = vector.broadcast %cst_159 : f32 to vector<2x32xf32>
    %314 = arith.addf %313, %312 : vector<2x32xf32>
    %315 = arith.divf %313, %314 : vector<2x32xf32>
    %316 = vector.extract_strided_slice %303 {offsets = [0, 64], sizes = [2, 32], strides = [1, 1]} : vector<2x128xf32> to vector<2x32xf32>
    %317 = math.tanh %316 : vector<2x32xf32>
    %318 = vector.extract_strided_slice %303 {offsets = [0, 96], sizes = [2, 32], strides = [1, 1]} : vector<2x128xf32> to vector<2x32xf32>
    %319 = arith.negf %318 : vector<2x32xf32>
    %320 = math.exp %319 : vector<2x32xf32>
    %cst_160 = arith.constant 1.000000e+00 : f32
    %321 = vector.broadcast %cst_160 : f32 to vector<2x32xf32>
    %322 = arith.addf %321, %320 : vector<2x32xf32>
    %323 = arith.divf %321, %322 : vector<2x32xf32>
    %c0_161 = arith.constant 0 : index
    %c0_162 = arith.constant 0 : index
    %324 = vector.load %arg10[%c0_161, %c0_162] : memref<2x32xf32, #tpu.memory_space<vmem>>, vector<2x32xf32>
    %325 = arith.mulf %309, %324 : vector<2x32xf32>
    %326 = arith.mulf %315, %317 : vector<2x32xf32>
    %327 = arith.addf %325, %326 : vector<2x32xf32>
    %328 = math.tanh %327 : vector<2x32xf32>
    %329 = arith.mulf %323, %328 : vector<2x32xf32>
    %c0_163 = arith.constant 0 : index
    %c0_164 = arith.constant 0 : index
    %330 = vector.load %arg9[%c0_163, %c0_164] : memref<2x32xf32, #tpu.memory_space<vmem>>, vector<2x32xf32>
    tpu.vector_store %arg9[%c0_163, %c0_164], %329 {strides = array<i32>} : memref<2x32xf32, #tpu.memory_space<vmem>>, vector<2x32xf32>,
    %c0_165 = arith.constant 0 : index
    %c0_166 = arith.constant 0 : index
    %331 = vector.load %arg10[%c0_165, %c0_166] : memref<2x32xf32, #tpu.memory_space<vmem>>, vector<2x32xf32>
    tpu.vector_store %arg10[%c0_165, %c0_166], %327 {strides = array<i32>} : memref<2x32xf32, #tpu.memory_space<vmem>>, vector<2x32xf32>,
    %332 = arith.index_cast %c7_i32 : i32 to index
    %c0_167 = arith.constant 0 : index
    %c0_168 = arith.constant 0 : index
    %333 = vector.load %arg8[%332, %c0_167, %c0_168] : memref<8x2x32xf32, #tpu.memory_space<vmem>>, vector<1x2x32xf32>
    %334 = vector.shape_cast %333 : vector<1x2x32xf32> to vector<2x32xf32>
    %335 = vector.shape_cast %329 : vector<2x32xf32> to vector<1x2x32xf32>
    tpu.vector_store %arg8[%332, %c0_167, %c0_168], %335 {strides = array<i32>} : memref<8x2x32xf32, #tpu.memory_space<vmem>>, vector<1x2x32xf32>,
    %c8_i32 = arith.constant 8 : i32
    %c0_169 = arith.constant 0 : index
    %c0_170 = arith.constant 0 : index
    %c0_171 = arith.constant 0 : index
    %336 = vector.load %arg8[%c0_169, %c0_170, %c0_171] : memref<8x2x32xf32, #tpu.memory_space<vmem>>, vector<8x1x32xf32>
    %337 = vector.shape_cast %336 : vector<8x1x32xf32> to vector<8x32xf32>
    %c0_172 = arith.constant 0 : index
    %c0_173 = arith.constant 0 : index
    %c0_174 = arith.constant 0 : index
    %338 = vector.load %arg5[%c0_172, %c0_173, %c0_174] : memref<2x8x32xf32, #tpu.memory_space<vmem>>, vector<1x8x32xf32>
    %339 = vector.shape_cast %338 : vector<1x8x32xf32> to vector<8x32xf32>
    %340 = vector.shape_cast %337 : vector<8x32xf32> to vector<1x8x32xf32>
    tpu.vector_store %arg5[%c0_172, %c0_173, %c0_174], %340 {strides = array<i32>} : memref<2x8x32xf32, #tpu.memory_space<vmem>>, vector<1x8x32xf32>,
    %c0_175 = arith.constant 0 : index
    %c1_176 = arith.constant 1 : index
    %c0_177 = arith.constant 0 : index
    %341 = vector.load %arg8[%c0_175, %c1_176, %c0_177] : memref<8x2x32xf32, #tpu.memory_space<vmem>>, vector<8x1x32xf32>
    %342 = vector.shape_cast %341 : vector<8x1x32xf32> to vector<8x32xf32>
    %c1_178 = arith.constant 1 : index
    %c0_179 = arith.constant 0 : index
    %c0_180 = arith.constant 0 : index
    %343 = vector.load %arg5[%c1_178, %c0_179, %c0_180] : memref<2x8x32xf32, #tpu.memory_space<vmem>>, vector<1x8x32xf32>
    %344 = vector.shape_cast %343 : vector<1x8x32xf32> to vector<8x32xf32>
    %345 = vector.shape_cast %342 : vector<8x32xf32> to vector<1x8x32xf32>
    tpu.vector_store %arg5[%c1_178, %c0_179, %c0_180], %345 {strides = array<i32>} : memref<2x8x32xf32, #tpu.memory_space<vmem>>, vector<1x8x32xf32>,
    %c0_181 = arith.constant 0 : index
    %c0_182 = arith.constant 0 : index
    %346 = vector.load %arg10[%c0_181, %c0_182] : memref<2x32xf32, #tpu.memory_space<vmem>>, vector<2x32xf32>
    %c0_183 = arith.constant 0 : index
    %c0_184 = arith.constant 0 : index
    %347 = vector.load %arg6[%c0_183, %c0_184] : memref<2x32xf32, #tpu.memory_space<vmem>>, vector<2x32xf32>
    tpu.vector_store %arg6[%c0_183, %c0_184], %346 {strides = array<i32>} : memref<2x32xf32, #tpu.memory_space<vmem>>, vector<2x32xf32>,
    return
  }
  func.func @transform_0(%arg0: i32) -> (i32, i32, i32) {
    %c0_i32 = arith.constant 0 : i32
    %c0_i32_0 = arith.constant 0 : i32
    %c0_i32_1 = arith.constant 0 : i32
    return %arg0, %c0_i32, %c0_i32_0 : i32, i32, i32
  }
  func.func @transform_1(%arg0: i32) -> (i32, i32) {
    %c0_i32 = arith.constant 0 : i32
    %c0_i32_0 = arith.constant 0 : i32
    %c0_i32_1 = arith.constant 0 : i32
    return %c0_i32, %c0_i32_0 : i32, i32
  }
  func.func @transform_2(%arg0: i32) -> (i32, i32) {
    %c0_i32 = arith.constant 0 : i32
    %c0_i32_0 = arith.constant 0 : i32
    %c0_i32_1 = arith.constant 0 : i32
    return %c0_i32, %c0_i32_0 : i32, i32
  }
  func.func @transform_3(%arg0: i32) -> (i32, i32) {
    %c0_i32 = arith.constant 0 : i32
    %c0_i32_0 = arith.constant 0 : i32
    %c0_i32_1 = arith.constant 0 : i32
    return %c0_i32, %c0_i32_0 : i32, i32
  }
  func.func @transform_4(%arg0: i32) -> (i32, i32, i32) {
    %c0_i32 = arith.constant 0 : i32
    %c0_i32_0 = arith.constant 0 : i32
    %c0_i32_1 = arith.constant 0 : i32
    return %arg0, %c0_i32, %c0_i32_0 : i32, i32, i32
  }
  func.func @transform_5(%arg0: i32) -> (i32, i32) {
    %c0_i32 = arith.constant 0 : i32
    %c0_i32_0 = arith.constant 0 : i32
    return %arg0, %c0_i32 : i32, i32
  }
}

</mosaic_0001>

<bundles_post_ra>
// kernel: lstm_forward.2
= control target key start
LH: loop header
LB: loop body
LE: loop exit
PB: predicated region body
PF: predicated region fallthrough
CT: control target
= control target key end

     0   :  { %11 = vsyncpa [#allocation7], 0  ;;  %s1972_s0 = inlined_call_operand.hbm [shape: f32[2,8,16], index: 0, kind: input, shape index: {}]   ;;  %s1973_s1 = inlined_call_operand.hbm [shape: f32[16,128], index: 1, kind: input, shape index: {}]   ;;  %s1974_s2 = inlined_call_operand.hbm [shape: f32[32,128], index: 2, kind: input, shape index: {}]   ;;  %s1975_s3 = inlined_call_operand.vmem [shape: f32[1,128], index: 3, kind: input, shape index: {}]   ;;  %s1976_s4 = inlined_call_operand.vmem [shape: f32[2,8,32], index: 4, kind: output, shape index: {0}]   ;;  %s1977_s5 = inlined_call_operand.vmem [shape: f32[2,32], index: 5, kind: output, shape index: {1}]  }
   0x1   :  { %12 = vsyncpa [#allocation9], 0  ;;  %s1734_s18 = smov [#allocation8]   ;;  %s1735_s20 = smov [#allocation6]  }
   0x2   :  { %s30_s19 = sshll.u32 %s1734_s18, 4  ;;  %s18_s21 = sshll.u32 %s1735_s20, 4  ;;  %s31_s19 = int_to_ptr.vmem [resolvable:$true] %s30_s19  ;;  %s1775_s21 = int_to_ptr.vmem [resolvable:$true] %s18_s21 }
   0x3   :  { %s1664_s24 = scalar_lea.hbm %s1973_s1, 256 }
   0x4   :  { %p1665_p0 = scmp.ne.s32.totalorder %s1973_s1, %s1664_s24  ;;  %p1668_p1 = scmp.lt.u32.totalorder %s1664_s24, %s1973_s1 }
   0x6   :  { %p1670_p2 = pnand %p1668_p1, %p1665_p0 }
   0x8   :  { %1673 = shalt.err (!%p1670_p2)
}
   0x9   :  { %s1674_s29 = scalar_lea.vmem %s31_s19, 256  ;;  %p1679_p4 = scmp.lt.s32.totalorder %s31_s19, %s31_s19 }
   0xa   :  { %p1675_p3 = scmp.ne.s32.totalorder %s31_s19, %s1674_s29  ;;  %p1680_p5 = scmp.lt.s32.totalorder %s1674_s29, %s1674_s29 }
   0xc   :  { %p1681_p6 = por %p1680_p5, %p1679_p4 }
   0xe   :  { %p1682_p7 = pnand %p1681_p6, %p1675_p3 }
  0x10   :  { %1685 = shalt.err (!%p1682_p7)
}
  0x11   :  { %s1736_s30 = smov 128   ;;  %s1737_s6 = smov 8  }
  0x12   :  { %36 = dma.hbm_to_vmem [thread:$0]  %s1973_s1, 256, %s31_s19, [#allocation9], %s1736_s30, %s1736_s30, %s1737_s6  }
  0x13   :  { %s1686_s11 = scalar_lea.hbm %s1972_s0, 256 }
  0x14   :  { %p1687_p8 = scmp.ne.s32.totalorder %s1972_s0, %s1686_s11  ;;  %p1690_p9 = scmp.lt.u32.totalorder %s1686_s11, %s1972_s0 }
  0x16   :  { %p1692_p10 = pnand %p1690_p9, %p1687_p8 }
  0x18   :  { %1695 = shalt.err (!%p1692_p10)
}
  0x19   :  { %s1696_s16 = scalar_lea.vmem %s1775_s21, 256  ;;  %p1701_p12 = scmp.lt.s32.totalorder %s1775_s21, %s1775_s21 }
  0x1a   :  { %p1697_p11 = scmp.ne.s32.totalorder %s1775_s21, %s1696_s16  ;;  %p1702_p13 = scmp.lt.s32.totalorder %s1696_s16, %s1696_s16 }
  0x1c   :  { %p1703_p0 = por %p1702_p13, %p1701_p12 }
  0x1e   :  { %p1704_p1 = pnand %p1703_p0, %p1697_p11 }
  0x20   :  { %1707 = shalt.err (!%p1704_p1)
}
  0x21   :  { %24 = dma.hbm_to_vmem [thread:$0]  %s1972_s0, 256, %s1775_s21, [#allocation7], %s1736_s30, %s1736_s30, %s1737_s6  }
  0x22   :  { %s1738_s18 = smov [#allocation10]   ;;  %s1708_s23 = scalar_lea.hbm %s1974_s2, 512 }
  0x23   :  { %s42_s19 = sshll.u32 %s1738_s18, 4  ;;  %p1709_p2 = scmp.ne.s32.totalorder %s1974_s2, %s1708_s23  ;;  %s43_s19 = int_to_ptr.vmem [resolvable:$true] %s42_s19 }
  0x24   :  { %p1712_p3 = scmp.lt.u32.totalorder %s1708_s23, %s1974_s2 }
  0x26   :  { %p1714_p4 = pnand %p1712_p3, %p1709_p2 }
  0x28   :  { %1717 = shalt.err (!%p1714_p4)
}
  0x29   :  { %s1718_s28 = scalar_lea.vmem %s43_s19, 512  ;;  %p1723_p6 = scmp.lt.s32.totalorder %s43_s19, %s43_s19 }
  0x2a   :  { %p1719_p5 = scmp.ne.s32.totalorder %s43_s19, %s1718_s28  ;;  %p1724_p7 = scmp.lt.s32.totalorder %s1718_s28, %s1718_s28 }
  0x2c   :  { %p1725_p8 = por %p1724_p7, %p1723_p6 }
  0x2e   :  { %p1726_p9 = pnand %p1725_p8, %p1719_p5 }
  0x30   :  { %1729 = shalt.err (!%p1726_p9)
}
  0x31   :  { %48 = dma.hbm_to_vmem [thread:$0]  %s1974_s2, 512, %s43_s19, [#allocation9], %s1736_s30, %s1736_s30, %s1737_s6  }
  0x32   :  { %1730 = dma.done.wait [#allocation7], 256  }
  0x33   :  { %1731 = vsyncadd [#allocation7], 4294967040 }
  0x34   :  { %1732 = dma.done.wait [#allocation9], 768  }
  0x35   :  { %1733 = vsyncadd [#allocation9], 4294966528  ;;  %v1739_v0 = vmov 0.0|0.0   ;;  %vm360_vm0 = vcmask 254976   ;;  %vm1740_vm1 = vmmov 0   ;;  %v1741_v1 = vmov 0.0  }
  0x36   :  { %1535 = vmatprep.subr.bf16.mxu0 %v1739_v0  ;;  %1538 = vmatprep.subr.bf16.mxu1 %v1739_v0  ;;  %361 = vst.msk [vmem:[#allocation4] sm:$0x3] %vm360_vm0, %v1741_v1  ;;  %362 = vst.msk [vmem:[#allocation5] sm:$0x3] %vm360_vm0, %v1741_v1  ;;  %v61_v2 = vld [vmem:[#allocation8] sm:$0xff]  ;;  %v62_v3 = vld [vmem:[#allocation8 + $0x8] sm:$0xff]  ;;  %v149_v16 = vlaneseq }
  0x37   :  { %1437 = vmatprep.mubr.msk.f32.mxu0 %vm1740_vm1, %v1741_v1  ;;  %1444 = vmatprep.mubr.msk.f32.mxu1 %vm1740_vm1, %v1741_v1  ;;  %v1536_v4 = vpack.c.bf16 %v62_v3, %v61_v2  ;;  %v365_v5 = vld [vmem:[#allocation10] sm:$0xff]  ;;  %v366_v6 = vld [vmem:[#allocation10 + $0x8] sm:$0xff]  ;;  %vm70_vm2 = vcmask 130048   ;;  %v367_v10 = vld [vmem:[#allocation10 + $0x10] sm:$0xff]  ;;  %vm369_vm3 = vcmask 261120   ;;  %s1744_s30 = smov 32  }
  0x38   :  { %v60_v7 = vld [vmem:[#allocation6] sm:$0xff]  ;;  %v211_v8 = vld [vmem:[#allocation6 + $0x8] sm:$0xff]  ;;  %v1837_v9 = vpack.c.bf16 %v366_v6, %v365_v5  ;;  %v368_v11 = vld [vmem:[#allocation10 + $0x18] sm:$0xff]  ;;  %v1742_v14 = vmov 1966171168   ;;  %v150_v18 = vshrl.u32 %v149_v16, 7 }
  0x39   :  { %1537 = vmatpush3.bf16.msra.mxu0 %v1536_v4  ;;  %1540 = vmatpush3.bf16.msra.mxu1 %v1536_v4  ;;  %v1842_v12 = vpack.c.bf16 %v368_v11, %v367_v10  ;;  %v147_v15 = vunpack.c.l.s4 %v1742_v14  ;;  %v1358_v19 = vld [vmem:[%s1975_s3] ss:$0 sm:$0xff]  ;;  %s1743_s3 = smov 96   ;;  %vm1291_vm4 = vcmask 1041409   ;;  %vm1294_vm5 = vcmask 1042434  }
  0x3a   :  { %1541 = vmatprep.subr.bf16.mxu0 %v1739_v0  ;;  %1547 = vmatprep.subr.bf16.mxu1 %v1739_v0  ;;  %vm1297_vm6 = vcmask 1043459   ;;  %vm1300_vm7 = vcmask 1044484   ;;  %vm1303_vm8 = vcmask 1045509   ;;  %vm1306_vm9 = vcmask 1046534  }
  0x3b   :  { %v148_v17 = vunpack.c.0.s8 %v147_v15  ;;  %vm1309_vm10 = vcmask 1047559  }
  0x3c   :  { %1438 = vmatmul.mubr.msk.f32.vlgmr.msra.gmra.mrb[0].mxu0 %vm70_vm2, %v60_v7  ;;  %1445 = vmatmul.mubr.msk.f32.vlgmr.msra.gmra.mrb[0].mxu1 %vm70_vm2, %v211_v8 }
  0x3d   :  { %1543 = vmatpush3.bf16.msra.mxu0 %v1837_v9  ;;  %1455 = vmatprep.mubr.msk.f32.mxu0 %vm1740_vm1, %v1741_v1  ;;  %v364_v13 = vld [vmem:[#allocation4] sm:$0x3]  ;;  %v151_v20 = vsub.s32 %v148_v17, %v150_v18  ;;  %v451_v2 = vld [vmem:[#allocation5] sm:$0x3] }
  0x3e   :  { %1544 = vmatprep.subr.bf16.mxu0 %v1739_v0  ;;  %1549 = vmatpush3.bf16.msra.mxu1 %v1837_v9 }
  0x3f   :  { %1550 = vmatprep.subr.bf16.mxu1 %v1739_v0  ;;  %1466 = vmatprep.mubr.msk.f32.mxu1 %vm1740_vm1, %v1741_v1 }
  0x41   :  { %1546 = vmatpush3.bf16.msra.mxu0 %v1842_v12 }
  0x42   :  { %1552 = vmatpush3.bf16.msra.mxu1 %v1842_v12  ;;  %1553 = vmatprep.subr.bf16.mxu0 %v1739_v0 }
  0x43   :  { %1559 = vmatprep.subr.bf16.mxu1 %v1739_v0 }
  0x44   :  { %1456 = vmatmul.mubr.msk.f32.vlgmr.msra.gmra.mrb[2].mxu0 %vm369_vm3, %v364_v13 }
  0x45   :  { %1555 = vmatpush3.bf16.msra.mxu0 %v1837_v9  ;;  %1477 = vmatprep.mubr.msk.f32.mxu0 %vm1740_vm1, %v1741_v1 }
  0x46   :  { %1556 = vmatprep.subr.bf16.mxu0 %v1739_v0 }
  0x49   :  { %1558 = vmatpush3.bf16.msra.mxu0 %v1842_v12 }
  0x4a   :  { %1565 = vmatprep.subr.bf16.mxu0 %v1739_v0 }
 0x10f   :  { %v140_v21 = vpop.f32.mrb[0].mxu0  ;;  %v290_v22 = vpop.f32.mrb[0].mxu1 }
 0x110   :  { %v141_v23 = vadd.f32 %v1358_v19, %v140_v21  ;;  %v291_v24 = vadd.f32 %v1358_v19, %v290_v22  ;;  %v1439_v25 = vpop.f32.mrb[1].mxu0  ;;  %v1446_v26 = vpop.f32.mrb[1].mxu1 }
 0x112   :  { %v145_v27 = vcombine.high %v141_v23, %v141_v23  ;;  %v152_v28 = vrot.slane %v141_v23, %v151_v20  ;;  %v295_v29 = vcombine.high %v291_v24, %v291_v24  ;;  %v302_v30 = vrot.slane %v291_v24, %v151_v20 }
 0x114   :  { %v159_v31 = vrot.slane %v145_v27, %v151_v20  ;;  %v160_v32 = vcombine.high %v152_v28, %v152_v28  ;;  %v168_v33 = vrot.slane %v152_v28, %v151_v20  ;;  %1360 = vst.sshfl [vmem:[#allocation2] sm:$0x1 pattern:$0x73625140] %v152_v28  ;;  %v309_v34 = vrot.slane %v295_v29, %v151_v20 }
 0x115   :  { %1366 = vst.sshfl [vmem:[#allocation2 + $0x1] sm:$0x1 pattern:$0x73625140] %v302_v30  ;;  %v310_v35 = vcombine.high %v302_v30, %v302_v30  ;;  %v318_v36 = vrot.slane %v302_v30, %v151_v20 }
 0x116   :  { %v161_v37 = vcombine.high %v159_v31, %v159_v31  ;;  %v175_v38 = vrot.slane %v159_v31, %v151_v20  ;;  %v182_v39 = vrot.slane %v160_v32, %v151_v20  ;;  %v190_v40 = vcombine.high %v168_v33, %v168_v33  ;;  %1361 = vst.sshfl [vmem:[#allocation2 + $0x2] sm:$0x1 pattern:$0x73625140] %v160_v32 }
 0x117   :  { %1362 = vst.sshfl [vmem:[#allocation2 + $0x8] sm:$0x1 pattern:$0x73625140] %v159_v31  ;;  %v311_v41 = vcombine.high %v309_v34, %v309_v34  ;;  %v325_v42 = vrot.slane %v309_v34, %v151_v20  ;;  %v332_v43 = vrot.slane %v310_v35, %v151_v20  ;;  %v340_v44 = vcombine.high %v318_v36, %v318_v36  ;;  %v439_v45 = vpop.f32.mrb[2].mxu0 }
 0x118   :  { %1368 = vst.sshfl [vmem:[#allocation2 + $0x9] sm:$0x1 pattern:$0x73625140] %v309_v34  ;;  %v189_v46 = vrot.slane %v161_v37, %v151_v20  ;;  %v191_v47 = vcombine.high %v175_v38, %v175_v38  ;;  %v192_v48 = vcombine.high %v182_v39, %v182_v39  ;;  %204 = vst [vmem:[#allocation2 + $0x4] sm:$0x1] %v190_v40 }
 0x119   :  { %1367 = vst.sshfl [vmem:[#allocation2 + $0x3] sm:$0x1 pattern:$0x73625140] %v310_v35  ;;  %v1457_v49 = vpop.f32.mrb[3].mxu0  ;;  %v339_v50 = vrot.slane %v311_v41, %v151_v20  ;;  %v341_v51 = vcombine.high %v325_v42, %v325_v42  ;;  %v342_v52 = vcombine.high %v332_v43, %v332_v43 }
 0x11a   :  { %1363 = vst.sshfl [vmem:[#allocation2 + $0xa] sm:$0x1 pattern:$0x73625140] %v161_v37  ;;  %354 = vst [vmem:[#allocation2 + $0x5] sm:$0x1] %v340_v44  ;;  %v193_v53 = vcombine.high %v189_v46, %v189_v46 }
 0x11b   :  { %1369 = vst.sshfl [vmem:[#allocation2 + $0xb] sm:$0x1 pattern:$0x73625140] %v311_v41  ;;  %205 = vst [vmem:[#allocation2 + $0x6] sm:$0x1] %v192_v48  ;;  %v343_v54 = vcombine.high %v339_v50, %v339_v50 }
 0x11c   :  { %208 = vst [vmem:[#allocation2 + $0xc] sm:$0x1] %v191_v47  ;;  %355 = vst [vmem:[#allocation2 + $0x7] sm:$0x1] %v342_v52  ;;  %v363_v55 = vld [vmem:[#allocation2] sm:$0x3] }
 0x11d   :  { %358 = vst [vmem:[#allocation2 + $0xd] sm:$0x1] %v341_v51  ;;  %209 = vst [vmem:[#allocation2 + $0xe] sm:$0x1] %v193_v53  ;;  %v443_v56 = vadd.f32 %v439_v45, %v363_v55 }
 0x11e   :  { %359 = vst [vmem:[#allocation2 + $0xf] sm:$0x1] %v343_v54 }
 0x11f   :  { %1600 = vtanh.f32 %v443_v56  ;;  %v1371_v58 = vmul.f32 -1.442695, %v443_v56 }
 0x120   :  { %v477_v13 = vld [vmem:[#allocation2 + $0x2] sm:$0x3] }
 0x121   :  { %1602 = vpow2.f32 %v1371_v58  ;;  %v591_v33 = vld [vmem:[#allocation2 + $0x4] sm:$0x3] }
 0x123   :  { %v705_v53 = vld [vmem:[#allocation2 + $0x6] sm:$0x3] }
 0x129   :  { %v1601_v57 = vpop.eup %1600 }
 0x12a   :  { %454 = vrot.lane.b32.xlu0 %v1601_v57, %s1743_s3 }
 0x12b   :  { %v1603_v59 = vpop.eup %1602 }
 0x12c   :  { %v447_v60 = vadd.f32 1.0, %v1603_v59 }
 0x12e   :  { %1604 = vrcp.f32 %v447_v60 }
 0x138   :  { %v1605_v61 = vpop.eup %1604 }
 0x139   :  { %v452_v3 = vmul.f32 %v1605_v61, %v451_v2 }
 0x19c   :  { %v455_v62 = vpop.permute.xlu0 %454 }
 0x19d   :  { %v457_v63 = vmul.f32 %v1605_v61, %v455_v62 }
 0x19f   :  { %459 = vrot.lane.b32.xlu0 %v457_v63, %s1743_s3 }
 0x211   :  { %v460_v4 = vpop.permute.xlu0 %459 }
 0x212   :  { %v462_v5 = vadd.f32 %v460_v4, %v452_v3 }
 0x214   :  { %1606 = vtanh.f32 %v462_v5  ;;  %474 = vst.msk [vmem:[#allocation5] sm:$0x3] %vm360_vm0, %v462_v5 }
 0x21b   :  { %v564_v24 = vld [vmem:[#allocation5] sm:$0x3] }
 0x21e   :  { %v1607_v6 = vpop.eup %1606 }
 0x21f   :  { %465 = vrot.lane.b32.xlu1 %v1607_v6, %s1743_s3 }
 0x291   :  { %v466_v7 = vpop.permute.xlu1 %465 }
 0x292   :  { %v468_v8 = vmul.f32 %v1605_v61, %v466_v7 }
 0x294   :  { %470 = vrot.lane.b32.xlu1 %v468_v8, %s1744_s30 }
 0x306   :  { %v471_v10 = vpop.permute.xlu1 %470 }
 0x307   :  { %473 = vst.msk [vmem:[#allocation4] sm:$0x3] %vm360_vm0, %v471_v10  ;;  %475 = vst.msk [vmem:[#allocation3] sm:$0x3] %vm360_vm0, %v471_v10 }
 0x30e   :  { %v478_v11 = vld [vmem:[#allocation4] sm:$0x3] }
 0x30f   :  { %1467 = vmatmul.mubr.msk.f32.vlgmr.msra.gmra.mrb[2].mxu1 %vm369_vm3, %v478_v11 }
 0x310   :  { %1561 = vmatpush3.bf16.msra.mxu1 %v1837_v9  ;;  %1488 = vmatprep.mubr.msk.f32.mxu1 %vm1740_vm1, %v1741_v1 }
 0x311   :  { %1562 = vmatprep.subr.bf16.mxu1 %v1739_v0 }
 0x314   :  { %1564 = vmatpush3.bf16.msra.mxu1 %v1842_v12 }
 0x315   :  { %1571 = vmatprep.subr.bf16.mxu1 %v1739_v0 }
 0x3e2   :  { %v552_v14 = vpop.f32.mrb[2].mxu1 }
 0x3e3   :  { %v556_v15 = vadd.f32 %v552_v14, %v477_v13  ;;  %v1468_v16 = vpop.f32.mrb[3].mxu1  ;;  %v819_v13 = vld [vmem:[#allocation2 + $0x8] sm:$0x3] }
 0x3e5   :  { %1608 = vtanh.f32 %v556_v15  ;;  %v1373_v18 = vmul.f32 -1.442695, %v556_v15 }
 0x3e7   :  { %1610 = vpow2.f32 %v1373_v18 }
 0x3ef   :  { %v1609_v17 = vpop.eup %1608 }
 0x3f0   :  { %567 = vrot.lane.b32.xlu0 %v1609_v17, %s1743_s3 }
 0x3f1   :  { %v1611_v19 = vpop.eup %1610 }
 0x3f2   :  { %v560_v20 = vadd.f32 1.0, %v1611_v19 }
 0x3f4   :  { %1612 = vrcp.f32 %v560_v20 }
 0x3fe   :  { %v1613_v21 = vpop.eup %1612 }
 0x3ff   :  { %v565_v25 = vmul.f32 %v1613_v21, %v564_v24 }
 0x462   :  { %v568_v22 = vpop.permute.xlu0 %567 }
 0x463   :  { %v570_v23 = vmul.f32 %v1613_v21, %v568_v22 }
 0x465   :  { %572 = vrot.lane.b32.xlu1 %v570_v23, %s1743_s3 }
 0x4d7   :  { %v573_v26 = vpop.permute.xlu1 %572 }
 0x4d8   :  { %v575_v27 = vadd.f32 %v573_v26, %v565_v25 }
 0x4da   :  { %1614 = vtanh.f32 %v575_v27  ;;  %587 = vst.msk [vmem:[#allocation5] sm:$0x3] %vm360_vm0, %v575_v27 }
 0x4e1   :  { %v678_v44 = vld [vmem:[#allocation5] sm:$0x3] }
 0x4e4   :  { %v1615_v28 = vpop.eup %1614 }
 0x4e5   :  { %578 = vrot.lane.b32.xlu0 %v1615_v28, %s1743_s3 }
 0x557   :  { %v579_v29 = vpop.permute.xlu0 %578 }
 0x558   :  { %v581_v30 = vmul.f32 %v1613_v21, %v579_v29 }
 0x55a   :  { %583 = vrot.lane.b32.xlu1 %v581_v30, %s1744_s30 }
 0x5cc   :  { %v584_v31 = vpop.permute.xlu1 %583 }
 0x5cd   :  { %586 = vst.msk [vmem:[#allocation4] sm:$0x3] %vm360_vm0, %v584_v31  ;;  %589 = vst.msk [vmem:[#allocation3 + $0x2] sm:$0x3] %vm360_vm0, %v584_v31 }
 0x5d4   :  { %v592_v32 = vld [vmem:[#allocation4] sm:$0x3] }
 0x5d5   :  { %1478 = vmatmul.mubr.msk.f32.vlgmr.msra.gmra.mrb[4].mxu0 %vm369_vm3, %v592_v32 }
 0x5d6   :  { %1567 = vmatpush3.bf16.msra.mxu0 %v1837_v9  ;;  %1499 = vmatprep.mubr.msk.f32.mxu0 %vm1740_vm1, %v1741_v1 }
 0x5d7   :  { %1568 = vmatprep.subr.bf16.mxu0 %v1739_v0 }
 0x5da   :  { %1570 = vmatpush3.bf16.msra.mxu0 %v1842_v12 }
 0x5db   :  { %1577 = vmatprep.subr.bf16.mxu0 %v1739_v0 }
 0x6a8   :  { %v666_v34 = vpop.f32.mrb[4].mxu0 }
 0x6a9   :  { %v670_v35 = vadd.f32 %v666_v34, %v591_v33  ;;  %v1479_v36 = vpop.f32.mrb[5].mxu0  ;;  %v933_v33 = vld [vmem:[#allocation2 + $0xa] sm:$0x3] }
 0x6ab   :  { %1616 = vtanh.f32 %v670_v35  ;;  %v1375_v38 = vmul.f32 -1.442695, %v670_v35 }
 0x6ad   :  { %1618 = vpow2.f32 %v1375_v38 }
 0x6b5   :  { %v1617_v37 = vpop.eup %1616 }
 0x6b6   :  { %681 = vrot.lane.b32.xlu0 %v1617_v37, %s1743_s3 }
 0x6b7   :  { %v1619_v39 = vpop.eup %1618 }
 0x6b8   :  { %v674_v40 = vadd.f32 1.0, %v1619_v39 }
 0x6ba   :  { %1620 = vrcp.f32 %v674_v40 }
 0x6c4   :  { %v1621_v41 = vpop.eup %1620 }
 0x6c5   :  { %v679_v45 = vmul.f32 %v1621_v41, %v678_v44 }
 0x728   :  { %v682_v42 = vpop.permute.xlu0 %681 }
 0x729   :  { %v684_v43 = vmul.f32 %v1621_v41, %v682_v42 }
 0x72b   :  { %686 = vrot.lane.b32.xlu1 %v684_v43, %s1743_s3 }
 0x79d   :  { %v687_v46 = vpop.permute.xlu1 %686 }
 0x79e   :  { %v689_v47 = vadd.f32 %v687_v46, %v679_v45 }
 0x7a0   :  { %1622 = vtanh.f32 %v689_v47  ;;  %701 = vst.msk [vmem:[#allocation5] sm:$0x3] %vm360_vm0, %v689_v47 }
 0x7a7   :  { %v792_v2 = vld [vmem:[#allocation5] sm:$0x3] }
 0x7aa   :  { %v1623_v48 = vpop.eup %1622 }
 0x7ab   :  { %692 = vrot.lane.b32.xlu0 %v1623_v48, %s1743_s3 }
 0x81d   :  { %v693_v49 = vpop.permute.xlu0 %692 }
 0x81e   :  { %v695_v50 = vmul.f32 %v1621_v41, %v693_v49  ;;  %v1047_v49 = vld [vmem:[#allocation2 + $0xc] sm:$0x3] }
 0x820   :  { %697 = vrot.lane.b32.xlu1 %v695_v50, %s1744_s30 }
 0x892   :  { %v698_v51 = vpop.permute.xlu1 %697 }
 0x893   :  { %700 = vst.msk [vmem:[#allocation4] sm:$0x3] %vm360_vm0, %v698_v51  ;;  %703 = vst.msk [vmem:[#allocation3 + $0x4] sm:$0x3] %vm360_vm0, %v698_v51 }
 0x89a   :  { %v706_v52 = vld [vmem:[#allocation4] sm:$0x3] }
 0x89b   :  { %1489 = vmatmul.mubr.msk.f32.vlgmr.msra.gmra.mrb[4].mxu1 %vm369_vm3, %v706_v52 }
 0x89c   :  { %1573 = vmatpush3.bf16.msra.mxu1 %v1837_v9  ;;  %1510 = vmatprep.mubr.msk.f32.mxu1 %vm1740_vm1, %v1741_v1 }
 0x89d   :  { %1574 = vmatprep.subr.bf16.mxu1 %v1739_v0 }
 0x8a0   :  { %1576 = vmatpush3.bf16.msra.mxu1 %v1842_v12 }
 0x8a1   :  { %1583 = vmatprep.subr.bf16.mxu1 %v1739_v0 }
 0x96e   :  { %v780_v54 = vpop.f32.mrb[4].mxu1 }
 0x96f   :  { %v784_v55 = vadd.f32 %v780_v54, %v705_v53  ;;  %v1490_v56 = vpop.f32.mrb[5].mxu1 }
 0x971   :  { %1624 = vtanh.f32 %v784_v55  ;;  %v1377_v58 = vmul.f32 -1.442695, %v784_v55 }
 0x973   :  { %1626 = vpow2.f32 %v1377_v58 }
 0x97b   :  { %v1625_v57 = vpop.eup %1624 }
 0x97c   :  { %795 = vrot.lane.b32.xlu0 %v1625_v57, %s1743_s3 }
 0x97d   :  { %v1627_v59 = vpop.eup %1626 }
 0x97e   :  { %v788_v60 = vadd.f32 1.0, %v1627_v59 }
 0x980   :  { %1628 = vrcp.f32 %v788_v60 }
 0x98a   :  { %v1629_v61 = vpop.eup %1628 }
 0x98b   :  { %v793_v3 = vmul.f32 %v1629_v61, %v792_v2 }
 0x9ee   :  { %v796_v62 = vpop.permute.xlu0 %795 }
 0x9ef   :  { %v798_v63 = vmul.f32 %v1629_v61, %v796_v62 }
 0x9f1   :  { %800 = vrot.lane.b32.xlu1 %v798_v63, %s1743_s3 }
 0xa63   :  { %v801_v4 = vpop.permute.xlu1 %800 }
 0xa64   :  { %v803_v5 = vadd.f32 %v801_v4, %v793_v3 }
 0xa66   :  { %1630 = vtanh.f32 %v803_v5  ;;  %815 = vst.msk [vmem:[#allocation5] sm:$0x3] %vm360_vm0, %v803_v5 }
 0xa6d   :  { %v906_v24 = vld [vmem:[#allocation5] sm:$0x3] }
 0xa70   :  { %v1631_v6 = vpop.eup %1630 }
 0xa71   :  { %806 = vrot.lane.b32.xlu0 %v1631_v6, %s1743_s3 }
 0xae3   :  { %v807_v7 = vpop.permute.xlu0 %806 }
 0xae4   :  { %v809_v8 = vmul.f32 %v1629_v61, %v807_v7  ;;  %v1161_v7 = vld [vmem:[#allocation2 + $0xe] sm:$0x3] }
 0xae6   :  { %811 = vrot.lane.b32.xlu1 %v809_v8, %s1744_s30 }
 0xb58   :  { %v812_v10 = vpop.permute.xlu1 %811 }
 0xb59   :  { %814 = vst.msk [vmem:[#allocation4] sm:$0x3] %vm360_vm0, %v812_v10  ;;  %817 = vst.msk [vmem:[#allocation3 + $0x6] sm:$0x3] %vm360_vm0, %v812_v10 }
 0xb60   :  { %v820_v11 = vld [vmem:[#allocation4] sm:$0x3] }
 0xb61   :  { %1500 = vmatmul.mubr.msk.f32.vlgmr.msra.gmra.mrb[6].mxu0 %vm369_vm3, %v820_v11 }
 0xb62   :  { %1579 = vmatpush3.bf16.msra.mxu0 %v1837_v9  ;;  %1521 = vmatprep.mubr.msk.f32.mxu0 %vm1740_vm1, %v1741_v1 }
 0xb63   :  { %1580 = vmatprep.subr.bf16.mxu0 %v1739_v0 }
 0xb66   :  { %1582 = vmatpush3.bf16.msra.mxu0 %v1842_v12 }
 0xc34   :  { %v894_v14 = vpop.f32.mrb[6].mxu0 }
 0xc35   :  { %v898_v15 = vadd.f32 %v894_v14, %v819_v13  ;;  %v1501_v16 = vpop.f32.mrb[7].mxu0 }
 0xc37   :  { %1632 = vtanh.f32 %v898_v15  ;;  %v1379_v18 = vmul.f32 -1.442695, %v898_v15 }
 0xc39   :  { %1634 = vpow2.f32 %v1379_v18 }
 0xc41   :  { %v1633_v17 = vpop.eup %1632 }
 0xc42   :  { %909 = vrot.lane.b32.xlu0 %v1633_v17, %s1743_s3 }
 0xc43   :  { %v1635_v19 = vpop.eup %1634 }
 0xc44   :  { %v902_v20 = vadd.f32 1.0, %v1635_v19 }
 0xc46   :  { %1636 = vrcp.f32 %v902_v20 }
 0xc50   :  { %v1637_v21 = vpop.eup %1636 }
 0xc51   :  { %v907_v25 = vmul.f32 %v1637_v21, %v906_v24 }
 0xcb4   :  { %v910_v22 = vpop.permute.xlu0 %909 }
 0xcb5   :  { %v912_v23 = vmul.f32 %v1637_v21, %v910_v22 }
 0xcb7   :  { %914 = vrot.lane.b32.xlu1 %v912_v23, %s1743_s3 }
 0xd29   :  { %v915_v26 = vpop.permute.xlu1 %914 }
 0xd2a   :  { %v917_v27 = vadd.f32 %v915_v26, %v907_v25 }
 0xd2c   :  { %1638 = vtanh.f32 %v917_v27  ;;  %929 = vst.msk [vmem:[#allocation5] sm:$0x3] %vm360_vm0, %v917_v27 }
 0xd36   :  { %v1639_v28 = vpop.eup %1638 }
 0xd37   :  { %920 = vrot.lane.b32.xlu0 %v1639_v28, %s1743_s3  ;;  %v1275_v28 = vld [vmem:[#allocation3 + $0x2] sm:$0x1] }
 0xda9   :  { %v921_v29 = vpop.permute.xlu0 %920 }
 0xdaa   :  { %v923_v30 = vmul.f32 %v1637_v21, %v921_v29  ;;  %v1314_v29 = vld [vmem:[#allocation3 + $0x3] sm:$0x1] }
 0xdac   :  { %925 = vrot.lane.b32.xlu1 %v923_v30, %s1744_s30  ;;  %v1276_v30 = vld [vmem:[#allocation3 + $0x4] sm:$0x1] }
 0xe1e   :  { %v926_v31 = vpop.permute.xlu1 %925 }
 0xe1f   :  { %928 = vst.msk [vmem:[#allocation4] sm:$0x3] %vm360_vm0, %v926_v31  ;;  %931 = vst.msk [vmem:[#allocation3 + $0x8] sm:$0x3] %vm360_vm0, %v926_v31  ;;  %v1290_v31 = vrot.slane %v1275_v28, 7 }
 0xe26   :  { %v934_v32 = vld [vmem:[#allocation4] sm:$0x3] }
 0xe27   :  { %1511 = vmatmul.mubr.msk.f32.vlgmr.msra.gmra.mrb[6].mxu1 %vm369_vm3, %v934_v32  ;;  %v1315_v32 = vld [vmem:[#allocation3 + $0x5] sm:$0x1] }
 0xe28   :  { %1585 = vmatpush3.bf16.msra.mxu1 %v1837_v9  ;;  %1532 = vmatprep.mubr.msk.f32.mxu1 %vm1740_vm1, %v1741_v1 }
 0xe29   :  { %1586 = vmatprep.subr.bf16.mxu1 %v1739_v0  ;;  %v1020_v0 = vld [vmem:[#allocation5] sm:$0x3] }
 0xe2c   :  { %1588 = vmatpush3.bf16.msra.mxu1 %v1842_v12 }
 0xefa   :  { %v1008_v34 = vpop.f32.mrb[6].mxu1 }
 0xefb   :  { %v1012_v35 = vadd.f32 %v1008_v34, %v933_v33  ;;  %v1512_v36 = vpop.f32.mrb[7].mxu1  ;;  %v1274_v33 = vld [vmem:[#allocation3] sm:$0x1]  ;;  %v1329_v34 = vrot.slane %v1314_v29, 7 }
 0xefc   :  { %v1316_v36 = vld [vmem:[#allocation3 + $0x7] sm:$0x1] }
 0xefd   :  { %1640 = vtanh.f32 %v1012_v35  ;;  %v1381_v38 = vmul.f32 -1.442695, %v1012_v35  ;;  %v1277_v35 = vld [vmem:[#allocation3 + $0x6] sm:$0x1] }
 0xeff   :  { %1642 = vpow2.f32 %v1381_v38  ;;  %v1313_v38 = vld [vmem:[#allocation3 + $0x1] sm:$0x1] }
 0xf07   :  { %v1641_v37 = vpop.eup %1640 }
 0xf08   :  { %1023 = vrot.lane.b32.xlu0 %v1641_v37, %s1743_s3 }
 0xf09   :  { %v1643_v39 = vpop.eup %1642 }
 0xf0a   :  { %v1016_v40 = vadd.f32 1.0, %v1643_v39  ;;  %v1293_v39 = vrot.slane %v1276_v30, 6 }
 0xf0c   :  { %1644 = vrcp.f32 %v1016_v40  ;;  %v1278_v40 = vld [vmem:[#allocation3 + $0x8] sm:$0x1] }
 0xf16   :  { %v1645_v9 = vpop.eup %1644 }
 0xf17   :  { %v1021_v12 = vmul.f32 %v1645_v9, %v1020_v0 }
 0xf7a   :  { %v1024_v41 = vpop.permute.xlu0 %1023 }
 0xf7b   :  { %v1026_v1 = vmul.f32 %v1645_v9, %v1024_v41  ;;  %v1331_v41 = vrot.slane %v1315_v32, 6 }
 0xf7d   :  { %1028 = vrot.lane.b32.xlu1 %v1026_v1, %s1743_s3 }
 0xfef   :  { %v1029_v42 = vpop.permute.xlu1 %1028 }
 0xff0   :  { %v1031_v43 = vadd.f32 %v1029_v42, %v1021_v12  ;;  %v1292_v12 = vsel %vm1291_vm4, %v1290_v31, %v1274_v33  ;;  %v1296_v42 = vrot.slane %v1277_v35, 5 }
 0xff2   :  { %1646 = vtanh.f32 %v1031_v43  ;;  %1043 = vst.msk [vmem:[#allocation5] sm:$0x3] %vm360_vm0, %v1031_v43  ;;  %v1333_v43 = vrot.slane %v1316_v36, 5 }
 0xff9   :  { %v1134_v60 = vld [vmem:[#allocation5] sm:$0x3] }
 0xffc   :  { %v1647_v44 = vpop.eup %1646 }
 0xffd   :  { %1034 = vrot.lane.b32.xlu0 %v1647_v44, %s1743_s3 }
0x106f   :  { %v1035_v45 = vpop.permute.xlu0 %1034 }
0x1070   :  { %v1037_v46 = vmul.f32 %v1645_v9, %v1035_v45  ;;  %v1317_v9 = vld [vmem:[#allocation3 + $0x9] sm:$0x1] }
0x1072   :  { %1039 = vrot.lane.b32.xlu1 %v1037_v46, %s1744_s30  ;;  %v1330_v46 = vsel %vm1291_vm4, %v1329_v34, %v1313_v38 }
0x10e4   :  { %v1040_v47 = vpop.permute.xlu1 %1039 }
0x10e5   :  { %1042 = vst.msk [vmem:[#allocation4] sm:$0x3] %vm360_vm0, %v1040_v47  ;;  %1045 = vst.msk [vmem:[#allocation3 + $0xa] sm:$0x3] %vm360_vm0, %v1040_v47  ;;  %v1299_v47 = vrot.slane %v1278_v40, 4 }
0x10ec   :  { %v1048_v48 = vld [vmem:[#allocation4] sm:$0x3]  ;;  %v1279_v1 = vld [vmem:[#allocation3 + $0xa] sm:$0x1]  ;;  %v1318_v0 = vld [vmem:[#allocation3 + $0xb] sm:$0x1] }
0x10ed   :  { %1522 = vmatmul.mubr.msk.f32.vlgmr.msra.gmra.mrb[8].mxu0 %vm369_vm3, %v1048_v48  ;;  %v1335_v48 = vrot.slane %v1317_v9, 4 }
0x11c0   :  { %v1122_v50 = vpop.f32.mrb[8].mxu0 }
0x11c1   :  { %v1126_v51 = vadd.f32 %v1122_v50, %v1047_v49  ;;  %v1523_v52 = vpop.f32.mrb[9].mxu0  ;;  %v1295_v49 = vsel %vm1294_vm5, %v1293_v39, %v1292_v12  ;;  %v1302_v50 = vrot.slane %v1279_v1, 3 }
0x11c2   :  { %v1332_v52 = vsel %vm1294_vm5, %v1331_v41, %v1330_v46 }
0x11c3   :  { %1648 = vtanh.f32 %v1126_v51  ;;  %v1383_v54 = vmul.f32 -1.442695, %v1126_v51  ;;  %v1337_v51 = vrot.slane %v1318_v0, 3 }
0x11c5   :  { %1650 = vpow2.f32 %v1383_v54 }
0x11cd   :  { %v1649_v53 = vpop.eup %1648 }
0x11ce   :  { %1137 = vrot.lane.b32.xlu0 %v1649_v53, %s1743_s3 }
0x11cf   :  { %v1651_v55 = vpop.eup %1650 }
0x11d0   :  { %v1130_v56 = vadd.f32 1.0, %v1651_v55  ;;  %v1298_v55 = vsel %vm1297_vm6, %v1296_v42, %v1295_v49 }
0x11d2   :  { %1652 = vrcp.f32 %v1130_v56  ;;  %v1334_v56 = vsel %vm1297_vm6, %v1333_v43, %v1332_v52 }
0x11dc   :  { %v1653_v57 = vpop.eup %1652 }
0x11dd   :  { %v1135_v61 = vmul.f32 %v1653_v57, %v1134_v60 }
0x1240   :  { %v1138_v58 = vpop.permute.xlu0 %1137 }
0x1241   :  { %v1140_v59 = vmul.f32 %v1653_v57, %v1138_v58  ;;  %v1336_v58 = vsel %vm1300_vm7, %v1335_v48, %v1334_v56 }
0x1243   :  { %1142 = vrot.lane.b32.xlu1 %v1140_v59, %s1743_s3 }
0x12b5   :  { %v1143_v62 = vpop.permute.xlu1 %1142 }
0x12b6   :  { %v1145_v63 = vadd.f32 %v1143_v62, %v1135_v61  ;;  %v1338_v62 = vsel %vm1303_vm8, %v1337_v51, %v1336_v58 }
0x12b8   :  { %1654 = vtanh.f32 %v1145_v63  ;;  %1157 = vst.msk [vmem:[#allocation5] sm:$0x3] %vm360_vm0, %v1145_v63 }
0x12bf   :  { %v1248_v20 = vld [vmem:[#allocation5] sm:$0x3] }
0x12c2   :  { %v1655_v2 = vpop.eup %1654 }
0x12c3   :  { %1148 = vrot.lane.b32.xlu0 %v1655_v2, %s1743_s3 }
0x1335   :  { %v1149_v3 = vpop.permute.xlu0 %1148 }
0x1336   :  { %v1151_v4 = vmul.f32 %v1653_v57, %v1149_v3  ;;  %v1301_v57 = vsel %vm1300_vm7, %v1299_v47, %v1298_v55 }
0x1337   :  { %v1304_v61 = vsel %vm1303_vm8, %v1302_v50, %v1301_v57 }
0x1338   :  { %1153 = vrot.lane.b32.xlu1 %v1151_v4, %s1744_s30 }
0x13aa   :  { %v1154_v5 = vpop.permute.xlu1 %1153 }
0x13ab   :  { %1156 = vst.msk [vmem:[#allocation4] sm:$0x3] %vm360_vm0, %v1154_v5  ;;  %1159 = vst.msk [vmem:[#allocation3 + $0xc] sm:$0x3] %vm360_vm0, %v1154_v5 }
0x13b2   :  { %v1162_v6 = vld [vmem:[#allocation4] sm:$0x3]  ;;  %v1280_v44 = vld [vmem:[#allocation3 + $0xc] sm:$0x1]  ;;  %v1319_v45 = vld [vmem:[#allocation3 + $0xd] sm:$0x1] }
0x13b3   :  { %1533 = vmatmul.mubr.msk.f32.vlgmr.msra.gmra.mrb[8].mxu1 %vm369_vm3, %v1162_v6  ;;  %v1305_v53 = vrot.slane %v1280_v44, 2  ;;  %v1339_v54 = vrot.slane %v1319_v45, 2 }
0x13b5   :  { %v1307_v3 = vsel %vm1306_vm9, %v1305_v53, %v1304_v61  ;;  %v1340_v4 = vsel %vm1306_vm9, %v1339_v54, %v1338_v62 }
0x1486   :  { %v1236_v8 = vpop.f32.mrb[8].mxu1 }
0x1487   :  { %v1240_v10 = vadd.f32 %v1236_v8, %v1161_v7  ;;  %v1534_v11 = vpop.f32.mrb[9].mxu1 }
0x1489   :  { %1656 = vtanh.f32 %v1240_v10  ;;  %v1385_v14 = vmul.f32 -1.442695, %v1240_v10 }
0x148b   :  { %1658 = vpow2.f32 %v1385_v14 }
0x1493   :  { %v1657_v13 = vpop.eup %1656 }
0x1494   :  { %1251 = vrot.lane.b32.xlu0 %v1657_v13, %s1743_s3 }
0x1495   :  { %v1659_v15 = vpop.eup %1658 }
0x1496   :  { %v1244_v16 = vadd.f32 1.0, %v1659_v15 }
0x1498   :  { %1660 = vrcp.f32 %v1244_v16 }
0x14a2   :  { %v1661_v17 = vpop.eup %1660 }
0x14a3   :  { %v1249_v21 = vmul.f32 %v1661_v17, %v1248_v20 }
0x1506   :  { %v1252_v18 = vpop.permute.xlu0 %1251 }
0x1507   :  { %v1254_v19 = vmul.f32 %v1661_v17, %v1252_v18 }
0x1509   :  { %1256 = vrot.lane.b32.xlu1 %v1254_v19, %s1743_s3 }
0x157b   :  { %v1257_v22 = vpop.permute.xlu1 %1256 }
0x157c   :  { %v1259_v23 = vadd.f32 %v1257_v22, %v1249_v21 }
0x157e   :  { %1662 = vtanh.f32 %v1259_v23  ;;  %1271 = vst.msk [vmem:[#allocation5] sm:$0x3] %vm360_vm0, %v1259_v23 }
0x1585   :  { %v1346_v24 = vld [vmem:[#allocation5] sm:$0x3] }
0x1586   :  { %1347 = vst.msk [vmem:[%s1977_s5] sm:$0x3] %vm360_vm0, %v1346_v24 }
0x1588   :  { %v1663_v25 = vpop.eup %1662 }
0x1589   :  { %1262 = vrot.lane.b32.xlu0 %v1663_v25, %s1743_s3 }
0x15fb   :  { %v1263_v26 = vpop.permute.xlu0 %1262 }
0x15fc   :  { %v1265_v27 = vmul.f32 %v1661_v17, %v1263_v26 }
0x15fe   :  { %1267 = vrot.lane.b32.xlu1 %v1265_v27, %s1744_s30 }
0x1670   :  { %v1268_v37 = vpop.permute.xlu1 %1267 }
0x1671   :  { %1270 = vst.msk [vmem:[#allocation4] sm:$0x3] %vm360_vm0, %v1268_v37  ;;  %1273 = vst.msk [vmem:[#allocation3 + $0xe] sm:$0x3] %vm360_vm0, %v1268_v37 }
0x1678   :  { %v1281_v59 = vld [vmem:[#allocation3 + $0xe] sm:$0x1]  ;;  %v1320_v60 = vld [vmem:[#allocation3 + $0xf] sm:$0x1] }
0x1679   :  { %v1308_v63 = vrot.slane %v1281_v59, 1  ;;  %v1341_v2 = vrot.slane %v1320_v60, 1 }
0x167b   :  { %v1310_v5 = vsel %vm1309_vm10, %v1308_v63, %v1307_v3  ;;  %v1342_v6 = vsel %vm1309_vm10, %v1341_v2, %v1340_v4 }
0x167c   :  { %1312 = vst.msk [vmem:[%s1976_s4] sm:$0xff] %vm369_vm3, %v1310_v5  ;;  %1386 = vst.msk [vmem:[%s1976_s4 + $0x8] sm:$0xff] %vm369_vm3, %v1342_v6 }
0x167d   :  { %1356 = vsyncpa [#allocation7], 1 }
0x167e   :  { %1357 = vsyncpa [#allocation9], 1 }

// kernel: lstm_forward.3
= control target key start
LH: loop header
LB: loop body
LE: loop exit
PB: predicated region body
PF: predicated region fallthrough
CT: control target
= control target key end

     0   :  { %v1638_v0 = vmov 0.0|0.0   ;;  %vm323_vm0 = vcmask 254976   ;;  %vm1639_vm1 = vmmov 0   ;;  %v1640_v6 = vmov 0.0   ;;  %s1643_s12 = smov 32   ;;  %s1853_s1 = inlined_call_operand.vmem [shape: f32[32,128], index: 1, kind: input, shape index: {}]   ;;  %s1854_s2 = inlined_call_operand.vmem [shape: f32[32,128], index: 2, kind: input, shape index: {}]   ;;  %s1855_s0 = inlined_call_operand.vmem [shape: f32[2,8,32], index: 0, kind: input, shape index: {}]   ;;  %s1856_s3 = inlined_call_operand.vmem [shape: f32[1,128], index: 3, kind: input, shape index: {}]   ;;  %s1857_s5 = inlined_call_operand.vmem [shape: f32[2,32], index: 5, kind: output, shape index: {1}]   ;;  %s1858_s4 = inlined_call_operand.vmem [shape: f32[2,8,32], index: 4, kind: output, shape index: {0}]  }
   0x1   :  { %1508 = vmatprep.subr.bf16.mxu0 %v1638_v0  ;;  %1514 = vmatprep.subr.bf16.mxu1 %v1638_v0  ;;  %v20_v1 = vld [vmem:[%s1853_s1] sm:$0xff]  ;;  %v21_v2 = vld [vmem:[%s1853_s1 + $0x8] sm:$0xff]  ;;  %v22_v3 = vld [vmem:[%s1853_s1 + $0x10] sm:$0xff]  ;;  %324 = vst.msk [vmem:[#allocation4] sm:$0x3] %vm323_vm0, %v1640_v6  ;;  %vm31_vm2 = vcmask 261120   ;;  %v110_v19 = vlaneseq }
   0x2   :  { %v1509_v4 = vpack.c.bf16 %v21_v2, %v20_v1  ;;  %v23_v5 = vld [vmem:[%s1853_s1 + $0x18] sm:$0xff]  ;;  %1406 = vmatprep.mubr.msk.f32.mxu0 %vm1639_vm1, %v1640_v6  ;;  %1417 = vmatprep.mubr.msk.f32.mxu1 %vm1639_vm1, %v1640_v6  ;;  %325 = vst.msk [vmem:[#allocation5] sm:$0x3] %vm323_vm0, %v1640_v6  ;;  %v328_v8 = vld [vmem:[%s1854_s2] sm:$0xff]  ;;  %v329_v9 = vld [vmem:[%s1854_s2 + $0x8] sm:$0xff]  ;;  %vm1253_vm3 = vcmask 1041409  }
   0x3   :  { %v1512_v7 = vpack.c.bf16 %v23_v5, %v22_v3  ;;  %v19_v10 = vld [vmem:[%s1855_s0] sm:$0xff]  ;;  %v1324_v11 = vld [vmem:[%s1855_s0 + $0x8] sm:$0xff]  ;;  %v1710_v12 = vpack.c.bf16 %v329_v9, %v328_v8  ;;  %v330_v13 = vld [vmem:[%s1854_s2 + $0x10] sm:$0xff]  ;;  %v1641_v17 = vmov 1966171168   ;;  %v111_v21 = vshrl.u32 %v110_v19, 7 }
   0x4   :  { %1510 = vmatpush3.bf16.msra.mxu0 %v1509_v4  ;;  %1516 = vmatpush3.bf16.msra.mxu1 %v1509_v4  ;;  %v331_v14 = vld [vmem:[%s1854_s2 + $0x18] sm:$0xff]  ;;  %v108_v18 = vunpack.c.l.s4 %v1641_v17  ;;  %v1318_v22 = vld [vmem:[%s1856_s3] ss:$0 sm:$0xff]  ;;  %s1642_s3 = smov 96   ;;  %vm1256_vm4 = vcmask 1042434   ;;  %vm1259_vm5 = vcmask 1043459  }
   0x5   :  { %1511 = vmatprep.subr.bf16.mxu0 %v1638_v0  ;;  %1517 = vmatprep.subr.bf16.mxu1 %v1638_v0  ;;  %v1723_v15 = vpack.c.bf16 %v331_v14, %v330_v13  ;;  %vm1262_vm6 = vcmask 1044484   ;;  %vm1265_vm7 = vcmask 1045509   ;;  %vm1268_vm8 = vcmask 1046534  }
   0x6   :  { %v109_v20 = vunpack.c.0.s8 %v108_v18  ;;  %vm1271_vm9 = vcmask 1047559  }
   0x8   :  { %1513 = vmatpush3.bf16.msra.mxu0 %v1512_v7  ;;  %1519 = vmatpush3.bf16.msra.mxu1 %v1512_v7  ;;  %v327_v16 = vld [vmem:[#allocation4] sm:$0x3]  ;;  %v112_v23 = vsub.s32 %v109_v20, %v111_v21 }
   0x9   :  { %1520 = vmatprep.subr.bf16.mxu0 %v1638_v0  ;;  %1526 = vmatprep.subr.bf16.mxu1 %v1638_v0  ;;  %v413_v4 = vld [vmem:[#allocation5] sm:$0x3] }
   0xb   :  { %1407 = vmatmul.mubr.msk.f32.vlgmr.msra.gmra.mrb[0].mxu0 %vm31_vm2, %v19_v10  ;;  %1418 = vmatmul.mubr.msk.f32.vlgmr.msra.gmra.mrb[0].mxu1 %vm31_vm2, %v1324_v11 }
   0xc   :  { %1522 = vmatpush3.bf16.msra.mxu0 %v1710_v12  ;;  %1428 = vmatprep.mubr.msk.f32.mxu0 %vm1639_vm1, %v1640_v6 }
   0xd   :  { %1523 = vmatprep.subr.bf16.mxu0 %v1638_v0  ;;  %1528 = vmatpush3.bf16.msra.mxu1 %v1710_v12 }
   0xe   :  { %1529 = vmatprep.subr.bf16.mxu1 %v1638_v0  ;;  %1439 = vmatprep.mubr.msk.f32.mxu1 %vm1639_vm1, %v1640_v6 }
  0x10   :  { %1525 = vmatpush3.bf16.msra.mxu0 %v1723_v15 }
  0x11   :  { %1531 = vmatpush3.bf16.msra.mxu1 %v1723_v15  ;;  %1532 = vmatprep.subr.bf16.mxu0 %v1638_v0 }
  0x12   :  { %1538 = vmatprep.subr.bf16.mxu1 %v1638_v0 }
  0x13   :  { %1429 = vmatmul.mubr.msk.f32.vlgmr.msra.gmra.mrb[2].mxu0 %vm31_vm2, %v327_v16 }
  0x14   :  { %1534 = vmatpush3.bf16.msra.mxu0 %v1710_v12  ;;  %1450 = vmatprep.mubr.msk.f32.mxu0 %vm1639_vm1, %v1640_v6 }
  0x15   :  { %1535 = vmatprep.subr.bf16.mxu0 %v1638_v0 }
  0x18   :  { %1537 = vmatpush3.bf16.msra.mxu0 %v1723_v15 }
  0x19   :  { %1544 = vmatprep.subr.bf16.mxu0 %v1638_v0 }
  0xde   :  { %v101_v24 = vpop.f32.mrb[0].mxu0  ;;  %v253_v25 = vpop.f32.mrb[0].mxu1 }
  0xdf   :  { %v102_v26 = vadd.f32 %v1318_v22, %v101_v24  ;;  %v254_v27 = vadd.f32 %v1318_v22, %v253_v25  ;;  %v1408_v28 = vpop.f32.mrb[1].mxu0  ;;  %v1419_v29 = vpop.f32.mrb[1].mxu1 }
  0xe1   :  { %v106_v30 = vcombine.high %v102_v26, %v102_v26  ;;  %v113_v31 = vrot.slane %v102_v26, %v112_v23  ;;  %v258_v32 = vcombine.high %v254_v27, %v254_v27  ;;  %v265_v33 = vrot.slane %v254_v27, %v112_v23 }
  0xe3   :  { %v120_v34 = vrot.slane %v106_v30, %v112_v23  ;;  %v121_v35 = vcombine.high %v113_v31, %v113_v31  ;;  %v129_v36 = vrot.slane %v113_v31, %v112_v23  ;;  %1320 = vst.sshfl [vmem:[#allocation2] sm:$0x1 pattern:$0x73625140] %v113_v31  ;;  %v272_v37 = vrot.slane %v258_v32, %v112_v23 }
  0xe4   :  { %1327 = vst.sshfl [vmem:[#allocation2 + $0x1] sm:$0x1 pattern:$0x73625140] %v265_v33  ;;  %v273_v38 = vcombine.high %v265_v33, %v265_v33  ;;  %v281_v39 = vrot.slane %v265_v33, %v112_v23 }
  0xe5   :  { %v122_v40 = vcombine.high %v120_v34, %v120_v34  ;;  %v136_v41 = vrot.slane %v120_v34, %v112_v23  ;;  %v143_v42 = vrot.slane %v121_v35, %v112_v23  ;;  %v151_v43 = vcombine.high %v129_v36, %v129_v36  ;;  %1321 = vst.sshfl [vmem:[#allocation2 + $0x2] sm:$0x1 pattern:$0x73625140] %v121_v35 }
  0xe6   :  { %1322 = vst.sshfl [vmem:[#allocation2 + $0x8] sm:$0x1 pattern:$0x73625140] %v120_v34  ;;  %v274_v44 = vcombine.high %v272_v37, %v272_v37  ;;  %v288_v45 = vrot.slane %v272_v37, %v112_v23  ;;  %v295_v46 = vrot.slane %v273_v38, %v112_v23  ;;  %v303_v47 = vcombine.high %v281_v39, %v281_v39  ;;  %v401_v48 = vpop.f32.mrb[2].mxu0 }
  0xe7   :  { %1329 = vst.sshfl [vmem:[#allocation2 + $0x9] sm:$0x1 pattern:$0x73625140] %v272_v37  ;;  %v150_v49 = vrot.slane %v122_v40, %v112_v23  ;;  %v152_v50 = vcombine.high %v136_v41, %v136_v41  ;;  %v153_v51 = vcombine.high %v143_v42, %v143_v42  ;;  %165 = vst [vmem:[#allocation2 + $0x4] sm:$0x1] %v151_v43 }
  0xe8   :  { %1328 = vst.sshfl [vmem:[#allocation2 + $0x3] sm:$0x1 pattern:$0x73625140] %v273_v38  ;;  %v1430_v52 = vpop.f32.mrb[3].mxu0  ;;  %v302_v53 = vrot.slane %v274_v44, %v112_v23  ;;  %v304_v54 = vcombine.high %v288_v45, %v288_v45  ;;  %v305_v55 = vcombine.high %v295_v46, %v295_v46 }
  0xe9   :  { %1323 = vst.sshfl [vmem:[#allocation2 + $0xa] sm:$0x1 pattern:$0x73625140] %v122_v40  ;;  %317 = vst [vmem:[#allocation2 + $0x5] sm:$0x1] %v303_v47  ;;  %v154_v56 = vcombine.high %v150_v49, %v150_v49 }
  0xea   :  { %1330 = vst.sshfl [vmem:[#allocation2 + $0xb] sm:$0x1 pattern:$0x73625140] %v274_v44  ;;  %166 = vst [vmem:[#allocation2 + $0x6] sm:$0x1] %v153_v51  ;;  %v306_v57 = vcombine.high %v302_v53, %v302_v53 }
  0xeb   :  { %169 = vst [vmem:[#allocation2 + $0xc] sm:$0x1] %v152_v50  ;;  %318 = vst [vmem:[#allocation2 + $0x7] sm:$0x1] %v305_v55  ;;  %v326_v58 = vld [vmem:[#allocation2] sm:$0x3] }
  0xec   :  { %321 = vst [vmem:[#allocation2 + $0xd] sm:$0x1] %v304_v54  ;;  %170 = vst [vmem:[#allocation2 + $0xe] sm:$0x1] %v154_v56  ;;  %v405_v59 = vadd.f32 %v401_v48, %v326_v58 }
  0xed   :  { %322 = vst [vmem:[#allocation2 + $0xf] sm:$0x1] %v306_v57 }
  0xee   :  { %1574 = vtanh.f32 %v405_v59  ;;  %v1332_v61 = vmul.f32 -1.442695, %v405_v59 }
  0xef   :  { %v439_v16 = vld [vmem:[#allocation2 + $0x2] sm:$0x3] }
  0xf0   :  { %1576 = vpow2.f32 %v1332_v61  ;;  %v553_v36 = vld [vmem:[#allocation2 + $0x4] sm:$0x3] }
  0xf2   :  { %v667_v56 = vld [vmem:[#allocation2 + $0x6] sm:$0x3] }
  0xf8   :  { %v1575_v60 = vpop.eup %1574 }
  0xf9   :  { %416 = vrot.lane.b32.xlu0 %v1575_v60, %s1642_s3 }
  0xfa   :  { %v1577_v62 = vpop.eup %1576 }
  0xfb   :  { %v409_v63 = vadd.f32 1.0, %v1577_v62 }
  0xfd   :  { %1578 = vrcp.f32 %v409_v63 }
 0x107   :  { %v1579_v1 = vpop.eup %1578 }
 0x108   :  { %v414_v5 = vmul.f32 %v1579_v1, %v413_v4 }
 0x16b   :  { %v417_v2 = vpop.permute.xlu0 %416 }
 0x16c   :  { %v419_v3 = vmul.f32 %v1579_v1, %v417_v2 }
 0x16e   :  { %421 = vrot.lane.b32.xlu0 %v419_v3, %s1642_s3 }
 0x1e0   :  { %v422_v7 = vpop.permute.xlu0 %421 }
 0x1e1   :  { %v424_v8 = vadd.f32 %v422_v7, %v414_v5 }
 0x1e3   :  { %1580 = vtanh.f32 %v424_v8  ;;  %436 = vst.msk [vmem:[#allocation5] sm:$0x3] %vm323_vm0, %v424_v8 }
 0x1ea   :  { %v526_v27 = vld [vmem:[#allocation5] sm:$0x3] }
 0x1ed   :  { %v1581_v9 = vpop.eup %1580 }
 0x1ee   :  { %427 = vrot.lane.b32.xlu1 %v1581_v9, %s1642_s3 }
 0x260   :  { %v428_v10 = vpop.permute.xlu1 %427 }
 0x261   :  { %v430_v11 = vmul.f32 %v1579_v1, %v428_v10 }
 0x263   :  { %432 = vrot.lane.b32.xlu1 %v430_v11, %s1643_s12 }
 0x2d5   :  { %v433_v13 = vpop.permute.xlu1 %432 }
 0x2d6   :  { %435 = vst.msk [vmem:[#allocation4] sm:$0x3] %vm323_vm0, %v433_v13  ;;  %437 = vst.msk [vmem:[#allocation3] sm:$0x3] %vm323_vm0, %v433_v13 }
 0x2dd   :  { %v440_v14 = vld [vmem:[#allocation4] sm:$0x3] }
 0x2de   :  { %1440 = vmatmul.mubr.msk.f32.vlgmr.msra.gmra.mrb[2].mxu1 %vm31_vm2, %v440_v14 }
 0x2df   :  { %1540 = vmatpush3.bf16.msra.mxu1 %v1710_v12  ;;  %1461 = vmatprep.mubr.msk.f32.mxu1 %vm1639_vm1, %v1640_v6 }
 0x2e0   :  { %1541 = vmatprep.subr.bf16.mxu1 %v1638_v0 }
 0x2e3   :  { %1543 = vmatpush3.bf16.msra.mxu1 %v1723_v15 }
 0x2e4   :  { %1550 = vmatprep.subr.bf16.mxu1 %v1638_v0 }
 0x3b1   :  { %v514_v17 = vpop.f32.mrb[2].mxu1 }
 0x3b2   :  { %v518_v18 = vadd.f32 %v514_v17, %v439_v16  ;;  %v1441_v19 = vpop.f32.mrb[3].mxu1  ;;  %v781_v16 = vld [vmem:[#allocation2 + $0x8] sm:$0x3] }
 0x3b4   :  { %1582 = vtanh.f32 %v518_v18  ;;  %v1334_v21 = vmul.f32 -1.442695, %v518_v18 }
 0x3b6   :  { %1584 = vpow2.f32 %v1334_v21 }
 0x3be   :  { %v1583_v20 = vpop.eup %1582 }
 0x3bf   :  { %529 = vrot.lane.b32.xlu0 %v1583_v20, %s1642_s3 }
 0x3c0   :  { %v1585_v22 = vpop.eup %1584 }
 0x3c1   :  { %v522_v23 = vadd.f32 1.0, %v1585_v22 }
 0x3c3   :  { %1586 = vrcp.f32 %v522_v23 }
 0x3cd   :  { %v1587_v24 = vpop.eup %1586 }
 0x3ce   :  { %v527_v28 = vmul.f32 %v1587_v24, %v526_v27 }
 0x431   :  { %v530_v25 = vpop.permute.xlu0 %529 }
 0x432   :  { %v532_v26 = vmul.f32 %v1587_v24, %v530_v25 }
 0x434   :  { %534 = vrot.lane.b32.xlu1 %v532_v26, %s1642_s3 }
 0x4a6   :  { %v535_v29 = vpop.permute.xlu1 %534 }
 0x4a7   :  { %v537_v30 = vadd.f32 %v535_v29, %v527_v28 }
 0x4a9   :  { %1588 = vtanh.f32 %v537_v30  ;;  %549 = vst.msk [vmem:[#allocation5] sm:$0x3] %vm323_vm0, %v537_v30 }
 0x4b0   :  { %v640_v47 = vld [vmem:[#allocation5] sm:$0x3] }
 0x4b3   :  { %v1589_v31 = vpop.eup %1588 }
 0x4b4   :  { %540 = vrot.lane.b32.xlu0 %v1589_v31, %s1642_s3 }
 0x526   :  { %v541_v32 = vpop.permute.xlu0 %540 }
 0x527   :  { %v543_v33 = vmul.f32 %v1587_v24, %v541_v32 }
 0x529   :  { %545 = vrot.lane.b32.xlu1 %v543_v33, %s1643_s12 }
 0x59b   :  { %v546_v34 = vpop.permute.xlu1 %545 }
 0x59c   :  { %548 = vst.msk [vmem:[#allocation4] sm:$0x3] %vm323_vm0, %v546_v34  ;;  %551 = vst.msk [vmem:[#allocation3 + $0x2] sm:$0x3] %vm323_vm0, %v546_v34 }
 0x5a3   :  { %v554_v35 = vld [vmem:[#allocation4] sm:$0x3] }
 0x5a4   :  { %1451 = vmatmul.mubr.msk.f32.vlgmr.msra.gmra.mrb[4].mxu0 %vm31_vm2, %v554_v35 }
 0x5a5   :  { %1546 = vmatpush3.bf16.msra.mxu0 %v1710_v12  ;;  %1472 = vmatprep.mubr.msk.f32.mxu0 %vm1639_vm1, %v1640_v6 }
 0x5a6   :  { %1547 = vmatprep.subr.bf16.mxu0 %v1638_v0 }
 0x5a9   :  { %1549 = vmatpush3.bf16.msra.mxu0 %v1723_v15 }
 0x5aa   :  { %1556 = vmatprep.subr.bf16.mxu0 %v1638_v0 }
 0x677   :  { %v628_v37 = vpop.f32.mrb[4].mxu0 }
 0x678   :  { %v632_v38 = vadd.f32 %v628_v37, %v553_v36  ;;  %v1452_v39 = vpop.f32.mrb[5].mxu0  ;;  %v895_v36 = vld [vmem:[#allocation2 + $0xa] sm:$0x3] }
 0x67a   :  { %1590 = vtanh.f32 %v632_v38  ;;  %v1336_v41 = vmul.f32 -1.442695, %v632_v38 }
 0x67c   :  { %1592 = vpow2.f32 %v1336_v41 }
 0x684   :  { %v1591_v40 = vpop.eup %1590 }
 0x685   :  { %643 = vrot.lane.b32.xlu0 %v1591_v40, %s1642_s3 }
 0x686   :  { %v1593_v42 = vpop.eup %1592 }
 0x687   :  { %v636_v43 = vadd.f32 1.0, %v1593_v42 }
 0x689   :  { %1594 = vrcp.f32 %v636_v43 }
 0x693   :  { %v1595_v44 = vpop.eup %1594 }
 0x694   :  { %v641_v48 = vmul.f32 %v1595_v44, %v640_v47 }
 0x6f7   :  { %v644_v45 = vpop.permute.xlu0 %643 }
 0x6f8   :  { %v646_v46 = vmul.f32 %v1595_v44, %v644_v45 }
 0x6fa   :  { %648 = vrot.lane.b32.xlu1 %v646_v46, %s1642_s3 }
 0x76c   :  { %v649_v49 = vpop.permute.xlu1 %648 }
 0x76d   :  { %v651_v50 = vadd.f32 %v649_v49, %v641_v48 }
 0x76f   :  { %1596 = vtanh.f32 %v651_v50  ;;  %663 = vst.msk [vmem:[#allocation5] sm:$0x3] %vm323_vm0, %v651_v50 }
 0x776   :  { %v754_v4 = vld [vmem:[#allocation5] sm:$0x3] }
 0x779   :  { %v1597_v51 = vpop.eup %1596 }
 0x77a   :  { %654 = vrot.lane.b32.xlu0 %v1597_v51, %s1642_s3 }
 0x7ec   :  { %v655_v52 = vpop.permute.xlu0 %654 }
 0x7ed   :  { %v657_v53 = vmul.f32 %v1595_v44, %v655_v52  ;;  %v1009_v52 = vld [vmem:[#allocation2 + $0xc] sm:$0x3] }
 0x7ef   :  { %659 = vrot.lane.b32.xlu1 %v657_v53, %s1643_s12 }
 0x861   :  { %v660_v54 = vpop.permute.xlu1 %659 }
 0x862   :  { %662 = vst.msk [vmem:[#allocation4] sm:$0x3] %vm323_vm0, %v660_v54  ;;  %665 = vst.msk [vmem:[#allocation3 + $0x4] sm:$0x3] %vm323_vm0, %v660_v54 }
 0x869   :  { %v668_v55 = vld [vmem:[#allocation4] sm:$0x3] }
 0x86a   :  { %1462 = vmatmul.mubr.msk.f32.vlgmr.msra.gmra.mrb[4].mxu1 %vm31_vm2, %v668_v55 }
 0x86b   :  { %1552 = vmatpush3.bf16.msra.mxu1 %v1710_v12  ;;  %1483 = vmatprep.mubr.msk.f32.mxu1 %vm1639_vm1, %v1640_v6 }
 0x86c   :  { %1553 = vmatprep.subr.bf16.mxu1 %v1638_v0 }
 0x86f   :  { %1555 = vmatpush3.bf16.msra.mxu1 %v1723_v15 }
 0x870   :  { %1562 = vmatprep.subr.bf16.mxu1 %v1638_v0 }
 0x93d   :  { %v742_v57 = vpop.f32.mrb[4].mxu1 }
 0x93e   :  { %v746_v58 = vadd.f32 %v742_v57, %v667_v56  ;;  %v1463_v59 = vpop.f32.mrb[5].mxu1 }
 0x940   :  { %1598 = vtanh.f32 %v746_v58  ;;  %v1338_v61 = vmul.f32 -1.442695, %v746_v58 }
 0x942   :  { %1600 = vpow2.f32 %v1338_v61 }
 0x94a   :  { %v1599_v60 = vpop.eup %1598 }
 0x94b   :  { %757 = vrot.lane.b32.xlu0 %v1599_v60, %s1642_s3 }
 0x94c   :  { %v1601_v62 = vpop.eup %1600 }
 0x94d   :  { %v750_v63 = vadd.f32 1.0, %v1601_v62 }
 0x94f   :  { %1602 = vrcp.f32 %v750_v63 }
 0x959   :  { %v1603_v1 = vpop.eup %1602 }
 0x95a   :  { %v755_v5 = vmul.f32 %v1603_v1, %v754_v4 }
 0x9bd   :  { %v758_v2 = vpop.permute.xlu0 %757 }
 0x9be   :  { %v760_v3 = vmul.f32 %v1603_v1, %v758_v2 }
 0x9c0   :  { %762 = vrot.lane.b32.xlu1 %v760_v3, %s1642_s3 }
 0xa32   :  { %v763_v7 = vpop.permute.xlu1 %762 }
 0xa33   :  { %v765_v8 = vadd.f32 %v763_v7, %v755_v5 }
 0xa35   :  { %1604 = vtanh.f32 %v765_v8  ;;  %777 = vst.msk [vmem:[#allocation5] sm:$0x3] %vm323_vm0, %v765_v8 }
 0xa3c   :  { %v868_v27 = vld [vmem:[#allocation5] sm:$0x3] }
 0xa3f   :  { %v1605_v9 = vpop.eup %1604 }
 0xa40   :  { %768 = vrot.lane.b32.xlu0 %v1605_v9, %s1642_s3 }
 0xab2   :  { %v769_v10 = vpop.permute.xlu0 %768 }
 0xab3   :  { %v771_v11 = vmul.f32 %v1603_v1, %v769_v10  ;;  %v1123_v10 = vld [vmem:[#allocation2 + $0xe] sm:$0x3] }
 0xab5   :  { %773 = vrot.lane.b32.xlu1 %v771_v11, %s1643_s12 }
 0xb27   :  { %v774_v13 = vpop.permute.xlu1 %773 }
 0xb28   :  { %776 = vst.msk [vmem:[#allocation4] sm:$0x3] %vm323_vm0, %v774_v13  ;;  %779 = vst.msk [vmem:[#allocation3 + $0x6] sm:$0x3] %vm323_vm0, %v774_v13 }
 0xb2f   :  { %v782_v14 = vld [vmem:[#allocation4] sm:$0x3] }
 0xb30   :  { %1473 = vmatmul.mubr.msk.f32.vlgmr.msra.gmra.mrb[6].mxu0 %vm31_vm2, %v782_v14 }
 0xb31   :  { %1558 = vmatpush3.bf16.msra.mxu0 %v1710_v12  ;;  %1494 = vmatprep.mubr.msk.f32.mxu0 %vm1639_vm1, %v1640_v6 }
 0xb32   :  { %1559 = vmatprep.subr.bf16.mxu0 %v1638_v0 }
 0xb35   :  { %1561 = vmatpush3.bf16.msra.mxu0 %v1723_v15 }
 0xc03   :  { %v856_v17 = vpop.f32.mrb[6].mxu0 }
 0xc04   :  { %v860_v18 = vadd.f32 %v856_v17, %v781_v16  ;;  %v1474_v19 = vpop.f32.mrb[7].mxu0 }
 0xc06   :  { %1606 = vtanh.f32 %v860_v18  ;;  %v1340_v21 = vmul.f32 -1.442695, %v860_v18 }
 0xc08   :  { %1608 = vpow2.f32 %v1340_v21 }
 0xc10   :  { %v1607_v20 = vpop.eup %1606 }
 0xc11   :  { %871 = vrot.lane.b32.xlu0 %v1607_v20, %s1642_s3 }
 0xc12   :  { %v1609_v22 = vpop.eup %1608 }
 0xc13   :  { %v864_v23 = vadd.f32 1.0, %v1609_v22 }
 0xc15   :  { %1610 = vrcp.f32 %v864_v23 }
 0xc1f   :  { %v1611_v24 = vpop.eup %1610 }
 0xc20   :  { %v869_v28 = vmul.f32 %v1611_v24, %v868_v27 }
 0xc83   :  { %v872_v25 = vpop.permute.xlu0 %871 }
 0xc84   :  { %v874_v26 = vmul.f32 %v1611_v24, %v872_v25 }
 0xc86   :  { %876 = vrot.lane.b32.xlu1 %v874_v26, %s1642_s3 }
 0xcf8   :  { %v877_v29 = vpop.permute.xlu1 %876 }
 0xcf9   :  { %v879_v30 = vadd.f32 %v877_v29, %v869_v28 }
 0xcfb   :  { %1612 = vtanh.f32 %v879_v30  ;;  %891 = vst.msk [vmem:[#allocation5] sm:$0x3] %vm323_vm0, %v879_v30 }
 0xd05   :  { %v1613_v31 = vpop.eup %1612 }
 0xd06   :  { %882 = vrot.lane.b32.xlu0 %v1613_v31, %s1642_s3  ;;  %v1237_v31 = vld [vmem:[#allocation3 + $0x2] sm:$0x1] }
 0xd78   :  { %v883_v32 = vpop.permute.xlu0 %882 }
 0xd79   :  { %v885_v33 = vmul.f32 %v1611_v24, %v883_v32  ;;  %v1276_v32 = vld [vmem:[#allocation3 + $0x3] sm:$0x1] }
 0xd7b   :  { %887 = vrot.lane.b32.xlu1 %v885_v33, %s1643_s12  ;;  %v1238_v33 = vld [vmem:[#allocation3 + $0x4] sm:$0x1] }
 0xded   :  { %v888_v34 = vpop.permute.xlu1 %887 }
 0xdee   :  { %890 = vst.msk [vmem:[#allocation4] sm:$0x3] %vm323_vm0, %v888_v34  ;;  %893 = vst.msk [vmem:[#allocation3 + $0x8] sm:$0x3] %vm323_vm0, %v888_v34  ;;  %v1252_v34 = vrot.slane %v1237_v31, 7 }
 0xdf5   :  { %v896_v35 = vld [vmem:[#allocation4] sm:$0x3] }
 0xdf6   :  { %1484 = vmatmul.mubr.msk.f32.vlgmr.msra.gmra.mrb[6].mxu1 %vm31_vm2, %v896_v35  ;;  %v1277_v35 = vld [vmem:[#allocation3 + $0x5] sm:$0x1] }
 0xdf7   :  { %1564 = vmatpush3.bf16.msra.mxu1 %v1710_v12  ;;  %1505 = vmatprep.mubr.msk.f32.mxu1 %vm1639_vm1, %v1640_v6 }
 0xdf8   :  { %1565 = vmatprep.subr.bf16.mxu1 %v1638_v0  ;;  %v982_v0 = vld [vmem:[#allocation5] sm:$0x3] }
 0xdfb   :  { %1567 = vmatpush3.bf16.msra.mxu1 %v1723_v15 }
 0xec9   :  { %v970_v37 = vpop.f32.mrb[6].mxu1 }
 0xeca   :  { %v974_v38 = vadd.f32 %v970_v37, %v895_v36  ;;  %v1485_v39 = vpop.f32.mrb[7].mxu1  ;;  %v1236_v36 = vld [vmem:[#allocation3] sm:$0x1]  ;;  %v1291_v37 = vrot.slane %v1276_v32, 7 }
 0xecb   :  { %v1278_v39 = vld [vmem:[#allocation3 + $0x7] sm:$0x1] }
 0xecc   :  { %1614 = vtanh.f32 %v974_v38  ;;  %v1342_v41 = vmul.f32 -1.442695, %v974_v38  ;;  %v1239_v38 = vld [vmem:[#allocation3 + $0x6] sm:$0x1] }
 0xece   :  { %1616 = vpow2.f32 %v1342_v41  ;;  %v1275_v41 = vld [vmem:[#allocation3 + $0x1] sm:$0x1] }
 0xed6   :  { %v1615_v40 = vpop.eup %1614 }
 0xed7   :  { %985 = vrot.lane.b32.xlu0 %v1615_v40, %s1642_s3 }
 0xed8   :  { %v1617_v42 = vpop.eup %1616 }
 0xed9   :  { %v978_v43 = vadd.f32 1.0, %v1617_v42  ;;  %v1255_v42 = vrot.slane %v1238_v33, 6 }
 0xedb   :  { %1618 = vrcp.f32 %v978_v43  ;;  %v1240_v43 = vld [vmem:[#allocation3 + $0x8] sm:$0x1] }
 0xee5   :  { %v1619_v12 = vpop.eup %1618 }
 0xee6   :  { %v983_v15 = vmul.f32 %v1619_v12, %v982_v0 }
 0xf49   :  { %v986_v44 = vpop.permute.xlu0 %985 }
 0xf4a   :  { %v988_v6 = vmul.f32 %v1619_v12, %v986_v44  ;;  %v1293_v44 = vrot.slane %v1277_v35, 6 }
 0xf4c   :  { %990 = vrot.lane.b32.xlu1 %v988_v6, %s1642_s3 }
 0xfbe   :  { %v991_v45 = vpop.permute.xlu1 %990 }
 0xfbf   :  { %v993_v46 = vadd.f32 %v991_v45, %v983_v15  ;;  %v1254_v15 = vsel %vm1253_vm3, %v1252_v34, %v1236_v36  ;;  %v1258_v45 = vrot.slane %v1239_v38, 5 }
 0xfc1   :  { %1620 = vtanh.f32 %v993_v46  ;;  %1005 = vst.msk [vmem:[#allocation5] sm:$0x3] %vm323_vm0, %v993_v46  ;;  %v1295_v46 = vrot.slane %v1278_v39, 5 }
 0xfc8   :  { %v1096_v63 = vld [vmem:[#allocation5] sm:$0x3] }
 0xfcb   :  { %v1621_v47 = vpop.eup %1620 }
 0xfcc   :  { %996 = vrot.lane.b32.xlu0 %v1621_v47, %s1642_s3 }
0x103e   :  { %v997_v48 = vpop.permute.xlu0 %996 }
0x103f   :  { %v999_v49 = vmul.f32 %v1619_v12, %v997_v48  ;;  %v1279_v12 = vld [vmem:[#allocation3 + $0x9] sm:$0x1] }
0x1041   :  { %1001 = vrot.lane.b32.xlu1 %v999_v49, %s1643_s12  ;;  %v1292_v49 = vsel %vm1253_vm3, %v1291_v37, %v1275_v41 }
0x10b3   :  { %v1002_v50 = vpop.permute.xlu1 %1001 }
0x10b4   :  { %1004 = vst.msk [vmem:[#allocation4] sm:$0x3] %vm323_vm0, %v1002_v50  ;;  %1007 = vst.msk [vmem:[#allocation3 + $0xa] sm:$0x3] %vm323_vm0, %v1002_v50  ;;  %v1261_v50 = vrot.slane %v1240_v43, 4 }
0x10bb   :  { %v1010_v51 = vld [vmem:[#allocation4] sm:$0x3]  ;;  %v1241_v6 = vld [vmem:[#allocation3 + $0xa] sm:$0x1]  ;;  %v1280_v0 = vld [vmem:[#allocation3 + $0xb] sm:$0x1] }
0x10bc   :  { %1495 = vmatmul.mubr.msk.f32.vlgmr.msra.gmra.mrb[8].mxu0 %vm31_vm2, %v1010_v51  ;;  %v1297_v51 = vrot.slane %v1279_v12, 4 }
0x118f   :  { %v1084_v53 = vpop.f32.mrb[8].mxu0 }
0x1190   :  { %v1088_v54 = vadd.f32 %v1084_v53, %v1009_v52  ;;  %v1496_v55 = vpop.f32.mrb[9].mxu0  ;;  %v1257_v52 = vsel %vm1256_vm4, %v1255_v42, %v1254_v15  ;;  %v1264_v53 = vrot.slane %v1241_v6, 3 }
0x1191   :  { %v1294_v55 = vsel %vm1256_vm4, %v1293_v44, %v1292_v49 }
0x1192   :  { %1622 = vtanh.f32 %v1088_v54  ;;  %v1344_v57 = vmul.f32 -1.442695, %v1088_v54  ;;  %v1299_v54 = vrot.slane %v1280_v0, 3 }
0x1194   :  { %1624 = vpow2.f32 %v1344_v57 }
0x119c   :  { %v1623_v56 = vpop.eup %1622 }
0x119d   :  { %1099 = vrot.lane.b32.xlu0 %v1623_v56, %s1642_s3 }
0x119e   :  { %v1625_v58 = vpop.eup %1624 }
0x119f   :  { %v1092_v59 = vadd.f32 1.0, %v1625_v58  ;;  %v1260_v58 = vsel %vm1259_vm5, %v1258_v45, %v1257_v52 }
0x11a1   :  { %1626 = vrcp.f32 %v1092_v59  ;;  %v1296_v59 = vsel %vm1259_vm5, %v1295_v46, %v1294_v55 }
0x11ab   :  { %v1627_v60 = vpop.eup %1626 }
0x11ac   :  { %v1097_v1 = vmul.f32 %v1627_v60, %v1096_v63 }
0x120f   :  { %v1100_v61 = vpop.permute.xlu0 %1099 }
0x1210   :  { %v1102_v62 = vmul.f32 %v1627_v60, %v1100_v61  ;;  %v1298_v61 = vsel %vm1262_vm6, %v1297_v51, %v1296_v59 }
0x1212   :  { %1104 = vrot.lane.b32.xlu1 %v1102_v62, %s1642_s3 }
0x1284   :  { %v1105_v2 = vpop.permute.xlu1 %1104 }
0x1285   :  { %v1107_v3 = vadd.f32 %v1105_v2, %v1097_v1  ;;  %v1300_v2 = vsel %vm1265_vm7, %v1299_v54, %v1298_v61 }
0x1287   :  { %1628 = vtanh.f32 %v1107_v3  ;;  %1119 = vst.msk [vmem:[#allocation5] sm:$0x3] %vm323_vm0, %v1107_v3 }
0x128e   :  { %v1210_v23 = vld [vmem:[#allocation5] sm:$0x3] }
0x1291   :  { %v1629_v4 = vpop.eup %1628 }
0x1292   :  { %1110 = vrot.lane.b32.xlu0 %v1629_v4, %s1642_s3 }
0x1304   :  { %v1111_v5 = vpop.permute.xlu0 %1110 }
0x1305   :  { %v1113_v7 = vmul.f32 %v1627_v60, %v1111_v5  ;;  %v1263_v60 = vsel %vm1262_vm6, %v1261_v50, %v1260_v58 }
0x1306   :  { %v1266_v1 = vsel %vm1265_vm7, %v1264_v53, %v1263_v60 }
0x1307   :  { %1115 = vrot.lane.b32.xlu1 %v1113_v7, %s1643_s12 }
0x1379   :  { %v1116_v8 = vpop.permute.xlu1 %1115 }
0x137a   :  { %1118 = vst.msk [vmem:[#allocation4] sm:$0x3] %vm323_vm0, %v1116_v8  ;;  %1121 = vst.msk [vmem:[#allocation3 + $0xc] sm:$0x3] %vm323_vm0, %v1116_v8 }
0x1381   :  { %v1124_v9 = vld [vmem:[#allocation4] sm:$0x3]  ;;  %v1242_v47 = vld [vmem:[#allocation3 + $0xc] sm:$0x1]  ;;  %v1281_v48 = vld [vmem:[#allocation3 + $0xd] sm:$0x1] }
0x1382   :  { %1506 = vmatmul.mubr.msk.f32.vlgmr.msra.gmra.mrb[8].mxu1 %vm31_vm2, %v1124_v9  ;;  %v1267_v56 = vrot.slane %v1242_v47, 2  ;;  %v1301_v57 = vrot.slane %v1281_v48, 2 }
0x1384   :  { %v1269_v5 = vsel %vm1268_vm8, %v1267_v56, %v1266_v1  ;;  %v1302_v7 = vsel %vm1268_vm8, %v1301_v57, %v1300_v2 }
0x1455   :  { %v1198_v11 = vpop.f32.mrb[8].mxu1 }
0x1456   :  { %v1202_v13 = vadd.f32 %v1198_v11, %v1123_v10  ;;  %v1507_v14 = vpop.f32.mrb[9].mxu1 }
0x1458   :  { %1630 = vtanh.f32 %v1202_v13  ;;  %v1346_v17 = vmul.f32 -1.442695, %v1202_v13 }
0x145a   :  { %1632 = vpow2.f32 %v1346_v17 }
0x1462   :  { %v1631_v16 = vpop.eup %1630 }
0x1463   :  { %1213 = vrot.lane.b32.xlu0 %v1631_v16, %s1642_s3 }
0x1464   :  { %v1633_v18 = vpop.eup %1632 }
0x1465   :  { %v1206_v19 = vadd.f32 1.0, %v1633_v18 }
0x1467   :  { %1634 = vrcp.f32 %v1206_v19 }
0x1471   :  { %v1635_v20 = vpop.eup %1634 }
0x1472   :  { %v1211_v24 = vmul.f32 %v1635_v20, %v1210_v23 }
0x14d5   :  { %v1214_v21 = vpop.permute.xlu0 %1213 }
0x14d6   :  { %v1216_v22 = vmul.f32 %v1635_v20, %v1214_v21 }
0x14d8   :  { %1218 = vrot.lane.b32.xlu1 %v1216_v22, %s1642_s3 }
0x154a   :  { %v1219_v25 = vpop.permute.xlu1 %1218 }
0x154b   :  { %v1221_v26 = vadd.f32 %v1219_v25, %v1211_v24 }
0x154d   :  { %1636 = vtanh.f32 %v1221_v26  ;;  %1233 = vst.msk [vmem:[#allocation5] sm:$0x3] %vm323_vm0, %v1221_v26 }
0x1554   :  { %v1308_v27 = vld [vmem:[#allocation5] sm:$0x3] }
0x1555   :  { %1309 = vst.msk [vmem:[%s1857_s5] sm:$0x3] %vm323_vm0, %v1308_v27 }
0x1557   :  { %v1637_v28 = vpop.eup %1636 }
0x1558   :  { %1224 = vrot.lane.b32.xlu0 %v1637_v28, %s1642_s3 }
0x15ca   :  { %v1225_v29 = vpop.permute.xlu0 %1224 }
0x15cb   :  { %v1227_v30 = vmul.f32 %v1635_v20, %v1225_v29 }
0x15cd   :  { %1229 = vrot.lane.b32.xlu1 %v1227_v30, %s1643_s12 }
0x163f   :  { %v1230_v40 = vpop.permute.xlu1 %1229 }
0x1640   :  { %1232 = vst.msk [vmem:[#allocation4] sm:$0x3] %vm323_vm0, %v1230_v40  ;;  %1235 = vst.msk [vmem:[#allocation3 + $0xe] sm:$0x3] %vm323_vm0, %v1230_v40 }
0x1647   :  { %v1243_v62 = vld [vmem:[#allocation3 + $0xe] sm:$0x1]  ;;  %v1282_v63 = vld [vmem:[#allocation3 + $0xf] sm:$0x1] }
0x1648   :  { %v1270_v3 = vrot.slane %v1243_v62, 1  ;;  %v1303_v4 = vrot.slane %v1282_v63, 1 }
0x164a   :  { %v1272_v8 = vsel %vm1271_vm9, %v1270_v3, %v1269_v5  ;;  %v1304_v9 = vsel %vm1271_vm9, %v1303_v4, %v1302_v7 }
0x164b   :  { %1274 = vst.msk [vmem:[%s1858_s4] sm:$0xff] %vm31_vm2, %v1272_v8  ;;  %1347 = vst.msk [vmem:[%s1858_s4 + $0x8] sm:$0xff] %vm31_vm2, %v1304_v9 }

</bundles_post_ra>
